<compile_context>
chip_gen: v6e
topology: v6e:2x2x1
jax: 0.10.0
libtpu: 0.0.40
codegen_flags: <defaults>
</compile_context>

<pallas_src>
import functools

import numpy as np
import jax
import jax.numpy as jnp
from jax import lax
from jax.experimental import pallas as pl
from jax.experimental.pallas import tpu as pltpu

BN_EPS = 1e-5


def _round_up(x, m):
    return ((x + m - 1) // m) * m


@functools.lru_cache(maxsize=None)
def _tpu_config():
    """Returns (per-step VMEM budget, scoped VMEM limit, dual_core).

    v7x   : 64 MiB VMEM / 2 TensorCores -> small budget, keep 2 parallel blocks.
    v5e/v6e: 128 MiB VMEM / 1 TensorCore -> big budget (fewer, larger steps).
    Unknown: conservative v7x-sized budget (safe on every generation).
    """
    vmem = 0
    try:
        vmem = int(getattr(pltpu.get_tpu_info(), "vmem_capacity_bytes", 0) or 0)
    except Exception:
        vmem = 0
    if vmem <= 0:
        kind = ""
        try:
            kind = jax.devices()[0].device_kind.lower()
        except Exception:
            pass
        vmem = (128 if ("v5" in kind or "v6" in kind) else 64) * 1024 * 1024
    if vmem <= 64 * 1024 * 1024:                       # v7x-class chip
        return 36 * 1024 * 1024, 48 * 1024 * 1024, True
    return 96 * 1024 * 1024, 112 * 1024 * 1024, False  # v5e / v6e


# ---------------------------------------------------------------------------
# Pallas kernel: GEMM (bf16 -> MXU, f32 accumulate) + affine + ReLU (+ L2 norm)
# ---------------------------------------------------------------------------
def _gemm_bn_act_kernel(x_ref, w_ref, s_ref, b_ref, o_ref, *, relu,
                        l2_normalize):
    acc = jnp.dot(x_ref[...], w_ref[...], preferred_element_type=jnp.float32)
    y = acc * s_ref[...] + b_ref[...]          # folded BN / bias (per column)
    if relu:
        y = jnp.maximum(y, 0.0)
    if l2_normalize:                           # fc8 epilogue: whole row in-tile
        ss = jnp.sum(y * y, axis=1, keepdims=True)
        y = y * lax.rsqrt(ss + 1e-12)          # rsqrt -> EUP slot; eps guards 0
    o_ref[...] = y.astype(o_ref.dtype)


def fused_gemm(x, w, scale, shift, *, relu=False, l2_normalize=False,
               out_dtype=jnp.bfloat16):
    """act((x @ w) * scale + shift), optionally L2-normalized per row.

    x: (M, K) float (producers already emit bf16, so the cast below is
       normally a no-op), w: (K, N) bf16 (unpadded), scale/shift: (1, N) f32.
    Blocks cover the full K (single reduction step) and full M unless
    VMEM-bound; N is split in two on dual-TC chips (v7x) for megacore.
    """
    budget, vmem_limit, dual_core = _tpu_config()
    if x.dtype != jnp.bfloat16:
        x = x.astype(jnp.bfloat16)
    M, K = x.shape
    Kw, N = w.shape
    assert Kw == K, (Kw, K)

    # Tiny-M (FC layers at batch=2): pad rows to one sublane group (negligible).
    Mp = M
    if Mp < 8:
        Mp = 8
        x = jnp.pad(x, ((0, Mp - M), (0, 0)))

    # N tile: full rows -> contiguous weight streaming (FC layers are purely
    # weight-bandwidth bound at batch=2); split in two on v7x for its 2 TCs.
    if l2_normalize:
        tn = N                         # epilogue must see the whole feature row
    elif dual_core and N % 256 == 0:
        tn = N // 2
    else:
        tn = N

    def step_bytes(tm):
        # double-buffered bf16 x / bf16 w tiles + f32 accumulator/output tile
        return 2 * (tm * K * 2 + K * tn * 2 + tm * tn * 4)

    if step_bytes(Mp) <= budget:
        tm = Mp                        # whole GEMM in one (or two) grid steps
    else:
        # Fallback for much larger inputs: tile M (8-row aligned) + pad rows.
        tm = 8
        while tm * 2 <= 4096 and step_bytes(tm * 2) <= budget:
            tm *= 2
        if Mp % tm:
            pad = _round_up(Mp, tm) - Mp
            x = jnp.pad(x, ((0, pad), (0, 0)))
            Mp += pad

    out = pl.pallas_call(
        functools.partial(_gemm_bn_act_kernel, relu=relu,
                          l2_normalize=l2_normalize),
        out_shape=jax.ShapeDtypeStruct((Mp, N), out_dtype),
        grid_spec=pltpu.PrefetchScalarGridSpec(
            num_scalar_prefetch=0,
            grid=(Mp // tm, N // tn),
            in_specs=[
                pl.BlockSpec((tm, K), lambda i, j: (i, 0)),
                pl.BlockSpec((K, tn), lambda i, j: (0, j)),
                pl.BlockSpec((1, tn), lambda i, j: (0, j)),
                pl.BlockSpec((1, tn), lambda i, j: (0, j)),
            ],
            out_specs=pl.BlockSpec((tm, tn), lambda i, j: (i, j)),
        ),
        compiler_params=pltpu.CompilerParams(
            dimension_semantics=("parallel", "parallel"),
            vmem_limit_bytes=vmem_limit),
    )(x, w, scale, shift)
    return out if Mp == M else out[:M]


# ---------------------------------------------------------------------------
# Conv / pooling glue (plain JAX, bf16, collapsed to a handful of ops)
# ---------------------------------------------------------------------------
def im2col(x, kh, kw, stride, pad):
    """(N,H,W,C) -> bf16 patches (N*Ho*Wo, kh*kw*C), Ho, Wo.

    Cast to bf16 BEFORE the gathers / 6-D transpose so the relayout moves half
    the bytes; patches are emitted exactly in the (unpadded) layout the GEMM
    consumes, so no extra pad pass is materialized.
    """
    # TODO(synk): for the larger convs a tap-decomposed conv (kh*kw shifted
    # GEMMs) or lax.conv_general_dilated_patches would avoid this relayout.
    x = x.astype(jnp.bfloat16)
    if pad:
        x = jnp.pad(x, ((0, 0), (pad, pad), (pad, pad), (0, 0)))
    N, H, W, C = x.shape
    Ho = (H - kh) // stride + 1
    Wo = (W - kw) // stride + 1
    ridx = (np.arange(Ho)[:, None] * stride + np.arange(kh)[None, :]) \
        .reshape(-1).astype(np.int32)
    cidx = (np.arange(Wo)[:, None] * stride + np.arange(kw)[None, :]) \
        .reshape(-1).astype(np.int32)
    g = jnp.take(x, jnp.asarray(ridx), axis=1).reshape(N, Ho, kh, W, C)
    g = jnp.take(g, jnp.asarray(cidx), axis=3).reshape(N, Ho, kh, Wo, kw, C)
    g = jnp.transpose(g, (0, 1, 3, 2, 4, 5))            # (N,Ho,Wo,kh,kw,C)
    return g.reshape(N * Ho * Wo, kh * kw * C), Ho, Wo


def conv_bn_relu(x, p, kh, kw, stride, pad):
    patches, Ho, Wo = im2col(x, kh, kw, stride, pad)
    nb = x.shape[0]
    cout = p["w"].shape[1]
    y = fused_gemm(patches, p["w"], p["scale"], p["shift"], relu=True,
                   out_dtype=jnp.bfloat16)     # bf16 activations downstream
    return y.reshape(nb, Ho, Wo, cout)


# TODO(synk): AdaptiveMaxPool2d has irregular per-output windows; kept in plain
# JAX (torch floor/ceil window formula) as one gather + one max per axis.
def adaptive_max_pool(x, out_size):
    def pool_axis(x, axis):
        in_size = x.shape[axis]
        i = np.arange(out_size)
        starts = (i * in_size) // out_size
        ends = -((-(i + 1) * in_size) // out_size)       # ceil
        wmax = int((ends - starts).max())
        idx = np.minimum(starts[:, None] + np.arange(wmax)[None, :],
                         ends[:, None] - 1)              # clamp dups (max-safe)
        g = jnp.take(x, jnp.asarray(idx.reshape(-1).astype(np.int32)),
                     axis=axis)
        new_shape = x.shape[:axis] + (out_size, wmax) + x.shape[axis + 1:]
        return jnp.max(g.reshape(new_shape), axis=axis + 1)

    x = pool_axis(x, 1)
    x = pool_axis(x, 2)
    return x


# ---------------------------------------------------------------------------
# Parameters (deterministic synthetic init; BN folded to eval-mode affine,
# weights stored once as unpadded bf16 so every forward streams them as-is).
# ---------------------------------------------------------------------------
def _prep_gemm_params(w, scale, shift):
    K, N = w.shape
    return {"w": w.astype(jnp.bfloat16),
            "scale": scale.reshape(1, N).astype(jnp.float32),
            "shift": shift.reshape(1, N).astype(jnp.float32)}


def _conv_params(key, kh, kw, cin, cout):
    kw_, kg, kb = jax.random.split(key, 3)
    fan_in = kh * kw * cin
    w4 = jax.random.normal(kw_, (kh, kw, cin, cout), jnp.float32) / np.sqrt(fan_in)
    gamma = 1.0 + 0.1 * jax.random.normal(kg, (cout,), jnp.float32)
    beta = 0.1 * jax.random.normal(kb, (cout,), jnp.float32)
    # eval-mode BN with running_mean=0, running_var=1 (synthetic init)
    scale = gamma / jnp.sqrt(1.0 + BN_EPS)
    shift = beta
    return _prep_gemm_params(w4.reshape(kh * kw * cin, cout), scale, shift)


def _fc_params(key, din, dout, bn):
    kw_, kb, kg, kbb = jax.random.split(key, 4)
    w = jax.random.normal(kw_, (din, dout), jnp.float32) / np.sqrt(din)
    b = 0.1 * jax.random.normal(kb, (dout,), jnp.float32)
    if bn:
        gamma = 1.0 + 0.1 * jax.random.normal(kg, (dout,), jnp.float32)
        beta = 0.1 * jax.random.normal(kbb, (dout,), jnp.float32)
        scale = gamma / jnp.sqrt(1.0 + BN_EPS)
        shift = scale * b + beta           # fold Linear bias through BN affine
    else:
        scale = jnp.ones((dout,), jnp.float32)
        shift = b
    return _prep_gemm_params(w, scale, shift)


def init_alexnet_half(key, in_channel=3, feat_dim=128):
    ks = jax.random.split(key, 8)
    return {
        "conv1": _conv_params(ks[0], 11, 11, in_channel, 96 // 2),
        "conv2": _conv_params(ks[1], 5, 5, 96 // 2, 256 // 2),
        "conv3": _conv_params(ks[2], 3, 3, 256 // 2, 384 // 2),
        "conv4": _conv_params(ks[3], 3, 3, 384 // 2, 384 // 2),
        "conv5": _conv_params(ks[4], 3, 3, 384 // 2, 256 // 2),
        "fc6": _fc_params(ks[5], 256 * 6 * 6 // 2, 4096 // 2, bn=True),
        "fc7": _fc_params(ks[6], 4096 // 2, 4096 // 2, bn=True),
        "fc8": _fc_params(ks[7], 4096 // 2, feat_dim, bn=False),
    }


# ---------------------------------------------------------------------------
# Forward passes
# ---------------------------------------------------------------------------
def alexnet_half_forward(params, x_nchw, layer=8):
    if layer <= 0:
        return x_nchw

    def nchw_f32(t):                     # early-exit convention: NCHW float32
        return jnp.transpose(t, (0, 3, 1, 2)).astype(jnp.float32)

    x = jnp.transpose(x_nchw, (0, 2, 3, 1))              # NCHW -> NHWC

    x = adaptive_max_pool(conv_bn_relu(x, params["conv1"], 11, 11, 4, 2), 27)
    if layer == 1:
        return nchw_f32(x)
    x = adaptive_max_pool(conv_bn_relu(x, params["conv2"], 5, 5, 1, 2), 13)
    if layer == 2:
        return nchw_f32(x)
    x = conv_bn_relu(x, params["conv3"], 3, 3, 1, 1)
    if layer == 3:
        return nchw_f32(x)
    x = conv_bn_relu(x, params["conv4"], 3, 3, 1, 1)
    if layer == 4:
        return nchw_f32(x)
    x = adaptive_max_pool(conv_bn_relu(x, params["conv5"], 3, 3, 1, 1), 6)
    if layer == 5:
        return nchw_f32(x)

    # flatten in NCHW (C,H,W) order to match torch's x.view(N, -1)
    x = jnp.transpose(x, (0, 3, 1, 2)).reshape(x.shape[0], -1)
    p = params["fc6"]
    x = fused_gemm(x, p["w"], p["scale"], p["shift"], relu=True)
    if layer == 6:
        return x.astype(jnp.float32)
    p = params["fc7"]
    x = fused_gemm(x, p["w"], p["scale"], p["shift"], relu=True)
    if layer == 7:
        return x.astype(jnp.float32)
    p = params["fc8"]
    # fc8 + L2-normalize fused in one GEMM epilogue (whole row fits one tile).
    return fused_gemm(x, p["w"], p["scale"], p["shift"], relu=False,
                      l2_normalize=True, out_dtype=jnp.float32)


def alexnet_c_forward(params, x_a, x_b, layer=8):
    feat_a = alexnet_half_forward(params["c_a"], x_a, layer)
    feat_b = alexnet_half_forward(params["c_b"], x_b, layer)
    return feat_a, feat_b


# ---------------------------------------------------------------------------
if __name__ == "__main__":
    key = jax.random.PRNGKey(0)
    kpa, kpb, kxa, kxb, kcx, kcw = jax.random.split(key, 6)

    # Small numerical self-check of the fused GEMM on an unaligned (M,K,N)
    # shape (the conv4 configuration): bf16 MXU vs. a jnp reference.
    xs = jax.random.normal(kcx, (338, 1728), jnp.float32)
    ws = jax.random.normal(kcw, (1728, 192), jnp.float32) / np.sqrt(1728.0)
    sc = jnp.full((1, 192), 1.1, jnp.float32)
    sh = jnp.full((1, 192), 0.2, jnp.float32)
    got = fused_gemm(xs, ws.astype(jnp.bfloat16), sc, sh, relu=True,
                     out_dtype=jnp.float32)
    want = jnp.maximum(
        jnp.dot(xs.astype(jnp.bfloat16).astype(jnp.float32),
                ws.astype(jnp.bfloat16).astype(jnp.float32)) * sc + sh, 0.0)
    err = float(jnp.max(jnp.abs(got - want)))
    assert err < 5e-2, f"fused_gemm mismatch: max abs err {err}"

    params = {
        "c_a": init_alexnet_half(kpa, in_channel=3, feat_dim=128),
        "c_b": init_alexnet_half(kpb, in_channel=3, feat_dim=128),
    }

    # small but conv-compatible shapes: batch=2, channels=3, spatial=128
    x_a = jax.random.normal(kxa, (2, 3, 128, 128), jnp.float32)
    x_b = jax.random.normal(kxb, (2, 3, 128, 128), jnp.float32)

    fwd = jax.jit(functools.partial(alexnet_c_forward, layer=8))
    feat_a, feat_b = fwd(params, x_a, x_b)
    jax.block_until_ready((feat_a, feat_b))

    assert feat_a.shape == (2, 128) and feat_b.shape == (2, 128)
    assert bool(jnp.all(jnp.isfinite(feat_a))) and bool(jnp.all(jnp.isfinite(feat_b)))
    # fc8 output rows must be L2-normalized (fused epilogue)
    assert bool(jnp.all(jnp.abs(jnp.sum(feat_a * feat_a, axis=1) - 1.0) < 1e-2))
    assert bool(jnp.all(jnp.abs(jnp.sum(feat_b * feat_b, axis=1) - 1.0) < 1e-2))
    print("KERNEL_OK")
</pallas_src>

<mosaic_0001>
module attributes {stable_mosaic.version = 11 : i64} {
  func.func @_gemm_bn_act_kernel(%arg0: i32, %arg1: i32, %arg2: memref<338x1728xbf16, #tpu.memory_space<vmem>>, %arg3: memref<1728x192xbf16, #tpu.memory_space<vmem>>, %arg4: memref<1x192xf32, #tpu.memory_space<vmem>>, %arg5: memref<1x192xf32, #tpu.memory_space<vmem>>, %arg6: memref<338x192xf32, #tpu.memory_space<vmem>>) attributes {dimension_semantics = [#tpu.dimension_semantics<parallel>, #tpu.dimension_semantics<parallel>], iteration_bounds = array<i64: 1, 1>, scalar_prefetch = 0 : i64, scratch_operands = 0 : i64, tpu.core_type = #tpu.core_type<tc>, window_params = [{transform_indices = @transform_0, window_bounds = array<i64: 338, 1728>}, {transform_indices = @transform_1, window_bounds = array<i64: 1728, 192>}, {transform_indices = @transform_2, window_bounds = array<i64: 1, 192>}, {transform_indices = @transform_3, window_bounds = array<i64: 1, 192>}, {transform_indices = @transform_4, window_bounds = array<i64: 338, 192>}]} {
    %c0 = arith.constant 0 : index
    %c0_0 = arith.constant 0 : index
    %0 = vector.load %arg2[%c0, %c0_0] : memref<338x1728xbf16, #tpu.memory_space<vmem>>, vector<338x1728xbf16>
    %c0_1 = arith.constant 0 : index
    %c0_2 = arith.constant 0 : index
    %1 = vector.load %arg3[%c0_1, %c0_2] : memref<1728x192xbf16, #tpu.memory_space<vmem>>, vector<1728x192xbf16>
    %cst = arith.constant dense<0.000000e+00> : vector<338x192xf32>
    %2 = tpu.matmul %0, %1, %cst {dimension_numbers = #tpu.dot_dimension_numbers<[1], [0], [0], [1], [0, 0, 1, 1], [], []>} : vector<338x1728xbf16>, vector<1728x192xbf16>, vector<338x192xf32> -> vector<338x192xf32>
    %c0_3 = arith.constant 0 : index
    %c0_4 = arith.constant 0 : index
    %3 = vector.load %arg4[%c0_3, %c0_4] : memref<1x192xf32, #tpu.memory_space<vmem>>, vector<1x192xf32>
    %4 = vector.broadcast %3 : vector<1x192xf32> to vector<338x192xf32>
    %5 = arith.mulf %2, %4 : vector<338x192xf32>
    %c0_5 = arith.constant 0 : index
    %c0_6 = arith.constant 0 : index
    %6 = vector.load %arg5[%c0_5, %c0_6] : memref<1x192xf32, #tpu.memory_space<vmem>>, vector<1x192xf32>
    %7 = vector.broadcast %6 : vector<1x192xf32> to vector<338x192xf32>
    %8 = arith.addf %5, %7 : vector<338x192xf32>
    %cst_7 = arith.constant 0.000000e+00 : f32
    %9 = vector.broadcast %cst_7 : f32 to vector<338x192xf32>
    %10 = arith.maximumf %8, %9 : vector<338x192xf32>
    %c0_8 = arith.constant 0 : index
    %c0_9 = arith.constant 0 : index
    %11 = vector.load %arg6[%c0_8, %c0_9] : memref<338x192xf32, #tpu.memory_space<vmem>>, vector<338x192xf32>
    tpu.vector_store %arg6[%c0_8, %c0_9], %10 {strides = array<i32>} : memref<338x192xf32, #tpu.memory_space<vmem>>, vector<338x192xf32>,
    return
  }
  func.func @transform_0(%arg0: i32, %arg1: i32) -> (i32, i32) {
    %c0_i32 = arith.constant 0 : i32
    %c0_i32_0 = arith.constant 0 : i32
    return %arg0, %c0_i32 : i32, i32
  }
  func.func @transform_1(%arg0: i32, %arg1: i32) -> (i32, i32) {
    %c0_i32 = arith.constant 0 : i32
    %c0_i32_0 = arith.constant 0 : i32
    return %c0_i32, %arg1 : i32, i32
  }
  func.func @transform_2(%arg0: i32, %arg1: i32) -> (i32, i32) {
    %c0_i32 = arith.constant 0 : i32
    %c0_i32_0 = arith.constant 0 : i32
    return %c0_i32, %arg1 : i32, i32
  }
  func.func @transform_3(%arg0: i32, %arg1: i32) -> (i32, i32) {
    %c0_i32 = arith.constant 0 : i32
    %c0_i32_0 = arith.constant 0 : i32
    return %c0_i32, %arg1 : i32, i32
  }
  func.func @transform_4(%arg0: i32, %arg1: i32) -> (i32, i32) {
    %c0_i32 = arith.constant 0 : i32
    return %arg0, %arg1 : i32, i32
  }
}

</mosaic_0001>

<bundles_post_ra>
// kernel: tpu_custom_call.1
= control target key start
LH: loop header
LB: loop body
LE: loop exit
PB: predicated region body
PF: predicated region fallthrough
CT: control target
= control target key end

     0   :  { %vm3112_vm0 = vcmask 523264   ;;  %vm5303_vm1 = vcmask 517120   ;;  %s9524_s1 = inlined_call_operand.vmem [shape: bf16[1728,192], index: 1, kind: input, shape index: {}]   ;;  %s9525_s0 = inlined_call_operand.vmem [shape: bf16[338,1728], index: 0, kind: input, shape index: {}]   ;;  %s9526_s2 = inlined_call_operand.vmem [shape: f32[1,192], index: 2, kind: input, shape index: {}]   ;;  %s9527_s3 = inlined_call_operand.vmem [shape: f32[1,192], index: 3, kind: input, shape index: {}]   ;;  %s9528_s4 = inlined_call_operand.vmem [shape: f32[338,192], index: 4, kind: output, shape index: {}]  }
   0x1   :  { %v5887_v0 = vld [vmem:[%s9524_s1 + $0x74] ss:$8 sps:$4 sm:$0xff]   ;;  %v5889_v1 = vld [vmem:[%s9524_s1 + $0x70] ss:$8 sps:$4 sm:$0xff]   ;;  %v5890_v2 = vld [vmem:[%s9524_s1 + $0x64] ss:$8 sps:$4 sm:$0xff]  }
   0x2   :  { %3179 = vmatprep.subr.bf16.mxu0 %v5887_v0  ;;  %5855 = vmatprep.subr.bf16.mxu1 %v5887_v0  ;;  %v5892_v3 = vld [vmem:[%s9524_s1 + $0x60] ss:$8 sps:$4 sm:$0xff]   ;;  %v5893_v4 = vld [vmem:[%s9524_s1 + $0x54] ss:$8 sps:$4 sm:$0xff]   ;;  %v5895_v5 = vld [vmem:[%s9524_s1 + $0x50] ss:$8 sps:$4 sm:$0xff]  }
   0x3   :  { %3180 = vmatpush1.bf16.msra.mxu0 %v5889_v1  ;;  %5871 = vmatpush1.bf16.msra.mxu1 %v5889_v1  ;;  %v5896_v6 = vld [vmem:[%s9524_s1 + $0x44] ss:$8 sps:$4 sm:$0xff]   ;;  %v5898_v7 = vld [vmem:[%s9524_s1 + $0x40] ss:$8 sps:$4 sm:$0xff]   ;;  %v5899_v8 = vld [vmem:[%s9524_s1 + $0x34] ss:$8 sps:$4 sm:$0xff]  }
   0x4   :  { %3181 = vmatprep.subr.bf16.mxu0 %v5890_v2  ;;  %5856 = vmatprep.subr.bf16.mxu1 %v5890_v2  ;;  %v5901_v9 = vld [vmem:[%s9524_s1 + $0x30] ss:$8 sps:$4 sm:$0xff]   ;;  %v5902_v10 = vld [vmem:[%s9524_s1 + $0x24] ss:$8 sps:$4 sm:$0xff]   ;;  %v5904_v11 = vld [vmem:[%s9524_s1 + $0x20] ss:$8 sps:$4 sm:$0xff]  }
   0x5   :  { %v5905_v12 = vld [vmem:[%s9524_s1 + $0x14] ss:$8 sps:$4 sm:$0xff]   ;;  %v5907_v14 = vld [vmem:[%s9524_s1 + $0x10] ss:$8 sps:$4 sm:$0xff]   ;;  %v5908_v16 = vld [vmem:[%s9524_s1 + $0x4] ss:$8 sps:$4 sm:$0xff]  }
   0x6   :  { %v5937_v13 = vld [vmem:[%s9525_s0 + $0x4] ss:$56 sps:$4 sm:$0xff]   ;;  %v5940_v15 = vld [vmem:[%s9525_s0 + $0x4d4] ss:$56 sps:$4 sm:$0xff]   ;;  %v5910_v17 = vld [vmem:[%s9524_s1] ss:$8 sps:$4 sm:$0xff]  }
   0x7   :  { %3182 = vmatpush1.bf16.msra.mxu0 %v5892_v3  ;;  %5872 = vmatpush1.bf16.msra.mxu1 %v5892_v3  ;;  %v5911_v18 = vld [vmem:[%s9524_s1 + $0xf4] ss:$8 sps:$4 sm:$0xff]   ;;  %v5913_v19 = vld [vmem:[%s9524_s1 + $0xf0] ss:$8 sps:$4 sm:$0xff]   ;;  %v5914_v20 = vld [vmem:[%s9524_s1 + $0xe4] ss:$8 sps:$4 sm:$0xff]  }
   0x8   :  { %3183 = vmatprep.subr.bf16.mxu0 %v5893_v4  ;;  %5857 = vmatprep.subr.bf16.mxu1 %v5893_v4  ;;  %v5916_v21 = vld [vmem:[%s9524_s1 + $0xe0] ss:$8 sps:$4 sm:$0xff]   ;;  %v5917_v22 = vld [vmem:[%s9524_s1 + $0xd4] ss:$8 sps:$4 sm:$0xff]   ;;  %v5919_v23 = vld [vmem:[%s9524_s1 + $0xd0] ss:$8 sps:$4 sm:$0xff]  }
   0x9   :  { %3211 = vmatprep.mubr.bf16.mxu0 %v5937_v13  ;;  %3321 = vmatprep.mubr.bf16.mxu1 %v5940_v15  ;;  %v5920_v24 = vld [vmem:[%s9524_s1 + $0xc4] ss:$8 sps:$4 sm:$0xff]   ;;  %v5922_v25 = vld [vmem:[%s9524_s1 + $0xc0] ss:$8 sps:$4 sm:$0xff]   ;;  %v5923_v26 = vld [vmem:[%s9524_s1 + $0xb4] ss:$8 sps:$4 sm:$0xff]  }
   0xa   :  { %v5925_v27 = vld [vmem:[%s9524_s1 + $0xb0] ss:$8 sps:$4 sm:$0xff]   ;;  %v5926_v28 = vld [vmem:[%s9524_s1 + $0xa4] ss:$8 sps:$4 sm:$0xff]   ;;  %v5928_v29 = vld [vmem:[%s9524_s1 + $0xa0] ss:$8 sps:$4 sm:$0xff]  }
   0xb   :  { %3184 = vmatpush1.bf16.msra.mxu0 %v5895_v5  ;;  %5873 = vmatpush1.bf16.msra.mxu1 %v5895_v5  ;;  %v5929_v30 = vld [vmem:[%s9524_s1 + $0x94] ss:$8 sps:$4 sm:$0xff]   ;;  %v5931_v31 = vld [vmem:[%s9524_s1 + $0x90] ss:$8 sps:$4 sm:$0xff]   ;;  %v5932_v32 = vld [vmem:[%s9524_s1 + $0x84] ss:$8 sps:$4 sm:$0xff]  }
   0xc   :  { %3185 = vmatprep.subr.bf16.mxu0 %v5896_v6  ;;  %5858 = vmatprep.subr.bf16.mxu1 %v5896_v6  ;;  %v5934_v33 = vld [vmem:[%s9524_s1 + $0x80] ss:$8 sps:$4 sm:$0xff]   ;;  %v5943_v34 = vld [vmem:[%s9524_s1 + $0x174] ss:$8 sps:$4 sm:$0xff]   ;;  %v5941_v38 = vld [vmem:[%s9524_s1 + $0x170] ss:$8 sps:$4 sm:$0xff]  }
   0xd   :  { %v5935_v35 = vld [vmem:[%s9525_s0] ss:$56 sps:$4 sm:$0xff]   ;;  %v5946_v36 = vld [vmem:[%s9524_s1 + $0x274] ss:$8 sps:$4 sm:$0xff]   ;;  %v5938_v37 = vld [vmem:[%s9525_s0 + $0x4d0] ss:$56 sps:$4 sm:$0xff]  }
   0xe   :  { %v5944_v39 = vld [vmem:[%s9524_s1 + $0x270] ss:$8 sps:$4 sm:$0xff]   ;;  %v5949_v40 = vld [vmem:[%s9524_s1 + $0x164] ss:$8 sps:$4 sm:$0xff]   ;;  %v5947_v44 = vld [vmem:[%s9524_s1 + $0x160] ss:$8 sps:$4 sm:$0xff]  }
   0xf   :  { %3186 = vmatpush1.bf16.msra.mxu0 %v5898_v7  ;;  %5874 = vmatpush1.bf16.msra.mxu1 %v5898_v7  ;;  %v5950_v41 = vld [vmem:[%s9525_s0 + $0x74] ss:$56 sps:$4 sm:$0xff]   ;;  %v5952_v42 = vld [vmem:[%s9525_s0 + $0x544] ss:$56 sps:$4 sm:$0xff]   ;;  %v5956_v45 = vld [vmem:[%s9524_s1 + $0x260] ss:$8 sps:$4 sm:$0xff]  }
  0x10   :  { %3187 = vmatprep.subr.bf16.mxu0 %v5899_v8  ;;  %5859 = vmatprep.subr.bf16.mxu1 %v5899_v8  ;;  %v5958_v43 = vld [vmem:[%s9524_s1 + $0x264] ss:$8 sps:$4 sm:$0xff]   ;;  %v5961_v46 = vld [vmem:[%s9524_s1 + $0x154] ss:$8 sps:$4 sm:$0xff]   ;;  %v5954_v48 = vld [vmem:[%s9525_s0 + $0x70] ss:$56 sps:$4 sm:$0xff]  }
  0x11   :  { %v5964_v47 = vld [vmem:[%s9524_s1 + $0x254] ss:$8 sps:$4 sm:$0xff]   ;;  %v5955_v49 = vld [vmem:[%s9525_s0 + $0x540] ss:$56 sps:$4 sm:$0xff]   ;;  %v5973_v54 = vld [vmem:[%s9524_s1 + $0x144] ss:$8 sps:$4 sm:$0xff]  }
  0x12   :  { %v5959_v50 = vld [vmem:[%s9524_s1 + $0x150] ss:$8 sps:$4 sm:$0xff]   ;;  %v5965_v52 = vld [vmem:[%s9525_s0 + $0xe4] ss:$56 sps:$4 sm:$0xff]   ;;  %v5967_v53 = vld [vmem:[%s9525_s0 + $0x5b4] ss:$56 sps:$4 sm:$0xff]  }
  0x13   :  { %3188 = vmatpush1.bf16.msra.mxu0 %v5901_v9  ;;  %5875 = vmatpush1.bf16.msra.mxu1 %v5901_v9  ;;  %v5962_v51 = vld [vmem:[%s9524_s1 + $0x250] ss:$8 sps:$4 sm:$0xff]   ;;  %v5976_v55 = vld [vmem:[%s9524_s1 + $0x244] ss:$8 sps:$4 sm:$0xff]   ;;  %v5971_v56 = vld [vmem:[%s9524_s1 + $0x140] ss:$8 sps:$4 sm:$0xff]  }
  0x14   :  { %3189 = vmatprep.subr.bf16.mxu0 %v5902_v10  ;;  %5860 = vmatprep.subr.bf16.mxu1 %v5902_v10  ;;  %v5974_v57 = vld [vmem:[%s9524_s1 + $0x240] ss:$8 sps:$4 sm:$0xff]   ;;  %v5979_v59 = vld [vmem:[%s9524_s1 + $0x134] ss:$8 sps:$4 sm:$0xff]   ;;  %v5977_v62 = vld [vmem:[%s9524_s1 + $0x130] ss:$8 sps:$4 sm:$0xff]  }
  0x15   :  { %v5969_v58 = vld [vmem:[%s9525_s0 + $0xe0] ss:$56 sps:$4 sm:$0xff]   ;;  %v5988_v60 = vld [vmem:[%s9524_s1 + $0x234] ss:$8 sps:$4 sm:$0xff]   ;;  %v5970_v61 = vld [vmem:[%s9525_s0 + $0x5b0] ss:$56 sps:$4 sm:$0xff]  }
  0x16   :  { %v5980_v63 = vld [vmem:[%s9525_s0 + $0x154] ss:$56 sps:$4 sm:$0xff]   ;;  %v5982_v0 = vld [vmem:[%s9525_s0 + $0x624] ss:$56 sps:$4 sm:$0xff]   ;;  %v5986_v1 = vld [vmem:[%s9524_s1 + $0x230] ss:$8 sps:$4 sm:$0xff]  }
  0x17   :  { %3190 = vmatpush1.bf16.msra.mxu0 %v5904_v11  ;;  %5876 = vmatpush1.bf16.msra.mxu1 %v5904_v11  ;;  %v5991_v2 = vld [vmem:[%s9524_s1 + $0x124] ss:$8 sps:$4 sm:$0xff]   ;;  %v5989_v4 = vld [vmem:[%s9524_s1 + $0x120] ss:$8 sps:$4 sm:$0xff]   ;;  %v6003_v7 = vld [vmem:[%s9524_s1 + $0x114] ss:$8 sps:$4 sm:$0xff]  }
  0x18   :  { %3191 = vmatprep.subr.bf16.mxu0 %v5905_v12  ;;  %5861 = vmatprep.subr.bf16.mxu1 %v5905_v12  ;;  %v5994_v3 = vld [vmem:[%s9524_s1 + $0x224] ss:$8 sps:$4 sm:$0xff]   ;;  %v5992_v5 = vld [vmem:[%s9524_s1 + $0x220] ss:$8 sps:$4 sm:$0xff]   ;;  %v6006_v8 = vld [vmem:[%s9524_s1 + $0x214] ss:$8 sps:$4 sm:$0xff]  }
  0x19   :  { %v5984_v6 = vld [vmem:[%s9525_s0 + $0x150] ss:$56 sps:$4 sm:$0xff]   ;;  %v5985_v9 = vld [vmem:[%s9525_s0 + $0x620] ss:$56 sps:$4 sm:$0xff]   ;;  %v5995_v10 = vld [vmem:[%s9525_s0 + $0x1c4] ss:$56 sps:$4 sm:$0xff]  }
  0x1a   :  { %v5997_v11 = vld [vmem:[%s9525_s0 + $0x694] ss:$56 sps:$4 sm:$0xff]   ;;  %v6001_v12 = vld [vmem:[%s9524_s1 + $0x110] ss:$8 sps:$4 sm:$0xff]  }
  0x1b   :  { %3192 = vmatpush1.bf16.msra.mxu0 %v5907_v14  ;;  %5877 = vmatpush1.bf16.msra.mxu1 %v5907_v14  ;;  %v6004_v13 = vld [vmem:[%s9524_s1 + $0x210] ss:$8 sps:$4 sm:$0xff]   ;;  %v6013_v14 = vld [vmem:[%s9524_s1 + $0x104] ss:$8 sps:$4 sm:$0xff]  }
  0x1c   :  { %3193 = vmatprep.subr.bf16.mxu0 %v5908_v16  ;;  %5862 = vmatprep.subr.bf16.mxu1 %v5908_v16  ;;  %v6018_v15 = vld [vmem:[%s9524_s1 + $0x204] ss:$8 sps:$4 sm:$0xff]   ;;  %v6011_v16 = vld [vmem:[%s9524_s1 + $0x100] ss:$8 sps:$4 sm:$0xff]  }
  0x1f   :  { %3194 = vmatpush1.bf16.msra.mxu0 %v5910_v17  ;;  %5878 = vmatpush1.bf16.msra.mxu1 %v5910_v17  ;;  %v5999_v17 = vld [vmem:[%s9525_s0 + $0x1c0] ss:$56 sps:$4 sm:$0xff]  }
  0x20   :  { %3195 = vmatprep.subr.bf16.mxu0 %v5911_v18  ;;  %5863 = vmatprep.subr.bf16.mxu1 %v5911_v18  ;;  %v6000_v18 = vld [vmem:[%s9525_s0 + $0x690] ss:$56 sps:$4 sm:$0xff]  }
  0x23   :  { %3196 = vmatpush2.bf16.msra.mxu0 %v5913_v19  ;;  %5879 = vmatpush2.bf16.msra.mxu1 %v5913_v19  ;;  %v6016_v19 = vld [vmem:[%s9524_s1 + $0x200] ss:$8 sps:$4 sm:$0xff]  }
  0x24   :  { %3197 = vmatprep.subr.bf16.mxu0 %v5914_v20  ;;  %5864 = vmatprep.subr.bf16.mxu1 %v5914_v20  ;;  %v6021_v20 = vld [vmem:[%s9524_s1 + $0x1f4] ss:$8 sps:$4 sm:$0xff]  }
  0x27   :  { %3198 = vmatpush2.bf16.msra.mxu0 %v5916_v21  ;;  %5880 = vmatpush2.bf16.msra.mxu1 %v5916_v21  ;;  %v6024_v21 = vld [vmem:[%s9524_s1 + $0x2f4] ss:$8 sps:$4 sm:$0xff]  }
  0x28   :  { %3199 = vmatprep.subr.bf16.mxu0 %v5917_v22  ;;  %5865 = vmatprep.subr.bf16.mxu1 %v5917_v22  ;;  %v6007_v22 = vld [vmem:[%s9525_s0 + $0x234] ss:$56 sps:$4 sm:$0xff]  }
  0x2b   :  { %3200 = vmatpush2.bf16.msra.mxu0 %v5919_v23  ;;  %5881 = vmatpush2.bf16.msra.mxu1 %v5919_v23  ;;  %v6009_v23 = vld [vmem:[%s9525_s0 + $0x704] ss:$56 sps:$4 sm:$0xff]  }
  0x2c   :  { %3201 = vmatprep.subr.bf16.mxu0 %v5920_v24  ;;  %5866 = vmatprep.subr.bf16.mxu1 %v5920_v24  ;;  %v6019_v24 = vld [vmem:[%s9524_s1 + $0x1f0] ss:$8 sps:$4 sm:$0xff]  }
  0x2f   :  { %3202 = vmatpush2.bf16.msra.mxu0 %v5922_v25  ;;  %5882 = vmatpush2.bf16.msra.mxu1 %v5922_v25  ;;  %v6022_v25 = vld [vmem:[%s9524_s1 + $0x2f0] ss:$8 sps:$4 sm:$0xff]  }
  0x30   :  { %3203 = vmatprep.subr.bf16.mxu0 %v5923_v26  ;;  %5867 = vmatprep.subr.bf16.mxu1 %v5923_v26  ;;  %v6033_v26 = vld [vmem:[%s9524_s1 + $0x1e4] ss:$8 sps:$4 sm:$0xff]  }
  0x33   :  { %3204 = vmatpush2.bf16.msra.mxu0 %v5925_v27  ;;  %5883 = vmatpush2.bf16.msra.mxu1 %v5925_v27  ;;  %v6036_v27 = vld [vmem:[%s9524_s1 + $0x2e4] ss:$8 sps:$4 sm:$0xff]  }
  0x34   :  { %3205 = vmatprep.subr.bf16.mxu0 %v5926_v28  ;;  %5868 = vmatprep.subr.bf16.mxu1 %v5926_v28  ;;  %v6031_v28 = vld [vmem:[%s9524_s1 + $0x1e0] ss:$8 sps:$4 sm:$0xff]  }
  0x37   :  { %3206 = vmatpush2.bf16.msra.mxu0 %v5928_v29  ;;  %5884 = vmatpush2.bf16.msra.mxu1 %v5928_v29  ;;  %v6014_v29 = vld [vmem:[%s9525_s0 + $0x230] ss:$56 sps:$4 sm:$0xff]  }
  0x38   :  { %3207 = vmatprep.subr.bf16.mxu0 %v5929_v30  ;;  %5869 = vmatprep.subr.bf16.mxu1 %v5929_v30  ;;  %v6015_v30 = vld [vmem:[%s9525_s0 + $0x700] ss:$56 sps:$4 sm:$0xff]  }
  0x3b   :  { %3208 = vmatpush2.bf16.msra.mxu0 %v5931_v31  ;;  %5885 = vmatpush2.bf16.msra.mxu1 %v5931_v31  ;;  %v6034_v31 = vld [vmem:[%s9524_s1 + $0x2e0] ss:$8 sps:$4 sm:$0xff]  }
  0x3c   :  { %3209 = vmatprep.subr.bf16.mxu0 %v5932_v32  ;;  %5870 = vmatprep.subr.bf16.mxu1 %v5932_v32  ;;  %v6043_v32 = vld [vmem:[%s9524_s1 + $0x1d4] ss:$8 sps:$4 sm:$0xff]  }
  0x3f   :  { %3210 = vmatpush2.bf16.msra.mxu0 %v5934_v33  ;;  %5886 = vmatpush2.bf16.msra.mxu1 %v5934_v33  ;;  %v6048_v33 = vld [vmem:[%s9524_s1 + $0x2d4] ss:$8 sps:$4 sm:$0xff]  }
  0x40   :  { %3430 = vmatprep.subr.bf16.mxu1 %v5943_v34  ;;  %3681 = vmatprep.subr.bf16.mxu0 %v5946_v36  ;;  %v6025_v34 = vld [vmem:[%s9525_s0 + $0x2a4] ss:$56 sps:$4 sm:$0xff]   ;;  %v6041_v36 = vld [vmem:[%s9524_s1 + $0x1d0] ss:$8 sps:$4 sm:$0xff]  }
  0x42   :  { %3212 = vmatmul.mubr.bf16.vlgmr.msra.gmra.mxu0 %v5935_v35  ;;  %3322 = vmatmul.mubr.bf16.vlgmr.msra.gmra.mxu1 %v5938_v37  ;;  %v6027_v35 = vld [vmem:[%s9525_s0 + $0x774] ss:$56 sps:$4 sm:$0xff]   ;;  %v6046_v37 = vld [vmem:[%s9524_s1 + $0x2d0] ss:$8 sps:$4 sm:$0xff]  }
  0x43   :  { %3431 = vmatpush1.bf16.msra.mxu1 %v5941_v38  ;;  %3682 = vmatpush1.bf16.msra.mxu0 %v5944_v39  ;;  %v6051_v38 = vld [vmem:[%s9524_s1 + $0x1c4] ss:$8 sps:$4 sm:$0xff]  }
  0x44   :  { %3432 = vmatprep.subr.bf16.mxu1 %v5949_v40  ;;  %3221 = vmatprep.mubr.bf16.mxu0 %v5950_v41  ;;  %v6058_v39 = vld [vmem:[%s9524_s1 + $0x2c4] ss:$8 sps:$4 sm:$0xff]   ;;  %v6049_v40 = vld [vmem:[%s9524_s1 + $0x1c0] ss:$8 sps:$4 sm:$0xff]  }
  0x45   :  { %3331 = vmatprep.mubr.bf16.mxu1 %v5952_v42  ;;  %3683 = vmatprep.subr.bf16.mxu0 %v5958_v43  ;;  %v6029_v41 = vld [vmem:[%s9525_s0 + $0x2a0] ss:$56 sps:$4 sm:$0xff]   ;;  %v6030_v42 = vld [vmem:[%s9525_s0 + $0x770] ss:$56 sps:$4 sm:$0xff]  }
  0x46   :  { %v6056_v43 = vld [vmem:[%s9524_s1 + $0x2c0] ss:$8 sps:$4 sm:$0xff]  }
  0x47   :  { %3433 = vmatpush1.bf16.msra.mxu1 %v5947_v44  ;;  %3684 = vmatpush1.bf16.msra.mxu0 %v5956_v45  ;;  %v6063_v44 = vld [vmem:[%s9524_s1 + $0x1b4] ss:$8 sps:$4 sm:$0xff]  }
  0x48   :  { %3434 = vmatprep.subr.bf16.mxu1 %v5961_v46  ;;  %3685 = vmatprep.subr.bf16.mxu0 %v5964_v47  ;;  %v6066_v45 = vld [vmem:[%s9524_s1 + $0x2b4] ss:$8 sps:$4 sm:$0xff]  }
  0x49   :  { %v6037_v46 = vld [vmem:[%s9525_s0 + $0x314] ss:$56 sps:$4 sm:$0xff]   ;;  %v6039_v47 = vld [vmem:[%s9525_s0 + $0x7e4] ss:$56 sps:$4 sm:$0xff]  }
  0x4a   :  { %3222 = vmatmul.mubr.bf16.gmra.mxu0 %v5954_v48  ;;  %3332 = vmatmul.mubr.bf16.gmra.mxu1 %v5955_v49  ;;  %v6061_v48 = vld [vmem:[%s9524_s1 + $0x1b0] ss:$8 sps:$4 sm:$0xff]  }
  0x4b   :  { %3435 = vmatpush1.bf16.msra.mxu1 %v5959_v50  ;;  %3686 = vmatpush1.bf16.msra.mxu0 %v5962_v51  ;;  %v6064_v49 = vld [vmem:[%s9524_s1 + $0x2b0] ss:$8 sps:$4 sm:$0xff]   ;;  %v6075_v50 = vld [vmem:[%s9524_s1 + $0x1a4] ss:$8 sps:$4 sm:$0xff]  }
  0x4c   :  { %3231 = vmatprep.mubr.bf16.mxu0 %v5965_v52  ;;  %3341 = vmatprep.mubr.bf16.mxu1 %v5967_v53  ;;  %v6078_v51 = vld [vmem:[%s9524_s1 + $0x2a4] ss:$8 sps:$4 sm:$0xff]   ;;  %v6073_v52 = vld [vmem:[%s9524_s1 + $0x1a0] ss:$8 sps:$4 sm:$0xff]  }
  0x4d   :  { %3436 = vmatprep.subr.bf16.mxu1 %v5973_v54  ;;  %3687 = vmatprep.subr.bf16.mxu0 %v5976_v55  ;;  %v6076_v53 = vld [vmem:[%s9524_s1 + $0x2a0] ss:$8 sps:$4 sm:$0xff]   ;;  %v6081_v55 = vld [vmem:[%s9524_s1 + $0x194] ss:$8 sps:$4 sm:$0xff]  }
  0x4e   :  { %v6044_v54 = vld [vmem:[%s9525_s0 + $0x310] ss:$56 sps:$4 sm:$0xff]  }
  0x4f   :  { %3437 = vmatpush1.bf16.msra.mxu1 %v5971_v56  ;;  %3688 = vmatpush1.bf16.msra.mxu0 %v5974_v57  ;;  %v6087_v56 = vld [vmem:[%s9524_s1 + $0x294] ss:$8 sps:$4 sm:$0xff]   ;;  %v6045_v57 = vld [vmem:[%s9525_s0 + $0x7e0] ss:$56 sps:$4 sm:$0xff]  }
  0x50   :  { %3438 = vmatprep.subr.bf16.mxu1 %v5979_v59  ;;  %3689 = vmatprep.subr.bf16.mxu0 %v5988_v60  ;;  %v6054_v59 = vld [vmem:[%s9525_s0 + $0x854] ss:$56 sps:$4 sm:$0xff]   ;;  %v6079_v60 = vld [vmem:[%s9524_s1 + $0x190] ss:$8 sps:$4 sm:$0xff]  }
  0x52   :  { %3232 = vmatmul.mubr.bf16.gmra.mxu0 %v5969_v58  ;;  %3342 = vmatmul.mubr.bf16.gmra.mxu1 %v5970_v61  ;;  %v6052_v58 = vld [vmem:[%s9525_s0 + $0x384] ss:$56 sps:$4 sm:$0xff]   ;;  %v6085_v61 = vld [vmem:[%s9524_s1 + $0x290] ss:$8 sps:$4 sm:$0xff]  }
  0x53   :  { %3241 = vmatprep.mubr.bf16.mxu0 %v5980_v63  ;;  %3351 = vmatprep.mubr.bf16.mxu1 %v5982_v0  ;;  %v6095_v63 = vld [vmem:[%s9524_s1 + $0x284] ss:$8 sps:$4 sm:$0xff]   ;;  %v6090_v0 = vld [vmem:[%s9524_s1 + $0x180] ss:$8 sps:$4 sm:$0xff]  }
  0x54   :  { %3439 = vmatpush1.bf16.msra.mxu1 %v5977_v62  ;;  %3690 = vmatpush1.bf16.msra.mxu0 %v5986_v1  ;;  %v6092_v62 = vld [vmem:[%s9524_s1 + $0x184] ss:$8 sps:$4 sm:$0xff]   ;;  %v6093_v1 = vld [vmem:[%s9524_s1 + $0x280] ss:$8 sps:$4 sm:$0xff]  }
  0x55   :  { %3440 = vmatprep.subr.bf16.mxu1 %v5991_v2  ;;  %3691 = vmatprep.subr.bf16.mxu0 %v5994_v3  ;;  %v6059_v2 = vld [vmem:[%s9525_s0 + $0x380] ss:$56 sps:$4 sm:$0xff]   ;;  %v6104_v3 = vld [vmem:[%s9524_s1 + $0x374] ss:$8 sps:$4 sm:$0xff]  }
  0x58   :  { %3441 = vmatpush1.bf16.msra.mxu1 %v5989_v4  ;;  %3692 = vmatpush1.bf16.msra.mxu0 %v5992_v5  ;;  %v6107_v4 = vld [vmem:[%s9524_s1 + $0x474] ss:$8 sps:$4 sm:$0xff]   ;;  %v6060_v5 = vld [vmem:[%s9525_s0 + $0x850] ss:$56 sps:$4 sm:$0xff]  }
  0x59   :  { %3442 = vmatprep.subr.bf16.mxu1 %v6003_v7  ;;  %3693 = vmatprep.subr.bf16.mxu0 %v6006_v8  ;;  %v6069_v7 = vld [vmem:[%s9525_s0 + $0x8c4] ss:$56 sps:$4 sm:$0xff]   ;;  %v312_v8 = vld [vmem:[%s9525_s0 + $0x930] sm:$0x11] }
  0x5a   :  { %3242 = vmatmul.mubr.bf16.gmra.mxu0 %v5984_v6  ;;  %3352 = vmatmul.mubr.bf16.gmra.mxu1 %v5985_v9  ;;  %v6067_v6 = vld [vmem:[%s9525_s0 + $0x3f4] ss:$56 sps:$4 sm:$0xff]   ;;  %v6071_v9 = vld [vmem:[%s9525_s0 + $0x3f0] ss:$56 sps:$4 sm:$0xff]  }
  0x5b   :  { %3251 = vmatprep.mubr.bf16.mxu0 %v5995_v10  ;;  %3361 = vmatprep.mubr.bf16.mxu1 %v5997_v11  ;;  %v6072_v10 = vld [vmem:[%s9525_s0 + $0x8c0] ss:$56 sps:$4 sm:$0xff]   ;;  %v6082_v11 = vld [vmem:[%s9525_s0 + $0x464] ss:$56 sps:$4 sm:$0xff]  }
  0x5c   :  { %3443 = vmatpush1.bf16.msra.mxu1 %v6001_v12  ;;  %3694 = vmatpush1.bf16.msra.mxu0 %v6004_v13  ;;  %v5604_v12 = vcombine.high %v312_v8, %v312_v8  ;;  %v6088_v13 = vld [vmem:[%s9525_s0 + $0x460] ss:$56 sps:$4 sm:$0xff]  }
  0x5d   :  { %3444 = vmatprep.subr.bf16.mxu1 %v6013_v14  ;;  %3695 = vmatprep.subr.bf16.mxu0 %v6018_v15  ;;  %v5603_v14 = vcombine.low %v312_v8, %v312_v8  ;;  %v6098_v15 = vld [vmem:[%s9525_s0 + $0xc] ss:$56 sps:$4 sm:$0xff]  }
  0x5e   :  { %v6233_v8 = vld [vmem:[%s9524_s1 + $0x4e4] ss:$8 sps:$4 sm:$0xff]  }
  0x60   :  { %3445 = vmatpush1.bf16.msra.mxu1 %v6011_v16  ;;  %3696 = vmatpush1.bf16.msra.mxu0 %v6016_v19  ;;  %v6101_v16 = vld [vmem:[%s9525_s0 + $0x14] ss:$56 sps:$4 sm:$0xff]   ;;  %v6102_v19 = vld [vmem:[%s9524_s1 + $0x370] ss:$8 sps:$4 sm:$0xff]  }
  0x61   :  { %3446 = vmatprep.subr.bf16.mxu1 %v6021_v20  ;;  %3697 = vmatprep.subr.bf16.mxu0 %v6024_v21  ;;  %v6105_v20 = vld [vmem:[%s9524_s1 + $0x470] ss:$8 sps:$4 sm:$0xff]   ;;  %v6108_v21 = vld [vmem:[%s9525_s0 + $0x7c] ss:$56 sps:$4 sm:$0xff]  }
  0x62   :  { %3252 = vmatmul.mubr.bf16.gmra.mxu0 %v5999_v17  ;;  %3362 = vmatmul.mubr.bf16.gmra.mxu1 %v6000_v18  ;;  %v6096_v17 = vld [vmem:[%s9525_s0 + $0x8] ss:$56 sps:$4 sm:$0xff]  }
  0x63   :  { %3261 = vmatprep.mubr.bf16.mxu0 %v6007_v22  ;;  %3371 = vmatprep.mubr.bf16.mxu1 %v6009_v23  ;;  %v6099_v18 = vld [vmem:[%s9525_s0 + $0x10] ss:$56 sps:$4 sm:$0xff]   ;;  %v6110_v22 = vld [vmem:[%s9525_s0 + $0x84] ss:$56 sps:$4 sm:$0xff]  }
  0x64   :  { %3447 = vmatpush2.bf16.msra.mxu1 %v6019_v24  ;;  %3698 = vmatpush2.bf16.msra.mxu0 %v6022_v25  ;;  %v6116_v23 = vld [vmem:[%s9524_s1 + $0x364] ss:$8 sps:$4 sm:$0xff]   ;;  %v6114_v25 = vld [vmem:[%s9524_s1 + $0x360] ss:$8 sps:$4 sm:$0xff]  }
  0x65   :  { %3448 = vmatprep.subr.bf16.mxu1 %v6033_v26  ;;  %3699 = vmatprep.subr.bf16.mxu0 %v6036_v27  ;;  %v6119_v24 = vld [vmem:[%s9524_s1 + $0x464] ss:$8 sps:$4 sm:$0xff]   ;;  %v6117_v26 = vld [vmem:[%s9524_s1 + $0x460] ss:$8 sps:$4 sm:$0xff]   ;;  %v6128_v27 = vld [vmem:[%s9524_s1 + $0x354] ss:$8 sps:$4 sm:$0xff]  }
  0x68   :  { %3449 = vmatpush2.bf16.msra.mxu1 %v6031_v28  ;;  %3700 = vmatpush2.bf16.msra.mxu0 %v6034_v31  ;;  %v6137_v28 = vld [vmem:[%s9524_s1 + $0x454] ss:$8 sps:$4 sm:$0xff]   ;;  %v6120_v31 = vld [vmem:[%s9525_s0 + $0xec] ss:$56 sps:$4 sm:$0xff]  }
  0x69   :  { %3450 = vmatprep.subr.bf16.mxu1 %v6043_v32  ;;  %3701 = vmatprep.subr.bf16.mxu0 %v6048_v33  ;;  %v6122_v32 = vld [vmem:[%s9525_s0 + $0xf4] ss:$56 sps:$4 sm:$0xff]   ;;  %v6126_v33 = vld [vmem:[%s9524_s1 + $0x350] ss:$8 sps:$4 sm:$0xff]  }
  0x6a   :  { %3262 = vmatmul.mubr.bf16.gmra.mxu0 %v6014_v29  ;;  %3372 = vmatmul.mubr.bf16.gmra.mxu1 %v6015_v30  ;;  %v6112_v29 = vld [vmem:[%s9525_s0 + $0x78] ss:$56 sps:$4 sm:$0xff]  }
  0x6b   :  { %3271 = vmatprep.mubr.bf16.mxu0 %v6025_v34  ;;  %3381 = vmatprep.mubr.bf16.mxu1 %v6027_v35  ;;  %v6113_v30 = vld [vmem:[%s9525_s0 + $0x80] ss:$56 sps:$4 sm:$0xff]   ;;  %v6146_v35 = vld [vmem:[%s9524_s1 + $0x344] ss:$8 sps:$4 sm:$0xff]  }
  0x6c   :  { %3451 = vmatpush2.bf16.msra.mxu1 %v6041_v36  ;;  %3702 = vmatpush2.bf16.msra.mxu0 %v6046_v37  ;;  %v6135_v34 = vld [vmem:[%s9524_s1 + $0x450] ss:$8 sps:$4 sm:$0xff]   ;;  %v6149_v36 = vld [vmem:[%s9524_s1 + $0x444] ss:$8 sps:$4 sm:$0xff]   ;;  %v6144_v37 = vld [vmem:[%s9524_s1 + $0x340] ss:$8 sps:$4 sm:$0xff]  }
  0x6d   :  { %3452 = vmatprep.subr.bf16.mxu1 %v6051_v38  ;;  %3703 = vmatprep.subr.bf16.mxu0 %v6058_v39  ;;  %v6124_v38 = vld [vmem:[%s9525_s0 + $0xe8] ss:$56 sps:$4 sm:$0xff]  }
  0x6e   :  { %v6125_v39 = vld [vmem:[%s9525_s0 + $0xf0] ss:$56 sps:$4 sm:$0xff]  }
  0x70   :  { %3453 = vmatpush2.bf16.msra.mxu1 %v6049_v40  ;;  %3704 = vmatpush2.bf16.msra.mxu0 %v6056_v43  ;;  %v6147_v40 = vld [vmem:[%s9524_s1 + $0x440] ss:$8 sps:$4 sm:$0xff]   ;;  %v6129_v43 = vld [vmem:[%s9525_s0 + $0x15c] ss:$56 sps:$4 sm:$0xff]  }
  0x71   :  { %3454 = vmatprep.subr.bf16.mxu1 %v6063_v44  ;;  %3705 = vmatprep.subr.bf16.mxu0 %v6066_v45  ;;  %v6131_v44 = vld [vmem:[%s9525_s0 + $0x164] ss:$56 sps:$4 sm:$0xff]   ;;  %v6156_v45 = vld [vmem:[%s9524_s1 + $0x330] ss:$8 sps:$4 sm:$0xff]  }
  0x72   :  { %3272 = vmatmul.mubr.bf16.gmra.mxu0 %v6029_v41  ;;  %3382 = vmatmul.mubr.bf16.gmra.mxu1 %v6030_v42  ;;  %v6158_v41 = vld [vmem:[%s9524_s1 + $0x334] ss:$8 sps:$4 sm:$0xff]  }
  0x73   :  { %3281 = vmatprep.mubr.bf16.mxu0 %v6037_v46  ;;  %3391 = vmatprep.mubr.bf16.mxu1 %v6039_v47  ;;  %v6161_v42 = vld [vmem:[%s9524_s1 + $0x434] ss:$8 sps:$4 sm:$0xff]   ;;  %v6159_v46 = vld [vmem:[%s9524_s1 + $0x430] ss:$8 sps:$4 sm:$0xff]   ;;  %v6174_v47 = vld [vmem:[%s9524_s1 + $0x324] ss:$8 sps:$4 sm:$0xff]  }
  0x74   :  { %3455 = vmatpush2.bf16.msra.mxu1 %v6061_v48  ;;  %3706 = vmatpush2.bf16.msra.mxu0 %v6064_v49  ;;  %v6179_v48 = vld [vmem:[%s9524_s1 + $0x424] ss:$8 sps:$4 sm:$0xff]   ;;  %v6172_v49 = vld [vmem:[%s9524_s1 + $0x320] ss:$8 sps:$4 sm:$0xff]  }
  0x75   :  { %3456 = vmatprep.subr.bf16.mxu1 %v6075_v50  ;;  %3707 = vmatprep.subr.bf16.mxu0 %v6078_v51  ;;  %v6133_v50 = vld [vmem:[%s9525_s0 + $0x158] ss:$56 sps:$4 sm:$0xff]  }
  0x76   :  { %v6134_v51 = vld [vmem:[%s9525_s0 + $0x160] ss:$56 sps:$4 sm:$0xff]  }
  0x78   :  { %3457 = vmatpush2.bf16.msra.mxu1 %v6073_v52  ;;  %3708 = vmatpush2.bf16.msra.mxu0 %v6076_v53  ;;  %v6177_v52 = vld [vmem:[%s9524_s1 + $0x420] ss:$8 sps:$4 sm:$0xff]   ;;  %v6188_v53 = vld [vmem:[%s9524_s1 + $0x314] ss:$8 sps:$4 sm:$0xff]  }
  0x79   :  { %3458 = vmatprep.subr.bf16.mxu1 %v6081_v55  ;;  %3709 = vmatprep.subr.bf16.mxu0 %v6087_v56  ;;  %v6138_v55 = vld [vmem:[%s9525_s0 + $0x1cc] ss:$56 sps:$4 sm:$0xff]  }
  0x7a   :  { %3282 = vmatmul.mubr.bf16.gmra.mxu0 %v6044_v54  ;;  %3392 = vmatmul.mubr.bf16.gmra.mxu1 %v6045_v57  ;;  %v6191_v54 = vld [vmem:[%s9524_s1 + $0x414] ss:$8 sps:$4 sm:$0xff]   ;;  %v6186_v57 = vld [vmem:[%s9524_s1 + $0x310] ss:$8 sps:$4 sm:$0xff]  }
  0x7b   :  { %3291 = vmatprep.mubr.bf16.mxu0 %v6052_v58  ;;  %3401 = vmatprep.mubr.bf16.mxu1 %v6054_v59  ;;  %v6140_v56 = vld [vmem:[%s9525_s0 + $0x1d4] ss:$56 sps:$4 sm:$0xff]   ;;  %v6189_v58 = vld [vmem:[%s9524_s1 + $0x410] ss:$8 sps:$4 sm:$0xff]  }
  0x7c   :  { %3459 = vmatpush2.bf16.msra.mxu1 %v6079_v60  ;;  %3710 = vmatpush2.bf16.msra.mxu0 %v6085_v61  ;;  %v6200_v59 = vld [vmem:[%s9524_s1 + $0x304] ss:$8 sps:$4 sm:$0xff]   ;;  %v6198_v61 = vld [vmem:[%s9524_s1 + $0x300] ss:$8 sps:$4 sm:$0xff]  }
  0x7d   :  { %3460 = vmatprep.subr.bf16.mxu1 %v6092_v62  ;;  %3711 = vmatprep.subr.bf16.mxu0 %v6095_v63  ;;  %v6207_v60 = vld [vmem:[%s9524_s1 + $0x404] ss:$8 sps:$4 sm:$0xff]   ;;  %v6142_v62 = vld [vmem:[%s9525_s0 + $0x1c8] ss:$56 sps:$4 sm:$0xff]  }
  0x7e   :  { %v6143_v63 = vld [vmem:[%s9525_s0 + $0x1d0] ss:$56 sps:$4 sm:$0xff]  }
  0x80   :  { %3461 = vmatpush2.bf16.msra.mxu1 %v6090_v0  ;;  %3712 = vmatpush2.bf16.msra.mxu0 %v6093_v1  ;;  %v6205_v0 = vld [vmem:[%s9524_s1 + $0x400] ss:$8 sps:$4 sm:$0xff]   ;;  %v6218_v1 = vld [vmem:[%s9524_s1 + $0x3f4] ss:$8 sps:$4 sm:$0xff]  }
  0x81   :  { %3932 = vmatprep.subr.bf16.mxu1 %v6104_v3  ;;  %4183 = vmatprep.subr.bf16.mxu0 %v6107_v4  ;;  %v6150_v3 = vld [vmem:[%s9525_s0 + $0x23c] ss:$56 sps:$4 sm:$0xff]  }
  0x82   :  { %3292 = vmatmul.mubr.bf16.gmra.mxu0 %v6059_v2  ;;  %3402 = vmatmul.mubr.bf16.gmra.mxu1 %v6060_v5  ;;  %v6221_v2 = vld [vmem:[%s9524_s1 + $0x4f4] ss:$8 sps:$4 sm:$0xff]   ;;  %v6216_v5 = vld [vmem:[%s9524_s1 + $0x3f0] ss:$8 sps:$4 sm:$0xff]  }
  0x83   :  { %3301 = vmatprep.mubr.bf16.mxu0 %v6067_v6  ;;  %3411 = vmatprep.mubr.bf16.mxu1 %v6069_v7  ;;  %v6152_v4 = vld [vmem:[%s9525_s0 + $0x244] ss:$56 sps:$4 sm:$0xff]   ;;  %v6219_v6 = vld [vmem:[%s9524_s1 + $0x4f0] ss:$8 sps:$4 sm:$0xff]  }
  0x84   :  { %v6230_v7 = vld [vmem:[%s9524_s1 + $0x3e4] ss:$8 sps:$4 sm:$0xff]  }
  0x8a   :  { %3302 = vmatmul.mubr.bf16.gmra.mxu0 %v6071_v9  ;;  %3412 = vmatmul.mubr.bf16.gmra.mxu1 %v6072_v10  ;;  %v6228_v9 = vld [vmem:[%s9524_s1 + $0x3e0] ss:$8 sps:$4 sm:$0xff]  }
  0x8b   :  { %3311 = vmatprep.mubr.bf16.mxu0 %v6082_v11  ;;  %3421 = vmatprep.mubr.bf16.mxu1 %v5604_v12  ;;  %v6231_v10 = vld [vmem:[%s9524_s1 + $0x4e0] ss:$8 sps:$4 sm:$0xff]   ;;  %v6242_v11 = vld [vmem:[%s9524_s1 + $0x3d4] ss:$8 sps:$4 sm:$0xff]   ;;  %v6154_v12 = vld [vmem:[%s9525_s0 + $0x238] ss:$56 sps:$4 sm:$0xff]  }
  0x92   :  { %3312 = vmatmul.mubr.bf16.gmra.mxu0 %v6088_v13  ;;  %3422 = vmatmul.mubr.bf16.gmra.mxu1 %v5603_v14  ;;  %v6155_v13 = vld [vmem:[%s9525_s0 + $0x240] ss:$56 sps:$4 sm:$0xff]   ;;  %v6251_v14 = vld [vmem:[%s9524_s1 + $0x4d4] ss:$8 sps:$4 sm:$0xff]  }
  0x93   :  { %3462 = vmatprep.mubr.bf16.mxu1 %v6098_v15  ;;  %3713 = vmatprep.mubr.bf16.mxu0 %v6101_v16  ;;  %v6162_v15 = vld [vmem:[%s9525_s0 + $0x2ac] ss:$56 sps:$4 sm:$0xff]  }
  0x94   :  { %v6164_v16 = vld [vmem:[%s9525_s0 + $0x2b4] ss:$56 sps:$4 sm:$0xff]  }
  0x9a   :  { %3463 = vmatmul.mubr.bf16.vlgmr.msra.gmra.mxu1 %v6096_v17  ;;  %3714 = vmatmul.mubr.bf16.vlgmr.msra.gmra.mxu0 %v6099_v18  ;;  %v6240_v17 = vld [vmem:[%s9524_s1 + $0x3d0] ss:$8 sps:$4 sm:$0xff]  }
  0x9b   :  { %3933 = vmatpush1.bf16.msra.mxu1 %v6102_v19  ;;  %4184 = vmatpush1.bf16.msra.mxu0 %v6105_v20  ;;  %v6249_v18 = vld [vmem:[%s9524_s1 + $0x4d0] ss:$8 sps:$4 sm:$0xff]   ;;  %v6260_v19 = vld [vmem:[%s9524_s1 + $0x3c4] ss:$8 sps:$4 sm:$0xff]  }
  0x9c   :  { %3472 = vmatprep.mubr.bf16.mxu1 %v6108_v21  ;;  %3723 = vmatprep.mubr.bf16.mxu0 %v6110_v22  ;;  %v6263_v20 = vld [vmem:[%s9524_s1 + $0x4c4] ss:$8 sps:$4 sm:$0xff]   ;;  %v6258_v21 = vld [vmem:[%s9524_s1 + $0x3c0] ss:$8 sps:$4 sm:$0xff]  }
  0x9d   :  { %3934 = vmatprep.subr.bf16.mxu1 %v6116_v23  ;;  %4185 = vmatprep.subr.bf16.mxu0 %v6119_v24  ;;  %v6261_v22 = vld [vmem:[%s9524_s1 + $0x4c0] ss:$8 sps:$4 sm:$0xff]   ;;  %v6272_v23 = vld [vmem:[%s9524_s1 + $0x3b4] ss:$8 sps:$4 sm:$0xff]  }
  0x9e   :  { %v6275_v24 = vld [vmem:[%s9524_s1 + $0x4b4] ss:$8 sps:$4 sm:$0xff]  }
  0x9f   :  { %3935 = vmatpush1.bf16.msra.mxu1 %v6114_v25  ;;  %4186 = vmatpush1.bf16.msra.mxu0 %v6117_v26  ;;  %v6166_v25 = vld [vmem:[%s9525_s0 + $0x2a8] ss:$56 sps:$4 sm:$0xff]  }
  0xa0   :  { %3936 = vmatprep.subr.bf16.mxu1 %v6128_v27  ;;  %4187 = vmatprep.subr.bf16.mxu0 %v6137_v28  ;;  %v6167_v26 = vld [vmem:[%s9525_s0 + $0x2b0] ss:$56 sps:$4 sm:$0xff]   ;;  %v6168_v27 = vld [vmem:[%s9525_s0 + $0x31c] ss:$56 sps:$4 sm:$0xff]  }
  0xa1   :  { %v6170_v28 = vld [vmem:[%s9525_s0 + $0x324] ss:$56 sps:$4 sm:$0xff]  }
  0xa2   :  { %3473 = vmatmul.mubr.bf16.gmra.mxu1 %v6112_v29  ;;  %3724 = vmatmul.mubr.bf16.gmra.mxu0 %v6113_v30  ;;  %v6270_v29 = vld [vmem:[%s9524_s1 + $0x3b0] ss:$8 sps:$4 sm:$0xff]  }
  0xa3   :  { %3482 = vmatprep.mubr.bf16.mxu1 %v6120_v31  ;;  %3733 = vmatprep.mubr.bf16.mxu0 %v6122_v32  ;;  %v6273_v30 = vld [vmem:[%s9524_s1 + $0x4b0] ss:$8 sps:$4 sm:$0xff]   ;;  %v6290_v31 = vld [vmem:[%s9524_s1 + $0x3a4] ss:$8 sps:$4 sm:$0xff]  }
  0xa4   :  { %3937 = vmatpush1.bf16.msra.mxu1 %v6126_v33  ;;  %4188 = vmatpush1.bf16.msra.mxu0 %v6135_v34  ;;  %v6293_v32 = vld [vmem:[%s9524_s1 + $0x4a4] ss:$8 sps:$4 sm:$0xff]   ;;  %v6288_v33 = vld [vmem:[%s9524_s1 + $0x3a0] ss:$8 sps:$4 sm:$0xff]  }
  0xa5   :  { %3938 = vmatprep.subr.bf16.mxu1 %v6146_v35  ;;  %4189 = vmatprep.subr.bf16.mxu0 %v6149_v36  ;;  %v6291_v34 = vld [vmem:[%s9524_s1 + $0x4a0] ss:$8 sps:$4 sm:$0xff]   ;;  %v6175_v35 = vld [vmem:[%s9525_s0 + $0x318] ss:$56 sps:$4 sm:$0xff]  }
  0xa6   :  { %v6176_v36 = vld [vmem:[%s9525_s0 + $0x320] ss:$56 sps:$4 sm:$0xff]  }
  0xa8   :  { %3939 = vmatpush1.bf16.msra.mxu1 %v6144_v37  ;;  %4190 = vmatpush1.bf16.msra.mxu0 %v6147_v40  ;;  %v6302_v37 = vld [vmem:[%s9524_s1 + $0x394] ss:$8 sps:$4 sm:$0xff]  }
  0xa9   :  { %3940 = vmatprep.subr.bf16.mxu1 %v6158_v41  ;;  %4191 = vmatprep.subr.bf16.mxu0 %v6161_v42  ;;  %v6182_v40 = vld [vmem:[%s9525_s0 + $0x394] ss:$56 sps:$4 sm:$0xff]   ;;  %v6300_v41 = vld [vmem:[%s9524_s1 + $0x390] ss:$8 sps:$4 sm:$0xff]  }
  0xaa   :  { %3483 = vmatmul.mubr.bf16.gmra.mxu1 %v6124_v38  ;;  %3734 = vmatmul.mubr.bf16.gmra.mxu0 %v6125_v39  ;;  %v6305_v38 = vld [vmem:[%s9524_s1 + $0x494] ss:$8 sps:$4 sm:$0xff]   ;;  %v6180_v39 = vld [vmem:[%s9525_s0 + $0x38c] ss:$56 sps:$4 sm:$0xff]   ;;  %v6303_v42 = vld [vmem:[%s9524_s1 + $0x490] ss:$8 sps:$4 sm:$0xff]  }
  0xab   :  { %3492 = vmatprep.mubr.bf16.mxu1 %v6129_v43  ;;  %3743 = vmatprep.mubr.bf16.mxu0 %v6131_v44  ;;  %v6314_v43 = vld [vmem:[%s9524_s1 + $0x384] ss:$8 sps:$4 sm:$0xff]  }
  0xac   :  { %3941 = vmatpush1.bf16.msra.mxu1 %v6156_v45  ;;  %4192 = vmatpush1.bf16.msra.mxu0 %v6159_v46  ;;  %v6321_v44 = vld [vmem:[%s9524_s1 + $0x484] ss:$8 sps:$4 sm:$0xff]   ;;  %v6312_v45 = vld [vmem:[%s9524_s1 + $0x380] ss:$8 sps:$4 sm:$0xff]  }
  0xad   :  { %3942 = vmatprep.subr.bf16.mxu1 %v6174_v47  ;;  %4193 = vmatprep.subr.bf16.mxu0 %v6179_v48  ;;  %v6319_v46 = vld [vmem:[%s9524_s1 + $0x480] ss:$8 sps:$4 sm:$0xff]  }
  0xae   :  { %v6184_v47 = vld [vmem:[%s9525_s0 + $0x388] ss:$56 sps:$4 sm:$0xff]  }
  0xaf   :  { %v6185_v48 = vld [vmem:[%s9525_s0 + $0x390] ss:$56 sps:$4 sm:$0xff]  }
  0xb0   :  { %3943 = vmatpush1.bf16.msra.mxu1 %v6172_v49  ;;  %4194 = vmatpush1.bf16.msra.mxu0 %v6177_v52  ;;  %v6330_v49 = vld [vmem:[%s9524_s1 + $0x574] ss:$8 sps:$4 sm:$0xff]  }
  0xb1   :  { %3944 = vmatprep.subr.bf16.mxu1 %v6188_v53  ;;  %4195 = vmatprep.subr.bf16.mxu0 %v6191_v54  ;;  %v6194_v52 = vld [vmem:[%s9525_s0 + $0x404] ss:$56 sps:$4 sm:$0xff]   ;;  %v6196_v53 = vld [vmem:[%s9525_s0 + $0x3f8] ss:$56 sps:$4 sm:$0xff]  }
  0xb2   :  { %3493 = vmatmul.mubr.bf16.gmra.mxu1 %v6133_v50  ;;  %3744 = vmatmul.mubr.bf16.gmra.mxu0 %v6134_v51  ;;  %v6333_v50 = vld [vmem:[%s9524_s1 + $0x674] ss:$8 sps:$4 sm:$0xff]   ;;  %v6197_v54 = vld [vmem:[%s9525_s0 + $0x400] ss:$56 sps:$4 sm:$0xff]  }
  0xb3   :  { %3502 = vmatprep.mubr.bf16.mxu1 %v6138_v55  ;;  %3753 = vmatprep.mubr.bf16.mxu0 %v6140_v56  ;;  %v6192_v51 = vld [vmem:[%s9525_s0 + $0x3fc] ss:$56 sps:$4 sm:$0xff]   ;;  %v6201_v55 = vld [vmem:[%s9525_s0 + $0x46c] ss:$56 sps:$4 sm:$0xff]  }
  0xb4   :  { %3945 = vmatpush1.bf16.msra.mxu1 %v6186_v57  ;;  %4196 = vmatpush1.bf16.msra.mxu0 %v6189_v58  ;;  %v6203_v56 = vld [vmem:[%s9525_s0 + $0x474] ss:$56 sps:$4 sm:$0xff]   ;;  %v6208_v57 = vld [vmem:[%s9525_s0 + $0x468] ss:$56 sps:$4 sm:$0xff]  }
  0xb5   :  { %3946 = vmatprep.subr.bf16.mxu1 %v6200_v59  ;;  %4197 = vmatprep.subr.bf16.mxu0 %v6207_v60  ;;  %v6209_v58 = vld [vmem:[%s9525_s0 + $0x470] ss:$56 sps:$4 sm:$0xff]   ;;  %v6210_v59 = vld [vmem:[%s9525_s0 + $0x4dc] ss:$56 sps:$4 sm:$0xff]  }
  0xb6   :  { %v6212_v60 = vld [vmem:[%s9525_s0 + $0x4e4] ss:$56 sps:$4 sm:$0xff]  }
  0xb8   :  { %3947 = vmatpush1.bf16.msra.mxu1 %v6198_v61  ;;  %4198 = vmatpush1.bf16.msra.mxu0 %v6205_v0  ;;  %v6214_v61 = vld [vmem:[%s9525_s0 + $0x4d8] ss:$56 sps:$4 sm:$0xff]   ;;  %v6224_v0 = vld [vmem:[%s9525_s0 + $0x554] ss:$56 sps:$4 sm:$0xff]  }
  0xb9   :  { %3948 = vmatprep.subr.bf16.mxu1 %v6218_v1  ;;  %4199 = vmatprep.subr.bf16.mxu0 %v6221_v2  ;;  %v6226_v1 = vld [vmem:[%s9525_s0 + $0x548] ss:$56 sps:$4 sm:$0xff]  }
  0xba   :  { %3503 = vmatmul.mubr.bf16.gmra.mxu1 %v6142_v62  ;;  %3754 = vmatmul.mubr.bf16.gmra.mxu0 %v6143_v63  ;;  %v6215_v62 = vld [vmem:[%s9525_s0 + $0x4e0] ss:$56 sps:$4 sm:$0xff]   ;;  %v6222_v63 = vld [vmem:[%s9525_s0 + $0x54c] ss:$56 sps:$4 sm:$0xff]   ;;  %v6227_v2 = vld [vmem:[%s9525_s0 + $0x550] ss:$56 sps:$4 sm:$0xff]  }
  0xbb   :  { %3512 = vmatprep.mubr.bf16.mxu1 %v6150_v3  ;;  %3763 = vmatprep.mubr.bf16.mxu0 %v6152_v4  ;;  %v6234_v3 = vld [vmem:[%s9525_s0 + $0x5bc] ss:$56 sps:$4 sm:$0xff]  }
  0xbc   :  { %3949 = vmatpush2.bf16.msra.mxu1 %v6216_v5  ;;  %4200 = vmatpush2.bf16.msra.mxu0 %v6219_v6  ;;  %v6236_v4 = vld [vmem:[%s9525_s0 + $0x5c4] ss:$56 sps:$4 sm:$0xff]   ;;  %v6238_v5 = vld [vmem:[%s9525_s0 + $0x5b8] ss:$56 sps:$4 sm:$0xff]  }
  0xbd   :  { %3950 = vmatprep.subr.bf16.mxu1 %v6230_v7  ;;  %4201 = vmatprep.subr.bf16.mxu0 %v6233_v8  ;;  %v6239_v6 = vld [vmem:[%s9525_s0 + $0x5c0] ss:$56 sps:$4 sm:$0xff]   ;;  %v6243_v7 = vld [vmem:[%s9525_s0 + $0x62c] ss:$56 sps:$4 sm:$0xff]  }
  0xbe   :  { %v6245_v8 = vld [vmem:[%s9525_s0 + $0x634] ss:$56 sps:$4 sm:$0xff]  }
  0xc0   :  { %3951 = vmatpush2.bf16.msra.mxu1 %v6228_v9  ;;  %4202 = vmatpush2.bf16.msra.mxu0 %v6231_v10 }
  0xc1   :  { %3952 = vmatprep.subr.bf16.mxu1 %v6242_v11  ;;  %4203 = vmatprep.subr.bf16.mxu0 %v6251_v14  ;;  %v6248_v14 = vld [vmem:[%s9525_s0 + $0x630] ss:$56 sps:$4 sm:$0xff]  }
  0xc2   :  { %3513 = vmatmul.mubr.bf16.gmra.mxu1 %v6154_v12  ;;  %3764 = vmatmul.mubr.bf16.gmra.mxu0 %v6155_v13  ;;  %v6247_v13 = vld [vmem:[%s9525_s0 + $0x628] ss:$56 sps:$4 sm:$0xff]  }
  0xc3   :  { %3522 = vmatprep.mubr.bf16.mxu1 %v6162_v15  ;;  %3773 = vmatprep.mubr.bf16.mxu0 %v6164_v16 }
  0xc4   :  { %3953 = vmatpush2.bf16.msra.mxu1 %v6240_v17  ;;  %4204 = vmatpush2.bf16.msra.mxu0 %v6249_v18  ;;  %v6252_v17 = vld [vmem:[%s9525_s0 + $0x69c] ss:$56 sps:$4 sm:$0xff]  }
  0xc5   :  { %3954 = vmatprep.subr.bf16.mxu1 %v6260_v19  ;;  %4205 = vmatprep.subr.bf16.mxu0 %v6263_v20  ;;  %v6254_v18 = vld [vmem:[%s9525_s0 + $0x6a4] ss:$56 sps:$4 sm:$0xff]  }
  0xc8   :  { %3955 = vmatpush2.bf16.msra.mxu1 %v6258_v21  ;;  %4206 = vmatpush2.bf16.msra.mxu0 %v6261_v22 }
  0xc9   :  { %3956 = vmatprep.subr.bf16.mxu1 %v6272_v23  ;;  %4207 = vmatprep.subr.bf16.mxu0 %v6275_v24 }
  0xca   :  { %3523 = vmatmul.mubr.bf16.gmra.mxu1 %v6166_v25  ;;  %3774 = vmatmul.mubr.bf16.gmra.mxu0 %v6167_v26  ;;  %v6256_v25 = vld [vmem:[%s9525_s0 + $0x698] ss:$56 sps:$4 sm:$0xff]  }
  0xcb   :  { %3532 = vmatprep.mubr.bf16.mxu1 %v6168_v27  ;;  %3783 = vmatprep.mubr.bf16.mxu0 %v6170_v28  ;;  %v6257_v26 = vld [vmem:[%s9525_s0 + $0x6a0] ss:$56 sps:$4 sm:$0xff]  }
  0xcc   :  { %3957 = vmatpush2.bf16.msra.mxu1 %v6270_v29  ;;  %4208 = vmatpush2.bf16.msra.mxu0 %v6273_v30  ;;  %v6264_v29 = vld [vmem:[%s9525_s0 + $0x70c] ss:$56 sps:$4 sm:$0xff]  }
  0xcd   :  { %3958 = vmatprep.subr.bf16.mxu1 %v6290_v31  ;;  %4209 = vmatprep.subr.bf16.mxu0 %v6293_v32  ;;  %v6266_v30 = vld [vmem:[%s9525_s0 + $0x714] ss:$56 sps:$4 sm:$0xff]  }
  0xd0   :  { %3959 = vmatpush2.bf16.msra.mxu1 %v6288_v33  ;;  %4210 = vmatpush2.bf16.msra.mxu0 %v6291_v34 }
  0xd1   :  { %3960 = vmatprep.subr.bf16.mxu1 %v6302_v37  ;;  %4211 = vmatprep.subr.bf16.mxu0 %v6305_v38  ;;  %v6268_v37 = vld [vmem:[%s9525_s0 + $0x708] ss:$56 sps:$4 sm:$0xff]  }
  0xd2   :  { %3533 = vmatmul.mubr.bf16.gmra.mxu1 %v6175_v35  ;;  %3784 = vmatmul.mubr.bf16.gmra.mxu0 %v6176_v36  ;;  %v6269_v38 = vld [vmem:[%s9525_s0 + $0x710] ss:$56 sps:$4 sm:$0xff]  }
  0xd3   :  { %3542 = vmatprep.mubr.bf16.mxu1 %v6180_v39  ;;  %3793 = vmatprep.mubr.bf16.mxu0 %v6182_v40 }
  0xd4   :  { %3961 = vmatpush2.bf16.msra.mxu1 %v6300_v41  ;;  %4212 = vmatpush2.bf16.msra.mxu0 %v6303_v42  ;;  %v6278_v41 = vld [vmem:[%s9525_s0 + $0x77c] ss:$56 sps:$4 sm:$0xff]  }
  0xd5   :  { %3962 = vmatprep.subr.bf16.mxu1 %v6314_v43  ;;  %4213 = vmatprep.subr.bf16.mxu0 %v6321_v44  ;;  %v6281_v42 = vld [vmem:[%s9525_s0 + $0x784] ss:$56 sps:$4 sm:$0xff]  }
  0xd8   :  { %3963 = vmatpush2.bf16.msra.mxu1 %v6312_v45  ;;  %4214 = vmatpush2.bf16.msra.mxu0 %v6319_v46 }
  0xd9   :  { %4434 = vmatprep.subr.bf16.mxu1 %v6330_v49  ;;  %4685 = vmatprep.subr.bf16.mxu0 %v6333_v50  ;;  %v6276_v49 = vld [vmem:[%s9525_s0 + $0x778] ss:$56 sps:$4 sm:$0xff]  }
  0xda   :  { %3543 = vmatmul.mubr.bf16.gmra.mxu1 %v6184_v47  ;;  %3794 = vmatmul.mubr.bf16.gmra.mxu0 %v6185_v48  ;;  %v6279_v50 = vld [vmem:[%s9525_s0 + $0x780] ss:$56 sps:$4 sm:$0xff]  }
  0xdb   :  { %3552 = vmatprep.mubr.bf16.mxu1 %v6192_v51  ;;  %3803 = vmatprep.mubr.bf16.mxu0 %v6194_v52 }
  0xe2   :  { %3553 = vmatmul.mubr.bf16.gmra.mxu1 %v6196_v53  ;;  %3804 = vmatmul.mubr.bf16.gmra.mxu0 %v6197_v54  ;;  %v6284_v53 = vld [vmem:[%s9525_s0 + $0x7ec] ss:$56 sps:$4 sm:$0xff]  }
  0xe3   :  { %3562 = vmatprep.mubr.bf16.mxu1 %v6201_v55  ;;  %3813 = vmatprep.mubr.bf16.mxu0 %v6203_v56  ;;  %v6287_v54 = vld [vmem:[%s9525_s0 + $0x7f4] ss:$56 sps:$4 sm:$0xff]  }
  0xea   :  { %3563 = vmatmul.mubr.bf16.gmra.mxu1 %v6208_v57  ;;  %3814 = vmatmul.mubr.bf16.gmra.mxu0 %v6209_v58 }
  0xeb   :  { %3572 = vmatprep.mubr.bf16.mxu1 %v6210_v59  ;;  %3823 = vmatprep.mubr.bf16.mxu0 %v6212_v60 }
  0xf2   :  { %3573 = vmatmul.mubr.bf16.gmra.mxu1 %v6214_v61  ;;  %3824 = vmatmul.mubr.bf16.gmra.mxu0 %v6215_v62 }
  0xf3   :  { %3582 = vmatprep.mubr.bf16.mxu1 %v6222_v63  ;;  %3833 = vmatprep.mubr.bf16.mxu0 %v6224_v0  ;;  %v6282_v63 = vld [vmem:[%s9525_s0 + $0x7e8] ss:$56 sps:$4 sm:$0xff]  }
  0xf4   :  { %v6285_v0 = vld [vmem:[%s9525_s0 + $0x7f0] ss:$56 sps:$4 sm:$0xff]  }
  0xfa   :  { %3583 = vmatmul.mubr.bf16.gmra.mxu1 %v6226_v1  ;;  %3834 = vmatmul.mubr.bf16.gmra.mxu0 %v6227_v2  ;;  %v6296_v1 = vld [vmem:[%s9525_s0 + $0x85c] ss:$56 sps:$4 sm:$0xff]  }
  0xfb   :  { %3592 = vmatprep.mubr.bf16.mxu1 %v6234_v3  ;;  %3843 = vmatprep.mubr.bf16.mxu0 %v6236_v4  ;;  %v6299_v2 = vld [vmem:[%s9525_s0 + $0x864] ss:$56 sps:$4 sm:$0xff]  }
 0x102   :  { %v7480_v9 = vpop.f32.mrf.mxu0  ;;  %v7482_v10 = vpop.f32.mrf.mxu1  ;;  %3593 = vmatmul.mubr.bf16.gmra.mxu1 %v6238_v5  ;;  %3844 = vmatmul.mubr.bf16.gmra.mxu0 %v6239_v6 }
 0x103   :  { %3602 = vmatprep.mubr.bf16.mxu1 %v6243_v7  ;;  %3853 = vmatprep.mubr.bf16.mxu0 %v6245_v8 }
 0x104   :  { %v7484_v11 = vpop.f32.mrf.mxu0  ;;  %v7486_v12 = vpop.f32.mrf.mxu1 }
 0x106   :  { %v7494_v15 = vpop.f32.mrf.mxu0  ;;  %v7496_v16 = vpop.f32.mrf.mxu1 }
 0x108   :  { %v7504_v19 = vpop.f32.mrf.mxu0  ;;  %v7506_v20 = vpop.f32.mrf.mxu1 }
 0x10a   :  { %v7508_v21 = vpop.f32.mrf.mxu0  ;;  %v7510_v22 = vpop.f32.mrf.mxu1  ;;  %3603 = vmatmul.mubr.bf16.gmra.mxu1 %v6247_v13  ;;  %3854 = vmatmul.mubr.bf16.gmra.mxu0 %v6248_v14 }
 0x10b   :  { %9529 = vst [vmem:[#allocation2_spill] sm:$0xff] %v7510_v22  ;;  %3612 = vmatprep.mubr.bf16.mxu1 %v6252_v17  ;;  %3863 = vmatprep.mubr.bf16.mxu0 %v6254_v18  ;;  %v6294_v17 = vld [vmem:[%s9525_s0 + $0x858] ss:$56 sps:$4 sm:$0xff]  }
 0x10c   :  { %v7512_v23 = vpop.f32.mrf.mxu0  ;;  %v7514_v24 = vpop.f32.mrf.mxu1  ;;  %v6297_v18 = vld [vmem:[%s9525_s0 + $0x860] ss:$56 sps:$4 sm:$0xff]  }
 0x10d   :  { %9530 = vst [vmem:[#allocation3_spill] sm:$0xff] %v7514_v24 }
 0x10e   :  { %v7522_v27 = vpop.f32.mrf.mxu0  ;;  %v7524_v28 = vpop.f32.mrf.mxu1 }
 0x10f   :  { %9531 = vst [vmem:[#allocation4_spill] sm:$0xff] %v7524_v28 }
 0x110   :  { %v7532_v31 = vpop.f32.mrf.mxu0  ;;  %v7534_v32 = vpop.f32.mrf.mxu1 }
 0x111   :  { %9532 = vst [vmem:[#allocation5_spill] sm:$0xff] %v7534_v32 }
 0x112   :  { %v7536_v33 = vpop.f32.mrf.mxu0  ;;  %v7538_v34 = vpop.f32.mrf.mxu1  ;;  %3613 = vmatmul.mubr.bf16.gmra.mxu1 %v6256_v25  ;;  %3864 = vmatmul.mubr.bf16.gmra.mxu0 %v6257_v26  ;;  %v6308_v25 = vld [vmem:[%s9525_s0 + $0x8cc] ss:$56 sps:$4 sm:$0xff]  }
 0x113   :  { %9533 = vst [vmem:[#allocation6_spill] sm:$0xff] %v7538_v34  ;;  %3622 = vmatprep.mubr.bf16.mxu1 %v6264_v29  ;;  %3873 = vmatprep.mubr.bf16.mxu0 %v6266_v30  ;;  %v6311_v26 = vld [vmem:[%s9525_s0 + $0x8d4] ss:$56 sps:$4 sm:$0xff]  }
 0x114   :  { %v7540_v35 = vpop.f32.mrf.mxu0  ;;  %v7542_v36 = vpop.f32.mrf.mxu1  ;;  %v6399_v34 = vld [vmem:[%s9524_s1 + $0x524] ss:$8 sps:$4 sm:$0xff]  }
 0x115   :  { %9534 = vst [vmem:[#allocation7_spill] sm:$0xff] %v7542_v36  ;;  %v6400_v36 = vld [vmem:[%s9524_s1 + $0x630] ss:$8 sps:$4 sm:$0xff]  }
 0x116   :  { %v7550_v39 = vpop.f32.mrf.mxu0  ;;  %v7552_v40 = vpop.f32.mrf.mxu1 }
 0x117   :  { %9535 = vst [vmem:[#allocation8_spill] sm:$0xff] %v7552_v40  ;;  %v6382_v40 = vld [vmem:[%s9524_s1 + $0x640] ss:$8 sps:$4 sm:$0xff]  }
 0x118   :  { %v7560_v43 = vpop.f32.mrf.mxu0  ;;  %v7562_v44 = vpop.f32.mrf.mxu1 }
 0x119   :  { %9536 = vst [vmem:[#allocation9_spill] sm:$0xff] %v7562_v44 }
 0x11a   :  { %v7564_v45 = vpop.f32.mrf.mxu0  ;;  %v7566_v46 = vpop.f32.mrf.mxu1  ;;  %3623 = vmatmul.mubr.bf16.gmra.mxu1 %v6268_v37  ;;  %3874 = vmatmul.mubr.bf16.gmra.mxu0 %v6269_v38 }
 0x11b   :  { %9537 = vst [vmem:[#allocation10_spill] sm:$0xff] %v7566_v46  ;;  %3632 = vmatprep.mubr.bf16.mxu1 %v6278_v41  ;;  %3883 = vmatprep.mubr.bf16.mxu0 %v6281_v42 }
 0x11c   :  { %v7568_v47 = vpop.f32.mrf.mxu0  ;;  %v7570_v48 = vpop.f32.mrf.mxu1 }
 0x11d   :  { %9538 = vst [vmem:[#allocation11_spill] sm:$0xff] %v7570_v48  ;;  %v6372_v48 = vld [vmem:[%s9524_s1 + $0x544] ss:$8 sps:$4 sm:$0xff]  }
 0x11e   :  { %v7578_v51 = vpop.f32.mrf.mxu0  ;;  %v7580_v52 = vpop.f32.mrf.mxu1 }
 0x11f   :  { %9539 = vst [vmem:[#allocation12_spill] sm:$0xff] %v7580_v52 }
 0x120   :  { %v7588_v55 = vpop.f32.mrf.mxu0  ;;  %v7590_v56 = vpop.f32.mrf.mxu1 }
 0x121   :  { %9540 = vst [vmem:[#allocation13_spill] sm:$0xff] %v7590_v56 }
 0x122   :  { %v7592_v57 = vpop.f32.mrf.mxu0  ;;  %v7594_v58 = vpop.f32.mrf.mxu1  ;;  %3633 = vmatmul.mubr.bf16.gmra.mxu1 %v6276_v49  ;;  %3884 = vmatmul.mubr.bf16.gmra.mxu0 %v6279_v50  ;;  %v313_v49 = vld [vmem:[%s9525_s0 + $0x938] sm:$0x11]  ;;  %v314_v50 = vld [vmem:[%s9525_s0 + $0x940] sm:$0x11] }
 0x123   :  { %9541 = vst [vmem:[#allocation14_spill] sm:$0xff] %v7594_v58  ;;  %3642 = vmatprep.mubr.bf16.mxu1 %v6284_v53  ;;  %3893 = vmatprep.mubr.bf16.mxu0 %v6287_v54  ;;  %v6349_v58 = vld [vmem:[%s9524_s1 + $0x660] ss:$8 sps:$4 sm:$0xff]  }
 0x124   :  { %v7596_v59 = vpop.f32.mrf.mxu0  ;;  %v7598_v60 = vpop.f32.mrf.mxu1 }
 0x125   :  { %9542 = vst [vmem:[#allocation15_spill] sm:$0xff] %v7598_v60 }
 0x126   :  { %v7600_v61 = vpop.f32.mrf.mxu0  ;;  %v7602_v62 = vpop.f32.mrf.mxu1 }
 0x127   :  { %9543 = vst [vmem:[#allocation16_spill] sm:$0xff] %v7602_v62 }
 0x128   :  { %v7616_v3 = vpop.f32.mrf.mxu0  ;;  %v7618_v4 = vpop.f32.mrf.mxu1 }
 0x129   :  { %9544 = vst [vmem:[#allocation17_spill] sm:$0xff] %v7618_v4  ;;  %v6351_v4 = vld [vmem:[%s9524_s1 + $0x664] ss:$8 sps:$4 sm:$0xff]  }
 0x12a   :  { %v7620_v5 = vpop.f32.mrf.mxu0  ;;  %v7622_v6 = vpop.f32.mrf.mxu1  ;;  %3643 = vmatmul.mubr.bf16.gmra.mxu1 %v6282_v63  ;;  %3894 = vmatmul.mubr.bf16.gmra.mxu0 %v6285_v0  ;;  %v6306_v63 = vld [vmem:[%s9525_s0 + $0x8c8] ss:$56 sps:$4 sm:$0xff]  }
 0x12b   :  { %9545 = vst [vmem:[#allocation18_spill] sm:$0xff] %v7622_v6  ;;  %3652 = vmatprep.mubr.bf16.mxu1 %v6296_v1  ;;  %3903 = vmatprep.mubr.bf16.mxu0 %v6299_v2  ;;  %v6309_v0 = vld [vmem:[%s9525_s0 + $0x8d0] ss:$56 sps:$4 sm:$0xff]   ;;  %v5606_v1 = vcombine.high %v313_v49, %v313_v49  ;;  %v5608_v2 = vcombine.high %v314_v50, %v314_v50  ;;  %v6342_v6 = vld [vmem:[%s9524_s1 + $0x564] ss:$8 sps:$4 sm:$0xff]  }
 0x12c   :  { %v7624_v7 = vpop.f32.mrf.mxu0  ;;  %v7626_v8 = vpop.f32.mrf.mxu1 }
 0x12d   :  { %9546 = vst [vmem:[#allocation19_spill] sm:$0xff] %v7626_v8  ;;  %v5607_v8 = vcombine.low %v314_v50, %v314_v50 }
 0x12e   :  { %v7628_v13 = vpop.f32.mrf.mxu0  ;;  %v7630_v14 = vpop.f32.mrf.mxu1 }
 0x12f   :  { %9547 = vst [vmem:[#allocation20_spill] sm:$0xff] %v7630_v14  ;;  %v5605_v14 = vcombine.low %v313_v49, %v313_v49 }
 0x130   :  { %v7644_v29 = vpop.f32.mrf.mxu0  ;;  %v7646_v30 = vpop.f32.mrf.mxu1 }
 0x131   :  { %9548 = vst [vmem:[#allocation21_spill] sm:$0xff] %v7646_v30 }
 0x132   :  { %v7648_v37 = vpop.f32.mrf.mxu0  ;;  %v7650_v38 = vpop.f32.mrf.mxu1  ;;  %3653 = vmatmul.mubr.bf16.gmra.mxu1 %v6294_v17  ;;  %3904 = vmatmul.mubr.bf16.gmra.mxu0 %v6297_v18 }
 0x133   :  { %9549 = vst [vmem:[#allocation22_spill] sm:$0xff] %v7650_v38  ;;  %3662 = vmatprep.mubr.bf16.mxu1 %v6308_v25  ;;  %3913 = vmatprep.mubr.bf16.mxu0 %v6311_v26 }
 0x134   :  { %v7652_v41 = vpop.f32.mrf.mxu0  ;;  %v7654_v42 = vpop.f32.mrf.mxu1 }
 0x135   :  { %9550 = vst [vmem:[#allocation23_spill] sm:$0xff] %v7654_v42 }
 0x136   :  { %v7662_v53 = vpop.f32.mrf.mxu0  ;;  %v7664_v54 = vpop.f32.mrf.mxu1 }
 0x137   :  { %9551 = vst [vmem:[#allocation24_spill] sm:$0xff] %v7664_v54 }
 0x138   :  { %v7672_v17 = vpop.f32.mrf.mxu0  ;;  %v7674_v18 = vpop.f32.mrf.mxu1 }
 0x139   :  { %9552 = vst [vmem:[#allocation25_spill] sm:$0xff] %v7674_v18  ;;  %v6324_v18 = vld [vmem:[%s9525_s0 + $0x1c] ss:$56 sps:$4 sm:$0xff]  }
 0x13a   :  { %v7676_v25 = vpop.f32.mrf.mxu0  ;;  %v7678_v26 = vpop.f32.mrf.mxu1  ;;  %3663 = vmatmul.mubr.bf16.gmra.mxu1 %v6306_v63  ;;  %3914 = vmatmul.mubr.bf16.gmra.mxu0 %v6309_v0  ;;  %v6327_v63 = vld [vmem:[%s9525_s0 + $0x24] ss:$56 sps:$4 sm:$0xff]  }
 0x13b   :  { %9553 = vst [vmem:[#allocation26_spill] sm:$0xff] %v7678_v26  ;;  %3672 = vmatprep.mubr.bf16.mxu1 %v5606_v1  ;;  %3923 = vmatprep.mubr.bf16.mxu0 %v5608_v2 }
 0x13c   :  { %v7680_v54 = vpop.f32.mrf.mxu0  ;;  %v7682_v42 = vpop.f32.mrf.mxu1 }
 0x13d   :  { %9554 = vst [vmem:[#allocation27_spill] sm:$0xff] %v7682_v42 }
 0x13e   :  { %v7684_v38 = vpop.f32.mrf.mxu0  ;;  %v7686_v30 = vpop.f32.mrf.mxu1 }
 0x13f   :  { %9555 = vst [vmem:[#allocation28_spill] sm:$0xff] %v7686_v30 }
 0x140   :  { %v7694_v0 = vpop.f32.mrf.mxu0  ;;  %v7696_v1 = vpop.f32.mrf.mxu1 }
 0x141   :  { %9556 = vst [vmem:[#allocation29_spill] sm:$0xff] %v7696_v1  ;;  %v6322_v1 = vld [vmem:[%s9525_s0 + $0x18] ss:$56 sps:$4 sm:$0xff]  }
 0x142   :  { %v7698_v2 = vpop.f32.mrf.mxu0  ;;  %v7700_v42 = vpop.f32.mrf.mxu1  ;;  %3673 = vmatmul.mubr.bf16.gmra.mxu1 %v5605_v14  ;;  %3924 = vmatmul.mubr.bf16.gmra.mxu0 %v5607_v8  ;;  %v6328_v8 = vld [vmem:[%s9524_s1 + $0x570] ss:$8 sps:$4 sm:$0xff]  }
 0x143   :  { %9557 = vst [vmem:[#allocation30_spill] sm:$0xff] %v7700_v42  ;;  %3964 = vmatprep.mubr.bf16.mxu1 %v6324_v18  ;;  %4215 = vmatprep.mubr.bf16.mxu0 %v6327_v63  ;;  %v6325_v42 = vld [vmem:[%s9525_s0 + $0x20] ss:$56 sps:$4 sm:$0xff]  }
 0x144   :  { %v7702_v49 = vpop.f32.mrf.mxu0  ;;  %v7704_v50 = vpop.f32.mrf.mxu1  ;;  %v6331_v14 = vld [vmem:[%s9524_s1 + $0x670] ss:$8 sps:$4 sm:$0xff]  }
 0x145   :  { %9558 = vst [vmem:[#allocation31_spill] sm:$0xff] %v7704_v50  ;;  %v6339_v50 = vld [vmem:[%s9525_s0 + $0x94] ss:$56 sps:$4 sm:$0xff]  }
 0x146   :  { %v7706_v30 = vpop.f32.mrf.mxu0  ;;  %v7708_v26 = vpop.f32.mrf.mxu1 }
 0x147   :  { %9559 = vst [vmem:[#allocation32_spill] sm:$0xff] %v7708_v26  ;;  %v6336_v26 = vld [vmem:[%s9525_s0 + $0x8c] ss:$56 sps:$4 sm:$0xff]  }
 0x148   :  { %v7722_v18 = vpop.f32.mrf.mxu0  ;;  %v7724_v63 = vpop.f32.mrf.mxu1 }
 0x149   :  { %9560 = vst [vmem:[#allocation33_spill] sm:$0xff] %v7724_v63  ;;  %v6340_v63 = vld [vmem:[%s9524_s1 + $0x560] ss:$8 sps:$4 sm:$0xff]  }
 0x14a   :  { %v7738_v62 = vpop.f32.mrf.mxu0  ;;  %v7740_v60 = vpop.f32.mrf.mxu1  ;;  %3965 = vmatmul.mubr.bf16.vlgmr.msra.gmra.mxu1 %v6322_v1  ;;  %4216 = vmatmul.mubr.bf16.vlgmr.msra.gmra.mxu0 %v6325_v42  ;;  %v6354_v42 = vld [vmem:[%s9524_s1 + $0x554] ss:$8 sps:$4 sm:$0xff]  }
 0x14b   :  { %9561 = vst [vmem:[#allocation34_spill] sm:$0xff] %v7740_v60  ;;  %4435 = vmatpush1.bf16.msra.mxu1 %v6328_v8  ;;  %4686 = vmatpush1.bf16.msra.mxu0 %v6331_v14  ;;  %v6369_v1 = vld [vmem:[%s9524_s1 + $0x654] ss:$8 sps:$4 sm:$0xff]   ;;  %v6352_v60 = vld [vmem:[%s9524_s1 + $0x550] ss:$8 sps:$4 sm:$0xff]  }
 0x14c   :  { %v7748_v56 = vpop.f32.mrf.mxu0  ;;  %v7750_v52 = vpop.f32.mrf.mxu1  ;;  %3974 = vmatprep.mubr.bf16.mxu1 %v6336_v26  ;;  %4225 = vmatprep.mubr.bf16.mxu0 %v6339_v50  ;;  %v6337_v26 = vld [vmem:[%s9525_s0 + $0x90] ss:$56 sps:$4 sm:$0xff]   ;;  %v6345_v50 = vld [vmem:[%s9525_s0 + $0xfc] ss:$56 sps:$4 sm:$0xff]  }
 0x14d   :  { %9562 = vst [vmem:[#allocation35_spill] sm:$0xff] %v7750_v52  ;;  %4436 = vmatprep.subr.bf16.mxu1 %v6342_v6  ;;  %4687 = vmatprep.subr.bf16.mxu0 %v6351_v4  ;;  %v6334_v52 = vld [vmem:[%s9525_s0 + $0x88] ss:$56 sps:$4 sm:$0xff]   ;;  %v6348_v4 = vld [vmem:[%s9525_s0 + $0x104] ss:$56 sps:$4 sm:$0xff]  }
 0x14e   :  { %v7758_v8 = vpop.f32.mrf.mxu0  ;;  %v7760_v14 = vpop.f32.mrf.mxu1 }
 0x14f   :  { %9563 = vst [vmem:[#allocation36_spill] sm:$0xff] %v7760_v14  ;;  %4437 = vmatpush1.bf16.msra.mxu1 %v6340_v63  ;;  %4688 = vmatpush1.bf16.msra.mxu0 %v6349_v58  ;;  %v6367_v63 = vld [vmem:[%s9524_s1 + $0x650] ss:$8 sps:$4 sm:$0xff]   ;;  %v6384_v58 = vld [vmem:[%s9524_s1 + $0x644] ss:$8 sps:$4 sm:$0xff]  }
 0x150   :  { %v7774_v6 = vpop.f32.mrf.mxu0  ;;  %v7776_v14 = vpop.f32.mrf.mxu1  ;;  %4438 = vmatprep.subr.bf16.mxu1 %v6354_v42  ;;  %4689 = vmatprep.subr.bf16.mxu0 %v6369_v1  ;;  %v6370_v1 = vld [vmem:[%s9524_s1 + $0x540] ss:$8 sps:$4 sm:$0xff]  }
 0x151   :  { %9564 = vst [vmem:[#allocation37_spill] sm:$0xff] %v7776_v14 }
 0x152   :  { %v7790_v46 = vpop.f32.mrf.mxu0  ;;  %v7792_v14 = vpop.f32.mrf.mxu1  ;;  %3975 = vmatmul.mubr.bf16.gmra.mxu1 %v6334_v52  ;;  %4226 = vmatmul.mubr.bf16.gmra.mxu0 %v6337_v26  ;;  %v6381_v52 = vld [vmem:[%s9524_s1 + $0x534] ss:$8 sps:$4 sm:$0xff]  }
 0x153   :  { %9565 = vst [vmem:[#allocation38_spill] sm:$0xff] %v7792_v14  ;;  %3984 = vmatprep.mubr.bf16.mxu1 %v6345_v50  ;;  %4235 = vmatprep.mubr.bf16.mxu0 %v6348_v4  ;;  %v6402_v26 = vld [vmem:[%s9524_s1 + $0x634] ss:$8 sps:$4 sm:$0xff]   ;;  %v6343_v4 = vld [vmem:[%s9525_s0 + $0xf8] ss:$56 sps:$4 sm:$0xff]  }
 0x154   :  { %v7794_v42 = vpop.f32.mrf.mxu0  ;;  %v7796_v44 = vpop.f32.mrf.mxu1  ;;  %4439 = vmatpush1.bf16.msra.mxu1 %v6352_v60  ;;  %4690 = vmatpush1.bf16.msra.mxu0 %v6367_v63  ;;  %v6357_v63 = vld [vmem:[%s9525_s0 + $0x16c] ss:$56 sps:$4 sm:$0xff]  }
 0x155   :  { %9566 = vst [vmem:[#allocation39_spill] sm:$0xff] %v7796_v44  ;;  %4440 = vmatprep.subr.bf16.mxu1 %v6372_v48  ;;  %4691 = vmatprep.subr.bf16.mxu0 %v6384_v58  ;;  %v6346_v48 = vld [vmem:[%s9525_s0 + $0x100] ss:$56 sps:$4 sm:$0xff]   ;;  %v6360_v58 = vld [vmem:[%s9525_s0 + $0x174] ss:$56 sps:$4 sm:$0xff]  }
 0x156   :  { %v7810_v60 = vpop.f32.mrf.mxu0  ;;  %v3427_v50 = vpop.f32.mrf.mxu1 }
 0x157   :  { %v6379_v50 = vld [vmem:[%s9524_s1 + $0x530] ss:$8 sps:$4 sm:$0xff]  }
 0x158   :  { %v7824_v44 = vpop.f32.mrf.mxu0  ;;  %v3428_v14 = vpop.f32.mrf.mxu1  ;;  %4441 = vmatpush1.bf16.msra.mxu1 %v6370_v1  ;;  %4692 = vmatpush1.bf16.msra.mxu0 %v6382_v40 }
 0x159   :  { %4442 = vmatprep.subr.bf16.mxu1 %v6381_v52  ;;  %4693 = vmatprep.subr.bf16.mxu0 %v6402_v26  ;;  %v6420_v14 = vld [vmem:[%s9524_s1 + $0x624] ss:$8 sps:$4 sm:$0xff]   ;;  %v6397_v52 = vld [vmem:[%s9524_s1 + $0x520] ss:$8 sps:$4 sm:$0xff]  }
 0x15a   :  { %v3464_v1 = vpop.f32.mrf.mxu1  ;;  %v3715_v32 = vpop.f32.mrf.mxu0  ;;  %3985 = vmatmul.mubr.bf16.gmra.mxu1 %v6343_v4  ;;  %4236 = vmatmul.mubr.bf16.gmra.mxu0 %v6346_v48  ;;  %v6418_v26 = vld [vmem:[%s9524_s1 + $0x620] ss:$8 sps:$4 sm:$0xff]   ;;  %v6441_v48 = vld [vmem:[%s9524_s1 + $0x614] ss:$8 sps:$4 sm:$0xff]  }
 0x15b   :  { %v3465_v40 = vadd.f32 %v3464_v1, %v7480_v9  ;;  %3994 = vmatprep.mubr.bf16.mxu1 %v6357_v63  ;;  %4245 = vmatprep.mubr.bf16.mxu0 %v6360_v58  ;;  %v6411_v9 = vld [vmem:[%s9524_s1 + $0x514] ss:$8 sps:$4 sm:$0xff]   ;;  %v6355_v58 = vld [vmem:[%s9525_s0 + $0x168] ss:$56 sps:$4 sm:$0xff]  }
 0x15c   :  { %v3466_v28 = vpop.f32.mrf.mxu1  ;;  %v3717_v24 = vpop.f32.mrf.mxu0  ;;  %4443 = vmatpush1.bf16.msra.mxu1 %v6379_v50  ;;  %4694 = vmatpush1.bf16.msra.mxu0 %v6400_v36  ;;  %v6366_v50 = vld [vmem:[%s9525_s0 + $0x1e4] ss:$56 sps:$4 sm:$0xff]  }
 0x15d   :  { %v7845_v22 = vadd.f32 %v3715_v32, %v3465_v40  ;;  %v3467_v4 = vadd.f32 %v3466_v28, %v7484_v11  ;;  %4444 = vmatprep.subr.bf16.mxu1 %v6399_v34  ;;  %4695 = vmatprep.subr.bf16.mxu0 %v6420_v14  ;;  %v6358_v11 = vld [vmem:[%s9525_s0 + $0x170] ss:$56 sps:$4 sm:$0xff]   ;;  %v6363_v34 = vld [vmem:[%s9525_s0 + $0x1dc] ss:$56 sps:$4 sm:$0xff]  }
 0x15e   :  { %v3468_v63 = vpop.f32.mrf.mxu1  ;;  %v3719_v36 = vpop.f32.mrf.mxu0  ;;  %v6409_v40 = vld [vmem:[%s9524_s1 + $0x510] ss:$8 sps:$4 sm:$0xff]  }
 0x15f   :  { %9567 = vst [vmem:[#allocation40_spill] sm:$0xff] %v7845_v22  ;;  %v7860_v28 = vadd.f32 %v3717_v24, %v3467_v4  ;;  %v3469_v32 = vadd.f32 %v3468_v63, %v7494_v15  ;;  %v6439_v15 = vld [vmem:[%s9524_s1 + $0x610] ss:$8 sps:$4 sm:$0xff]   ;;  %v6423_v63 = vld [vmem:[%s9524_s1 + $0x504] ss:$8 sps:$4 sm:$0xff]  }
 0x160   :  { %v3470_v14 = vpop.f32.mrf.mxu1  ;;  %v3721_v1 = vpop.f32.mrf.mxu0  ;;  %4445 = vmatpush1.bf16.msra.mxu1 %v6397_v52  ;;  %4696 = vmatpush1.bf16.msra.mxu0 %v6418_v26  ;;  %v6459_v52 = vld [vmem:[%s9524_s1 + $0x604] ss:$8 sps:$4 sm:$0xff]  }
 0x161   :  { %9568 = vst [vmem:[#allocation41_spill] sm:$0xff] %v7860_v28  ;;  %v7875_v24 = vadd.f32 %v3719_v36, %v3469_v32  ;;  %v3471_v4 = vadd.f32 %v3470_v14, %v7504_v19  ;;  %4446 = vmatprep.subr.bf16.mxu1 %v6411_v9  ;;  %4697 = vmatprep.subr.bf16.mxu0 %v6441_v48  ;;  %v6421_v48 = vld [vmem:[%s9524_s1 + $0x500] ss:$8 sps:$4 sm:$0xff]   ;;  %v6361_v14 = vld [vmem:[%s9525_s0 + $0x1d8] ss:$56 sps:$4 sm:$0xff]  }
 0x162   :  { %v3474_v28 = vpop.f32.mrf.mxu1  ;;  %v3725_v26 = vpop.f32.mrf.mxu0  ;;  %3995 = vmatmul.mubr.bf16.gmra.mxu1 %v6355_v58  ;;  %4246 = vmatmul.mubr.bf16.gmra.mxu0 %v6358_v11  ;;  %v6457_v32 = vld [vmem:[%s9524_s1 + $0x600] ss:$8 sps:$4 sm:$0xff]  }
 0x163   :  { %v7884_v22 = vadd.f32 %v3721_v1, %v3471_v4  ;;  %v3475_v36 = vadd.f32 %v3474_v28, %v7508_v21  ;;  %4004 = vmatprep.mubr.bf16.mxu1 %v6363_v34  ;;  %4255 = vmatprep.mubr.bf16.mxu0 %v6366_v50  ;;  %v6438_v21 = vld [vmem:[%s9524_s1 + $0x5f4] ss:$8 sps:$4 sm:$0xff]  }
 0x164   :  { %v3476_v19 = vpop.f32.mrf.mxu1  ;;  %v3727_v9 = vpop.f32.mrf.mxu0  ;;  %4447 = vmatpush1.bf16.msra.mxu1 %v6409_v40  ;;  %4698 = vmatpush1.bf16.msra.mxu0 %v6439_v15  ;;  %v6477_v28 = vld [vmem:[%s9524_s1 + $0x6b4] ss:$8 sps:$4 sm:$0xff]   ;;  %v6375_v15 = vld [vmem:[%s9525_s0 + $0x24c] ss:$56 sps:$4 sm:$0xff]  }
 0x165   :  { %v7893_v58 = vadd.f32 %v3725_v26, %v3475_v36  ;;  %v3477_v11 = vadd.f32 %v3476_v19, %v7512_v23  ;;  %4448 = vmatprep.subr.bf16.mxu1 %v6423_v63  ;;  %4699 = vmatprep.subr.bf16.mxu0 %v6459_v52  ;;  %v6364_v23 = vld [vmem:[%s9525_s0 + $0x1e0] ss:$56 sps:$4 sm:$0xff]   ;;  %v6378_v4 = vld [vmem:[%s9525_s0 + $0x254] ss:$56 sps:$4 sm:$0xff]  }
 0x166   :  { %v3478_v34 = vpop.f32.mrf.mxu1  ;;  %v3729_v50 = vpop.f32.mrf.mxu0  ;;  %v6436_v26 = vld [vmem:[%s9524_s1 + $0x5f0] ss:$8 sps:$4 sm:$0xff]  }
 0x167   :  { %v7908_v1 = vadd.f32 %v3727_v9, %v3477_v11  ;;  %v3479_v40 = vadd.f32 %v3478_v34, %v7522_v27  ;;  %v6475_v27 = vld [vmem:[%s9524_s1 + $0x6b0] ss:$8 sps:$4 sm:$0xff]   ;;  %v6450_v9 = vld [vmem:[%s9524_s1 + $0x5e4] ss:$8 sps:$4 sm:$0xff]  }
 0x168   :  { %v3480_v63 = vpop.f32.mrf.mxu1  ;;  %v3731_v52 = vpop.f32.mrf.mxu0  ;;  %4449 = vmatpush1.bf16.msra.mxu1 %v6421_v48  ;;  %4700 = vmatpush1.bf16.msra.mxu0 %v6457_v32  ;;  %v6492_v48 = vld [vmem:[%s9524_s1 + $0x6a4] ss:$8 sps:$4 sm:$0xff]  }
 0x169   :  { %v7923_v36 = vadd.f32 %v3729_v50, %v3479_v40  ;;  %v3481_v19 = vadd.f32 %v3480_v63, %v7532_v31  ;;  %4450 = vmatprep.subr.bf16.mxu1 %v6438_v21  ;;  %4709 = vmatprep.subr.bf16.mxu0 %v6477_v28  ;;  %v6448_v28 = vld [vmem:[%s9524_s1 + $0x5e0] ss:$8 sps:$4 sm:$0xff]  }
 0x16a   :  { %v3484_v11 = vpop.f32.mrf.mxu1  ;;  %v3735_v32 = vpop.f32.mrf.mxu0  ;;  %4005 = vmatmul.mubr.bf16.gmra.mxu1 %v6361_v14  ;;  %4256 = vmatmul.mubr.bf16.gmra.mxu0 %v6364_v23  ;;  %v6490_v40 = vld [vmem:[%s9524_s1 + $0x6a0] ss:$8 sps:$4 sm:$0xff]  }
 0x16b   :  { %v7932_v34 = vadd.f32 %v3731_v52, %v3481_v19  ;;  %v3485_v50 = vadd.f32 %v3484_v11, %v7536_v33  ;;  %4014 = vmatprep.mubr.bf16.mxu1 %v6375_v15  ;;  %4265 = vmatprep.mubr.bf16.mxu0 %v6378_v4  ;;  %v6462_v33 = vld [vmem:[%s9524_s1 + $0x5d4] ss:$8 sps:$4 sm:$0xff]   ;;  %v6373_v52 = vld [vmem:[%s9525_s0 + $0x248] ss:$56 sps:$4 sm:$0xff]  }
 0x16c   :  { %v3486_v31 = vpop.f32.mrf.mxu1  ;;  %v3737_v21 = vpop.f32.mrf.mxu0  ;;  %4451 = vmatpush2.bf16.msra.mxu1 %v6436_v26  ;;  %4710 = vmatpush2.bf16.msra.mxu0 %v6475_v27  ;;  %v6510_v15 = vld [vmem:[%s9524_s1 + $0x694] ss:$8 sps:$4 sm:$0xff]  }
 0x16d   :  { %v7941_v14 = vadd.f32 %v3735_v32, %v3485_v50  ;;  %v3487_v23 = vadd.f32 %v3486_v31, %v7540_v35  ;;  %4452 = vmatprep.subr.bf16.mxu1 %v6450_v9  ;;  %4711 = vmatprep.subr.bf16.mxu0 %v6492_v48  ;;  %v6376_v35 = vld [vmem:[%s9525_s0 + $0x250] ss:$56 sps:$4 sm:$0xff]   ;;  %v6387_v19 = vld [vmem:[%s9525_s0 + $0x2bc] ss:$56 sps:$4 sm:$0xff]  }
 0x16e   :  { %v3488_v4 = vpop.f32.mrf.mxu1  ;;  %v3739_v63 = vpop.f32.mrf.mxu0  ;;  %v6390_v9 = vld [vmem:[%s9525_s0 + $0x2c4] ss:$56 sps:$4 sm:$0xff]   ;;  %v6460_v32 = vld [vmem:[%s9524_s1 + $0x5d0] ss:$8 sps:$4 sm:$0xff]  }
 0x16f   :  { %v7956_v26 = vadd.f32 %v3737_v21, %v3487_v23  ;;  %v3489_v27 = vadd.f32 %v3488_v4, %v7550_v39  ;;  %v6508_v39 = vld [vmem:[%s9524_s1 + $0x690] ss:$8 sps:$4 sm:$0xff]   ;;  %v6480_v21 = vld [vmem:[%s9524_s1 + $0x5c4] ss:$8 sps:$4 sm:$0xff]  }
 0x170   :  { %v3490_v48 = vpop.f32.mrf.mxu1  ;;  %v3741_v11 = vpop.f32.mrf.mxu0  ;;  %4453 = vmatpush2.bf16.msra.mxu1 %v6448_v28  ;;  %4712 = vmatpush2.bf16.msra.mxu0 %v6490_v40  ;;  %v6528_v28 = vld [vmem:[%s9524_s1 + $0x684] ss:$8 sps:$4 sm:$0xff]  }
 0x171   :  { %v7971_v50 = vadd.f32 %v3739_v63, %v3489_v27  ;;  %v3491_v31 = vadd.f32 %v3490_v48, %v7560_v43  ;;  %4454 = vmatprep.subr.bf16.mxu1 %v6462_v33  ;;  %4713 = vmatprep.subr.bf16.mxu0 %v6510_v15  ;;  %v6478_v15 = vld [vmem:[%s9524_s1 + $0x5c0] ss:$8 sps:$4 sm:$0xff]   ;;  %v6385_v48 = vld [vmem:[%s9525_s0 + $0x2b8] ss:$56 sps:$4 sm:$0xff]  }
 0x172   :  { %v3494_v23 = vpop.f32.mrf.mxu1  ;;  %v3745_v40 = vpop.f32.mrf.mxu0  ;;  %4015 = vmatmul.mubr.bf16.gmra.mxu1 %v6373_v52  ;;  %4266 = vmatmul.mubr.bf16.gmra.mxu0 %v6376_v35  ;;  %v6526_v27 = vld [vmem:[%s9524_s1 + $0x680] ss:$8 sps:$4 sm:$0xff]  }
 0x173   :  { %v7980_v4 = vadd.f32 %v3741_v11, %v3491_v31  ;;  %v3495_v63 = vadd.f32 %v3494_v23, %v7564_v45  ;;  %4024 = vmatprep.mubr.bf16.mxu1 %v6387_v19  ;;  %4275 = vmatprep.mubr.bf16.mxu0 %v6390_v9  ;;  %v6489_v45 = vld [vmem:[%s9524_s1 + $0x5b4] ss:$8 sps:$4 sm:$0xff]   ;;  %v6388_v11 = vld [vmem:[%s9525_s0 + $0x2c0] ss:$56 sps:$4 sm:$0xff]  }
 0x174   :  { %v3496_v43 = vpop.f32.mrf.mxu1  ;;  %v3747_v33 = vpop.f32.mrf.mxu0  ;;  %4455 = vmatpush2.bf16.msra.mxu1 %v6460_v32  ;;  %4714 = vmatpush2.bf16.msra.mxu0 %v6508_v39  ;;  %v6393_v39 = vld [vmem:[%s9525_s0 + $0x32c] ss:$56 sps:$4 sm:$0xff]   ;;  %v6487_v23 = vld [vmem:[%s9524_s1 + $0x5b0] ss:$8 sps:$4 sm:$0xff]  }
 0x175   :  { %v7989_v52 = vadd.f32 %v3745_v40, %v3495_v63  ;;  %v3497_v35 = vadd.f32 %v3496_v43, %v7568_v47  ;;  %4456 = vmatprep.subr.bf16.mxu1 %v6480_v21  ;;  %4715 = vmatprep.subr.bf16.mxu0 %v6528_v28  ;;  %v6396_v31 = vld [vmem:[%s9525_s0 + $0x334] ss:$56 sps:$4 sm:$0xff]  }
 0x176   :  { %v3498_v19 = vpop.f32.mrf.mxu1  ;;  %v3749_v9 = vpop.f32.mrf.mxu0  ;;  %v6507_v63 = vld [vmem:[%s9524_s1 + $0x5a4] ss:$8 sps:$4 sm:$0xff]  }
 0x177   :  { %v8001_v32 = vadd.f32 %v3747_v33, %v3497_v35  ;;  %v3499_v47 = vadd.f32 %v3498_v19, %v7578_v51 }
 0x178   :  { %v3500_v21 = vpop.f32.mrf.mxu1  ;;  %v3751_v28 = vpop.f32.mrf.mxu0  ;;  %4457 = vmatpush2.bf16.msra.mxu1 %v6478_v15  ;;  %4716 = vmatpush2.bf16.msra.mxu0 %v6526_v27 }
 0x179   :  { %v8013_v40 = vadd.f32 %v3749_v9, %v3499_v47  ;;  %v3501_v51 = vadd.f32 %v3500_v21, %v7588_v55  ;;  %4458 = vmatprep.subr.bf16.mxu1 %v6489_v45  ;;  %v6505_v55 = vld [vmem:[%s9524_s1 + $0x5a0] ss:$8 sps:$4 sm:$0xff]  }
 0x17a   :  { %v3504_v43 = vpop.f32.mrf.mxu1  ;;  %v3755_v33 = vpop.f32.mrf.mxu0  ;;  %4025 = vmatmul.mubr.bf16.gmra.mxu1 %v6385_v48  ;;  %4276 = vmatmul.mubr.bf16.gmra.mxu0 %v6388_v11  ;;  %v6519_v48 = vld [vmem:[%s9524_s1 + $0x594] ss:$8 sps:$4 sm:$0xff]   ;;  %v6391_v47 = vld [vmem:[%s9525_s0 + $0x328] ss:$56 sps:$4 sm:$0xff]  }
 0x17b   :  { %v8019_v35 = vadd.f32 %v3751_v28, %v3501_v51  ;;  %v3505_v15 = vadd.f32 %v3504_v43, %v7592_v57  ;;  %4034 = vmatprep.mubr.bf16.mxu1 %v6393_v39  ;;  %4285 = vmatprep.mubr.bf16.mxu0 %v6396_v31  ;;  %v6394_v39 = vld [vmem:[%s9525_s0 + $0x330] ss:$56 sps:$4 sm:$0xff]   ;;  %v6408_v28 = vld [vmem:[%s9525_s0 + $0x3a4] ss:$56 sps:$4 sm:$0xff]  }
 0x17c   :  { %v3506_v27 = vpop.f32.mrf.mxu1  ;;  %v3757_v19 = vpop.f32.mrf.mxu0  ;;  %4459 = vmatpush2.bf16.msra.mxu1 %v6487_v23 }
 0x17d   :  { %v8025_v45 = vadd.f32 %v3755_v33, %v3505_v15  ;;  %v3507_v9 = vadd.f32 %v3506_v27, %v7596_v59  ;;  %4460 = vmatprep.subr.bf16.mxu1 %v6507_v63  ;;  %v6405_v59 = vld [vmem:[%s9525_s0 + $0x39c] ss:$56 sps:$4 sm:$0xff]   ;;  %v6517_v63 = vld [vmem:[%s9524_s1 + $0x590] ss:$8 sps:$4 sm:$0xff]  }
 0x17e   :  { %v3508_v11 = vpop.f32.mrf.mxu1  ;;  %v3759_v57 = vpop.f32.mrf.mxu0 }
 0x17f   :  { %v8037_v31 = vadd.f32 %v3757_v19, %v3507_v9  ;;  %v3509_v21 = vadd.f32 %v3508_v11, %v7600_v61  ;;  %v6531_v61 = vld [vmem:[%s9524_s1 + $0x584] ss:$8 sps:$4 sm:$0xff]  }
 0x180   :  { %v3510_v23 = vpop.f32.mrf.mxu1  ;;  %v3761_v51 = vpop.f32.mrf.mxu0  ;;  %4461 = vmatpush2.bf16.msra.mxu1 %v6505_v55 }
 0x181   :  { %v8049_v43 = vadd.f32 %v3759_v57, %v3509_v21  ;;  %v3511_v33 = vadd.f32 %v3510_v23, %v7616_v3  ;;  %4462 = vmatprep.subr.bf16.mxu1 %v6519_v48  ;;  %v6529_v3 = vld [vmem:[%s9524_s1 + $0x580] ss:$8 sps:$4 sm:$0xff]   ;;  %v6414_v23 = vld [vmem:[%s9525_s0 + $0x40c] ss:$56 sps:$4 sm:$0xff]  }
 0x182   :  { %v3514_v15 = vpop.f32.mrf.mxu1  ;;  %v3765_v27 = vpop.f32.mrf.mxu0  ;;  %4035 = vmatmul.mubr.bf16.gmra.mxu1 %v6391_v47  ;;  %4286 = vmatmul.mubr.bf16.gmra.mxu0 %v6394_v39  ;;  %v6406_v21 = vld [vmem:[%s9525_s0 + $0x3a0] ss:$56 sps:$4 sm:$0xff]  }
 0x183   :  { %v8055_v19 = vadd.f32 %v3761_v51, %v3511_v33  ;;  %v3515_v55 = vadd.f32 %v3514_v15, %v7620_v5  ;;  %4044 = vmatprep.mubr.bf16.mxu1 %v6405_v59  ;;  %4295 = vmatprep.mubr.bf16.mxu0 %v6408_v28  ;;  %v6403_v5 = vld [vmem:[%s9525_s0 + $0x398] ss:$56 sps:$4 sm:$0xff]  }
 0x184   :  { %v3516_v9 = vpop.f32.mrf.mxu1  ;;  %v3767_v11 = vpop.f32.mrf.mxu0  ;;  %4463 = vmatpush2.bf16.msra.mxu1 %v6517_v63 }
 0x185   :  { %v8061_v48 = vadd.f32 %v3765_v27, %v3515_v55  ;;  %v3517_v57 = vadd.f32 %v3516_v9, %v7624_v7  ;;  %4464 = vmatprep.subr.bf16.mxu1 %v6531_v61  ;;  %v6417_v7 = vld [vmem:[%s9525_s0 + $0x414] ss:$56 sps:$4 sm:$0xff]  }
 0x186   :  { %v3518_v47 = vpop.f32.mrf.mxu1  ;;  %v3769_v39 = vpop.f32.mrf.mxu0 }
 0x187   :  { %v8070_v59 = vadd.f32 %v3767_v11, %v3517_v57  ;;  %v3519_v28 = vadd.f32 %v3518_v47, %v7628_v13 }
 0x188   :  { %v3520_v51 = vpop.f32.mrf.mxu1  ;;  %v3771_v63 = vpop.f32.mrf.mxu0  ;;  %4465 = vmatpush2.bf16.msra.mxu1 %v6529_v3 }
 0x189   :  { %v8079_v33 = vadd.f32 %v3769_v39, %v3519_v28  ;;  %v3521_v61 = vadd.f32 %v3520_v51, %v7644_v29  ;;  %v6412_v29 = vld [vmem:[%s9525_s0 + $0x408] ss:$56 sps:$4 sm:$0xff]   ;;  %v6426_v28 = vld [vmem:[%s9525_s0 + $0x47c] ss:$56 sps:$4 sm:$0xff]  }
 0x18a   :  { %v3524_v15 = vpop.f32.mrf.mxu1  ;;  %v3775_v27 = vpop.f32.mrf.mxu0  ;;  %4045 = vmatmul.mubr.bf16.gmra.mxu1 %v6403_v5  ;;  %4296 = vmatmul.mubr.bf16.gmra.mxu0 %v6406_v21  ;;  %v6415_v5 = vld [vmem:[%s9525_s0 + $0x410] ss:$56 sps:$4 sm:$0xff]  }
 0x18b   :  { %v8082_v13 = vadd.f32 %v3771_v63, %v3521_v61  ;;  %v3525_v55 = vadd.f32 %v3524_v15, %v7648_v37  ;;  %4054 = vmatprep.mubr.bf16.mxu1 %v6414_v23  ;;  %4305 = vmatprep.mubr.bf16.mxu0 %v6417_v7 }
 0x18c   :  { %v3526_v9 = vpop.f32.mrf.mxu1  ;;  %v3777_v11 = vpop.f32.mrf.mxu0 }
 0x18d   :  { %v8085_v57 = vadd.f32 %v3775_v27, %v3525_v55  ;;  %v3527_v3 = vadd.f32 %v3526_v9, %v7652_v41  ;;  %v6429_v41 = vld [vmem:[%s9525_s0 + $0x484] ss:$56 sps:$4 sm:$0xff]  }
 0x18e   :  { %v3528_v47 = vpop.f32.mrf.mxu1  ;;  %v3779_v39 = vpop.f32.mrf.mxu0 }
 0x18f   :  { %v8094_v21 = vadd.f32 %v3777_v11, %v3527_v3  ;;  %v3529_v37 = vadd.f32 %v3528_v47, %v7662_v53 }
 0x190   :  { %v3530_v23 = vpop.f32.mrf.mxu1  ;;  %v3781_v7 = vpop.f32.mrf.mxu0 }
 0x191   :  { %v8103_v51 = vadd.f32 %v3779_v39, %v3529_v37  ;;  %v3531_v63 = vadd.f32 %v3530_v23, %v7672_v17  ;;  %v6424_v17 = vld [vmem:[%s9525_s0 + $0x478] ss:$56 sps:$4 sm:$0xff]   ;;  %v6432_v37 = vld [vmem:[%s9525_s0 + $0x4ec] ss:$56 sps:$4 sm:$0xff]  }
 0x192   :  { %v3534_v61 = vpop.f32.mrf.mxu1  ;;  %v3785_v15 = vpop.f32.mrf.mxu0  ;;  %4055 = vmatmul.mubr.bf16.gmra.mxu1 %v6412_v29  ;;  %4306 = vmatmul.mubr.bf16.gmra.mxu0 %v6415_v5  ;;  %v6427_v29 = vld [vmem:[%s9525_s0 + $0x480] ss:$56 sps:$4 sm:$0xff]  }
 0x193   :  { %v8106_v27 = vadd.f32 %v3781_v7, %v3531_v63  ;;  %v3535_v53 = vadd.f32 %v3534_v61, %v7676_v25  ;;  %4064 = vmatprep.mubr.bf16.mxu1 %v6426_v28  ;;  %4315 = vmatprep.mubr.bf16.mxu0 %v6429_v41 }
 0x194   :  { %v3536_v55 = vpop.f32.mrf.mxu1  ;;  %v3787_v9 = vpop.f32.mrf.mxu0 }
 0x195   :  { %v8109_v11 = vadd.f32 %v3785_v15, %v3535_v53  ;;  %v3537_v3 = vadd.f32 %v3536_v55, %v7680_v54  ;;  %v6435_v54 = vld [vmem:[%s9525_s0 + $0x4f4] ss:$56 sps:$4 sm:$0xff]  }
 0x196   :  { %v3538_v47 = vpop.f32.mrf.mxu1  ;;  %v3789_v39 = vpop.f32.mrf.mxu0 }
 0x197   :  { %v8118_v5 = vadd.f32 %v3787_v9, %v3537_v3  ;;  %v3539_v25 = vadd.f32 %v3538_v47, %v7684_v38 }
 0x198   :  { %v3540_v28 = vpop.f32.mrf.mxu1  ;;  %v3791_v41 = vpop.f32.mrf.mxu0 }
 0x199   :  { %v8127_v23 = vadd.f32 %v3789_v39, %v3539_v25  ;;  %v3541_v7 = vadd.f32 %v3540_v28, %v7694_v0  ;;  %v6430_v0 = vld [vmem:[%s9525_s0 + $0x4e8] ss:$56 sps:$4 sm:$0xff]   ;;  %v6444_v25 = vld [vmem:[%s9525_s0 + $0x55c] ss:$56 sps:$4 sm:$0xff]  }
 0x19a   :  { %v3544_v63 = vpop.f32.mrf.mxu1  ;;  %v3795_v61 = vpop.f32.mrf.mxu0  ;;  %4065 = vmatmul.mubr.bf16.gmra.mxu1 %v6424_v17  ;;  %4316 = vmatmul.mubr.bf16.gmra.mxu0 %v6427_v29  ;;  %v6433_v17 = vld [vmem:[%s9525_s0 + $0x4f0] ss:$56 sps:$4 sm:$0xff]  }
 0x19b   :  { %v8130_v15 = vadd.f32 %v3791_v41, %v3541_v7  ;;  %v3545_v38 = vadd.f32 %v3544_v63, %v7698_v2  ;;  %4074 = vmatprep.mubr.bf16.mxu1 %v6432_v37  ;;  %4325 = vmatprep.mubr.bf16.mxu0 %v6435_v54 }
 0x19c   :  { %v3546_v53 = vpop.f32.mrf.mxu1  ;;  %v3797_v55 = vpop.f32.mrf.mxu0 }
 0x19d   :  { %v8133_v9 = vadd.f32 %v3795_v61, %v3545_v38  ;;  %v3547_v3 = vadd.f32 %v3546_v53, %v7702_v49  ;;  %v6447_v49 = vld [vmem:[%s9525_s0 + $0x564] ss:$56 sps:$4 sm:$0xff]  }
 0x19e   :  { %v3548_v47 = vpop.f32.mrf.mxu1  ;;  %v3799_v39 = vpop.f32.mrf.mxu0 }
 0x19f   :  { %v8142_v29 = vadd.f32 %v3797_v55, %v3547_v3  ;;  %v3549_v2 = vadd.f32 %v3548_v47, %v7706_v30 }
 0x1a0   :  { %v3550_v37 = vpop.f32.mrf.mxu1  ;;  %v3801_v54 = vpop.f32.mrf.mxu0 }
 0x1a1   :  { %v8151_v28 = vadd.f32 %v3799_v39, %v3549_v2  ;;  %v3551_v41 = vadd.f32 %v3550_v37, %v7722_v18  ;;  %v6442_v18 = vld [vmem:[%s9525_s0 + $0x558] ss:$56 sps:$4 sm:$0xff]   ;;  %v6453_v2 = vld [vmem:[%s9525_s0 + $0x5cc] ss:$56 sps:$4 sm:$0xff]  }
 0x1a2   :  { %v3554_v7 = vpop.f32.mrf.mxu1  ;;  %v3805_v63 = vpop.f32.mrf.mxu0  ;;  %4075 = vmatmul.mubr.bf16.gmra.mxu1 %v6430_v0  ;;  %4326 = vmatmul.mubr.bf16.gmra.mxu0 %v6433_v17  ;;  %v6445_v0 = vld [vmem:[%s9525_s0 + $0x560] ss:$56 sps:$4 sm:$0xff]  }
 0x1a3   :  { %v8154_v61 = vadd.f32 %v3801_v54, %v3551_v41  ;;  %v3555_v30 = vadd.f32 %v3554_v7, %v7738_v62  ;;  %4084 = vmatprep.mubr.bf16.mxu1 %v6444_v25  ;;  %4335 = vmatprep.mubr.bf16.mxu0 %v6447_v49 }
 0x1a4   :  { %v3556_v38 = vpop.f32.mrf.mxu1  ;;  %v3807_v53 = vpop.f32.mrf.mxu0 }
 0x1a5   :  { %v8157_v55 = vadd.f32 %v3805_v63, %v3555_v30  ;;  %v3557_v3 = vadd.f32 %v3556_v38, %v7748_v56  ;;  %v6456_v56 = vld [vmem:[%s9525_s0 + $0x5d4] ss:$56 sps:$4 sm:$0xff]  }
 0x1a6   :  { %v3558_v47 = vpop.f32.mrf.mxu1  ;;  %v3809_v39 = vpop.f32.mrf.mxu0 }
 0x1a7   :  { %v8166_v17 = vadd.f32 %v3807_v53, %v3557_v3  ;;  %v3559_v62 = vadd.f32 %v3558_v47, %v7758_v8 }
 0x1a8   :  { %v3560_v25 = vpop.f32.mrf.mxu1  ;;  %v3811_v49 = vpop.f32.mrf.mxu0 }
 0x1a9   :  { %v8175_v37 = vadd.f32 %v3809_v39, %v3559_v62  ;;  %v3561_v54 = vadd.f32 %v3560_v25, %v7774_v6  ;;  %v6451_v6 = vld [vmem:[%s9525_s0 + $0x5c8] ss:$56 sps:$4 sm:$0xff]   ;;  %v6465_v62 = vld [vmem:[%s9525_s0 + $0x63c] ss:$56 sps:$4 sm:$0xff]  }
 0x1aa   :  { %v3564_v41 = vpop.f32.mrf.mxu1  ;;  %v3815_v7 = vpop.f32.mrf.mxu0  ;;  %4085 = vmatmul.mubr.bf16.gmra.mxu1 %v6442_v18  ;;  %4336 = vmatmul.mubr.bf16.gmra.mxu0 %v6445_v0  ;;  %v6454_v18 = vld [vmem:[%s9525_s0 + $0x5d0] ss:$56 sps:$4 sm:$0xff]  }
 0x1ab   :  { %v8178_v63 = vadd.f32 %v3811_v49, %v3561_v54  ;;  %v3565_v8 = vadd.f32 %v3564_v41, %v7790_v46  ;;  %4094 = vmatprep.mubr.bf16.mxu1 %v6453_v2  ;;  %4345 = vmatprep.mubr.bf16.mxu0 %v6456_v56 }
 0x1ac   :  { %v3566_v30 = vpop.f32.mrf.mxu1  ;;  %v3817_v38 = vpop.f32.mrf.mxu0 }
 0x1ad   :  { %v8181_v53 = vadd.f32 %v3815_v7, %v3565_v8  ;;  %v3567_v3 = vadd.f32 %v3566_v30, %v7794_v42  ;;  %v6468_v42 = vld [vmem:[%s9525_s0 + $0x644] ss:$56 sps:$4 sm:$0xff]  }
 0x1ae   :  { %v3568_v47 = vpop.f32.mrf.mxu1  ;;  %v3819_v39 = vpop.f32.mrf.mxu0 }
 0x1af   :  { %v8190_v0 = vadd.f32 %v3817_v38, %v3567_v3  ;;  %v3569_v46 = vadd.f32 %v3568_v47, %v7810_v60 }
 0x1b0   :  { %v3570_v2 = vpop.f32.mrf.mxu1  ;;  %v3821_v56 = vpop.f32.mrf.mxu0 }
 0x1b1   :  { %v8199_v25 = vadd.f32 %v3819_v39, %v3569_v46  ;;  %v3571_v49 = vadd.f32 %v3570_v2, %v7824_v44  ;;  %v6463_v44 = vld [vmem:[%s9525_s0 + $0x638] ss:$56 sps:$4 sm:$0xff]   ;;  %v6471_v46 = vld [vmem:[%s9525_s0 + $0x6ac] ss:$56 sps:$4 sm:$0xff]  }
 0x1b2   :  { %v3574_v54 = vpop.f32.mrf.mxu1  ;;  %v3825_v41 = vpop.f32.mrf.mxu0  ;;  %4095 = vmatmul.mubr.bf16.gmra.mxu1 %v6451_v6  ;;  %4346 = vmatmul.mubr.bf16.gmra.mxu0 %v6454_v18  ;;  %v6466_v6 = vld [vmem:[%s9525_s0 + $0x640] ss:$56 sps:$4 sm:$0xff]  }
 0x1b3   :  { %v8202_v7 = vadd.f32 %v3821_v56, %v3571_v49  ;;  %v3575_v60 = vadd.f32 %v3574_v54, %v7482_v10  ;;  %4104 = vmatprep.mubr.bf16.mxu1 %v6465_v62  ;;  %4355 = vmatprep.mubr.bf16.mxu0 %v6468_v42 }
 0x1b4   :  { %v3576_v8 = vpop.f32.mrf.mxu1  ;;  %v3827_v30 = vpop.f32.mrf.mxu0 }
 0x1b5   :  { %9569 = vst [vmem:[#allocation42_spill] sm:$0xff] %v8202_v7  ;;  %v8205_v38 = vadd.f32 %v3825_v41, %v3575_v60  ;;  %v3577_v3 = vadd.f32 %v3576_v8, %v7486_v12  ;;  %v6474_v12 = vld [vmem:[%s9525_s0 + $0x6b4] ss:$56 sps:$4 sm:$0xff]  }
 0x1b6   :  { %v3578_v47 = vpop.f32.mrf.mxu1  ;;  %v3829_v39 = vpop.f32.mrf.mxu0 }
 0x1b7   :  { %9570 = vst [vmem:[#allocation43_spill] sm:$0xff] %v8205_v38  ;;  %v8214_v18 = vadd.f32 %v3827_v30, %v3577_v3  ;;  %v3579_v10 = vadd.f32 %v3578_v47, %v7496_v16  ;;  %v9574_v16 = vld [vmem:[#allocation2_spill] sm:$0xff]  ;;  %v9576_v47 = vld [vmem:[#allocation3_spill] sm:$0xff] }
 0x1b8   :  { %v3580_v62 = vpop.f32.mrf.mxu1  ;;  %v3831_v42 = vpop.f32.mrf.mxu0  ;;  %v9621_v38 = vld [vmem:[#allocation26_spill] sm:$0xff] }
 0x1b9   :  { %9571 = vst [vmem:[#allocation44_spill] sm:$0xff] %v8214_v18  ;;  %v8223_v2 = vadd.f32 %v3829_v39, %v3579_v10  ;;  %v3581_v56 = vadd.f32 %v3580_v62, %v7506_v20  ;;  %v6469_v20 = vld [vmem:[%s9525_s0 + $0x6a8] ss:$56 sps:$4 sm:$0xff]   ;;  %v6483_v62 = vld [vmem:[%s9525_s0 + $0x71c] ss:$56 sps:$4 sm:$0xff]  }
 0x1ba   :  { %v3584_v49 = vpop.f32.mrf.mxu1  ;;  %v3835_v54 = vpop.f32.mrf.mxu0  ;;  %4105 = vmatmul.mubr.bf16.gmra.mxu1 %v6463_v44  ;;  %4356 = vmatmul.mubr.bf16.gmra.mxu0 %v6466_v6  ;;  %v6472_v44 = vld [vmem:[%s9525_s0 + $0x6b0] ss:$56 sps:$4 sm:$0xff]  }
 0x1bb   :  { %9572 = vst [vmem:[#allocation45_spill] sm:$0xff] %v8223_v2  ;;  %v8226_v41 = vadd.f32 %v3831_v42, %v3581_v56  ;;  %v3585_v60 = vadd.f32 %v3584_v49, %v9574_v16  ;;  %4114 = vmatprep.mubr.bf16.mxu1 %v6471_v46  ;;  %4365 = vmatprep.mubr.bf16.mxu0 %v6474_v12  ;;  %v9578_v46 = vld [vmem:[#allocation4_spill] sm:$0xff]  ;;  %v6486_v42 = vld [vmem:[%s9525_s0 + $0x724] ss:$56 sps:$4 sm:$0xff]  }
 0x1bc   :  { %v3586_v8 = vpop.f32.mrf.mxu1  ;;  %v3837_v30 = vpop.f32.mrf.mxu0  ;;  %v9580_v16 = vld [vmem:[#allocation5_spill] sm:$0xff] }
 0x1bd   :  { %9573 = vst [vmem:[#allocation46_spill] sm:$0xff] %v8226_v41  ;;  %v8229_v3 = vadd.f32 %v3835_v54, %v3585_v60  ;;  %v3587_v18 = vadd.f32 %v3586_v8, %v9576_v47  ;;  %v9584_v41 = vld [vmem:[#allocation7_spill] sm:$0xff] }
 0x1be   :  { %v3588_v39 = vpop.f32.mrf.mxu1  ;;  %v3839_v10 = vpop.f32.mrf.mxu0 }
 0x1bf   :  { %9575 = vst [vmem:[#allocation2_spill] sm:$0xff] %v8229_v3  ;;  %v8238_v6 = vadd.f32 %v3837_v30, %v3587_v18  ;;  %v3589_v12 = vadd.f32 %v3588_v39, %v9578_v46  ;;  %v9582_v30 = vld [vmem:[#allocation6_spill] sm:$0xff] }
 0x1c0   :  { %v3590_v56 = vpop.f32.mrf.mxu1  ;;  %v3841_v49 = vpop.f32.mrf.mxu0 }
 0x1c1   :  { %9577 = vst [vmem:[#allocation3_spill] sm:$0xff] %v8238_v6  ;;  %v8247_v54 = vadd.f32 %v3839_v10, %v3589_v12  ;;  %v3591_v60 = vadd.f32 %v3590_v56, %v9580_v16  ;;  %v6481_v56 = vld [vmem:[%s9525_s0 + $0x718] ss:$56 sps:$4 sm:$0xff]  }
 0x1c2   :  { %v3594_v8 = vpop.f32.mrf.mxu1  ;;  %v3845_v47 = vpop.f32.mrf.mxu0  ;;  %4115 = vmatmul.mubr.bf16.gmra.mxu1 %v6469_v20  ;;  %4366 = vmatmul.mubr.bf16.gmra.mxu0 %v6472_v44  ;;  %v6484_v20 = vld [vmem:[%s9525_s0 + $0x720] ss:$56 sps:$4 sm:$0xff]  }
 0x1c3   :  { %9579 = vst [vmem:[#allocation4_spill] sm:$0xff] %v8247_v54  ;;  %v8250_v18 = vadd.f32 %v3841_v49, %v3591_v60  ;;  %v3595_v39 = vadd.f32 %v3594_v8, %v9582_v30  ;;  %4124 = vmatprep.mubr.bf16.mxu1 %v6483_v62  ;;  %4375 = vmatprep.mubr.bf16.mxu0 %v6486_v42  ;;  %v9586_v62 = vld [vmem:[#allocation8_spill] sm:$0xff]  ;;  %v6495_v49 = vld [vmem:[%s9525_s0 + $0x78c] ss:$56 sps:$4 sm:$0xff]  }
 0x1c4   :  { %v3596_v46 = vpop.f32.mrf.mxu1  ;;  %v3847_v6 = vpop.f32.mrf.mxu0 }
 0x1c5   :  { %9581 = vst [vmem:[#allocation5_spill] sm:$0xff] %v8250_v18  ;;  %v8253_v3 = vadd.f32 %v3845_v47, %v3595_v39  ;;  %v3597_v2 = vadd.f32 %v3596_v46, %v9584_v41  ;;  %v6498_v41 = vld [vmem:[%s9525_s0 + $0x794] ss:$56 sps:$4 sm:$0xff]   ;;  %v9588_v47 = vld [vmem:[#allocation9_spill] sm:$0xff] }
 0x1c6   :  { %v3598_v10 = vpop.f32.mrf.mxu1  ;;  %v3849_v12 = vpop.f32.mrf.mxu0  ;;  %v9592_v18 = vld [vmem:[#allocation11_spill] sm:$0xff] }
 0x1c7   :  { %9583 = vst [vmem:[#allocation6_spill] sm:$0xff] %v8253_v3  ;;  %v8262_v44 = vadd.f32 %v3847_v6, %v3597_v2  ;;  %v3599_v42 = vadd.f32 %v3598_v10, %v9586_v62  ;;  %v9590_v6 = vld [vmem:[#allocation10_spill] sm:$0xff] }
 0x1c8   :  { %v3600_v16 = vpop.f32.mrf.mxu1  ;;  %v3851_v60 = vpop.f32.mrf.mxu0 }
 0x1c9   :  { %9585 = vst [vmem:[#allocation7_spill] sm:$0xff] %v8262_v44  ;;  %v8271_v8 = vadd.f32 %v3849_v12, %v3599_v42  ;;  %v3601_v30 = vadd.f32 %v3600_v16, %v9588_v47  ;;  %v6493_v16 = vld [vmem:[%s9525_s0 + $0x788] ss:$56 sps:$4 sm:$0xff]  }
 0x1ca   :  { %v3604_v39 = vpop.f32.mrf.mxu1  ;;  %v3855_v46 = vpop.f32.mrf.mxu0  ;;  %4125 = vmatmul.mubr.bf16.gmra.mxu1 %v6481_v56  ;;  %4376 = vmatmul.mubr.bf16.gmra.mxu0 %v6484_v20  ;;  %v6496_v56 = vld [vmem:[%s9525_s0 + $0x790] ss:$56 sps:$4 sm:$0xff]  }
 0x1cb   :  { %9587 = vst [vmem:[#allocation8_spill] sm:$0xff] %v8271_v8  ;;  %v8274_v2 = vadd.f32 %v3851_v60, %v3601_v30  ;;  %v3605_v10 = vadd.f32 %v3604_v39, %v9590_v6  ;;  %4134 = vmatprep.mubr.bf16.mxu1 %v6495_v49  ;;  %4385 = vmatprep.mubr.bf16.mxu0 %v6498_v41  ;;  %v9594_v49 = vld [vmem:[#allocation12_spill] sm:$0xff] }
 0x1cc   :  { %v3606_v62 = vpop.f32.mrf.mxu1  ;;  %v3857_v44 = vpop.f32.mrf.mxu0  ;;  %v6501_v60 = vld [vmem:[%s9525_s0 + $0x7fc] ss:$56 sps:$4 sm:$0xff]  }
 0x1cd   :  { %9589 = vst [vmem:[#allocation9_spill] sm:$0xff] %v8274_v2  ;;  %v8277_v3 = vadd.f32 %v3855_v46, %v3605_v10  ;;  %v3607_v54 = vadd.f32 %v3606_v62, %v9592_v18  ;;  %v6504_v18 = vld [vmem:[%s9525_s0 + $0x804] ss:$56 sps:$4 sm:$0xff]   ;;  %v9600_v2 = vld [vmem:[#allocation15_spill] sm:$0xff] }
 0x1ce   :  { %v3608_v12 = vpop.f32.mrf.mxu1  ;;  %v3859_v42 = vpop.f32.mrf.mxu0  ;;  %v9596_v46 = vld [vmem:[#allocation13_spill] sm:$0xff] }
 0x1cf   :  { %9591 = vst [vmem:[#allocation10_spill] sm:$0xff] %v8277_v3  ;;  %v8286_v20 = vadd.f32 %v3857_v44, %v3607_v54  ;;  %v3609_v41 = vadd.f32 %v3608_v12, %v9594_v49  ;;  %v9598_v44 = vld [vmem:[#allocation14_spill] sm:$0xff] }
 0x1d0   :  { %v3610_v47 = vpop.f32.mrf.mxu1  ;;  %v3861_v30 = vpop.f32.mrf.mxu0 }
 0x1d1   :  { %9593 = vst [vmem:[#allocation11_spill] sm:$0xff] %v8286_v20  ;;  %v8295_v39 = vadd.f32 %v3859_v42, %v3609_v41  ;;  %v3611_v6 = vadd.f32 %v3610_v47, %v9596_v46  ;;  %v6499_v47 = vld [vmem:[%s9525_s0 + $0x7f8] ss:$56 sps:$4 sm:$0xff]  }
 0x1d2   :  { %v3614_v10 = vpop.f32.mrf.mxu1  ;;  %v3865_v62 = vpop.f32.mrf.mxu0  ;;  %4135 = vmatmul.mubr.bf16.gmra.mxu1 %v6493_v16  ;;  %4386 = vmatmul.mubr.bf16.gmra.mxu0 %v6496_v56  ;;  %v6502_v16 = vld [vmem:[%s9525_s0 + $0x800] ss:$56 sps:$4 sm:$0xff]  }
 0x1d3   :  { %9595 = vst [vmem:[#allocation12_spill] sm:$0xff] %v8295_v39  ;;  %v8298_v54 = vadd.f32 %v3861_v30, %v3611_v6  ;;  %v3615_v12 = vadd.f32 %v3614_v10, %v9598_v44  ;;  %4144 = vmatprep.mubr.bf16.mxu1 %v6501_v60  ;;  %4395 = vmatprep.mubr.bf16.mxu0 %v6504_v18  ;;  %v9602_v60 = vld [vmem:[#allocation16_spill] sm:$0xff]  ;;  %v6513_v30 = vld [vmem:[%s9525_s0 + $0x86c] ss:$56 sps:$4 sm:$0xff]  }
 0x1d4   :  { %v3616_v49 = vpop.f32.mrf.mxu1  ;;  %v3867_v20 = vpop.f32.mrf.mxu0 }
 0x1d5   :  { %9597 = vst [vmem:[#allocation13_spill] sm:$0xff] %v8298_v54  ;;  %v8301_v3 = vadd.f32 %v3865_v62, %v3615_v12  ;;  %v3617_v8 = vadd.f32 %v3616_v49, %v9600_v2  ;;  %v6516_v2 = vld [vmem:[%s9525_s0 + $0x874] ss:$56 sps:$4 sm:$0xff]   ;;  %v9604_v62 = vld [vmem:[#allocation17_spill] sm:$0xff] }
 0x1d6   :  { %v3618_v42 = vpop.f32.mrf.mxu1  ;;  %v3869_v41 = vpop.f32.mrf.mxu0  ;;  %v9608_v54 = vld [vmem:[#allocation19_spill] sm:$0xff] }
 0x1d7   :  { %9599 = vst [vmem:[#allocation14_spill] sm:$0xff] %v8301_v3  ;;  %v8310_v56 = vadd.f32 %v3867_v20, %v3617_v8  ;;  %v3619_v18 = vadd.f32 %v3618_v42, %v9602_v60  ;;  %v9606_v20 = vld [vmem:[#allocation18_spill] sm:$0xff] }
 0x1d8   :  { %v3620_v46 = vpop.f32.mrf.mxu1  ;;  %v3871_v6 = vpop.f32.mrf.mxu0 }
 0x1d9   :  { %9601 = vst [vmem:[#allocation15_spill] sm:$0xff] %v8310_v56  ;;  %v8319_v10 = vadd.f32 %v3869_v41, %v3619_v18  ;;  %v3621_v44 = vadd.f32 %v3620_v46, %v9604_v62  ;;  %v6511_v46 = vld [vmem:[%s9525_s0 + $0x868] ss:$56 sps:$4 sm:$0xff]  }
 0x1da   :  { %v3624_v12 = vpop.f32.mrf.mxu1  ;;  %v3875_v49 = vpop.f32.mrf.mxu0  ;;  %4145 = vmatmul.mubr.bf16.gmra.mxu1 %v6499_v47  ;;  %4396 = vmatmul.mubr.bf16.gmra.mxu0 %v6502_v16  ;;  %v6514_v47 = vld [vmem:[%s9525_s0 + $0x870] ss:$56 sps:$4 sm:$0xff]  }
 0x1db   :  { %9603 = vst [vmem:[#allocation16_spill] sm:$0xff] %v8319_v10  ;;  %v8322_v8 = vadd.f32 %v3871_v6, %v3621_v44  ;;  %v3625_v42 = vadd.f32 %v3624_v12, %v9606_v20  ;;  %4154 = vmatprep.mubr.bf16.mxu1 %v6513_v30  ;;  %4405 = vmatprep.mubr.bf16.mxu0 %v6516_v2  ;;  %v9610_v30 = vld [vmem:[#allocation20_spill] sm:$0xff] }
 0x1dc   :  { %v3626_v60 = vpop.f32.mrf.mxu1  ;;  %v3877_v56 = vpop.f32.mrf.mxu0  ;;  %v6522_v6 = vld [vmem:[%s9525_s0 + $0x8dc] ss:$56 sps:$4 sm:$0xff]  }
 0x1dd   :  { %9605 = vst [vmem:[#allocation17_spill] sm:$0xff] %v8322_v8  ;;  %v8325_v3 = vadd.f32 %v3875_v49, %v3625_v42  ;;  %v3627_v39 = vadd.f32 %v3626_v60, %v9608_v54  ;;  %v6525_v54 = vld [vmem:[%s9525_s0 + $0x8e4] ss:$56 sps:$4 sm:$0xff]  }
 0x1de   :  { %v3628_v41 = vpop.f32.mrf.mxu1  ;;  %v3879_v18 = vpop.f32.mrf.mxu0  ;;  %v9612_v49 = vld [vmem:[#allocation21_spill] sm:$0xff] }
 0x1df   :  { %9607 = vst [vmem:[#allocation18_spill] sm:$0xff] %v8325_v3  ;;  %v8334_v16 = vadd.f32 %v3877_v56, %v3627_v39  ;;  %v3629_v2 = vadd.f32 %v3628_v41, %v9610_v30  ;;  %v9614_v56 = vld [vmem:[#allocation22_spill] sm:$0xff]  ;;  %v315_v3 = vld [vmem:[%s9525_s0 + $0x948] sm:$0x11] }
 0x1e0   :  { %v3630_v62 = vpop.f32.mrf.mxu1  ;;  %v3881_v44 = vpop.f32.mrf.mxu0 }
 0x1e1   :  { %9609 = vst [vmem:[#allocation19_spill] sm:$0xff] %v8334_v16  ;;  %v8343_v12 = vadd.f32 %v3879_v18, %v3629_v2  ;;  %v3631_v20 = vadd.f32 %v3630_v62, %v9612_v49  ;;  %v316_v18 = vld [vmem:[%s9525_s0 + $0x950] sm:$0x11] }
 0x1e2   :  { %v3634_v42 = vpop.f32.mrf.mxu1  ;;  %v3885_v60 = vpop.f32.mrf.mxu0  ;;  %4155 = vmatmul.mubr.bf16.gmra.mxu1 %v6511_v46  ;;  %4406 = vmatmul.mubr.bf16.gmra.mxu0 %v6514_v47  ;;  %v9616_v46 = vld [vmem:[#allocation23_spill] sm:$0xff] }
 0x1e3   :  { %9611 = vst [vmem:[#allocation20_spill] sm:$0xff] %v8343_v12  ;;  %v8346_v39 = vadd.f32 %v3881_v44, %v3631_v20  ;;  %v3635_v41 = vadd.f32 %v3634_v42, %v9614_v56  ;;  %4164 = vmatprep.mubr.bf16.mxu1 %v6522_v6  ;;  %4415 = vmatprep.mubr.bf16.mxu0 %v6525_v54  ;;  %v6520_v6 = vld [vmem:[%s9525_s0 + $0x8d8] ss:$56 sps:$4 sm:$0xff]  }
 0x1e4   :  { %v3636_v30 = vpop.f32.mrf.mxu1  ;;  %v3887_v16 = vpop.f32.mrf.mxu0  ;;  %v6523_v54 = vld [vmem:[%s9525_s0 + $0x8e0] ss:$56 sps:$4 sm:$0xff]   ;;  %v9618_v20 = vld [vmem:[#allocation24_spill] sm:$0xff]  ;;  %v5610_v56 = vcombine.high %v315_v3, %v315_v3 }
 0x1e5   :  { %9613 = vst [vmem:[#allocation21_spill] sm:$0xff] %v8346_v39  ;;  %v8355_v2 = vadd.f32 %v3885_v60, %v3635_v41  ;;  %v3637_v47 = vadd.f32 %v3636_v30, %v9616_v46  ;;  %v5612_v39 = vcombine.high %v316_v18, %v316_v18  ;;  %v9620_v30 = vld [vmem:[#allocation25_spill] sm:$0xff] }
 0x1e6   :  { %v3638_v62 = vpop.f32.mrf.mxu1  ;;  %v3889_v44 = vpop.f32.mrf.mxu0 }
 0x1e7   :  { %9615 = vst [vmem:[#allocation22_spill] sm:$0xff] %v8355_v2  ;;  %v8364_v49 = vadd.f32 %v3887_v16, %v3637_v47  ;;  %v3639_v42 = vadd.f32 %v3638_v62, %v9618_v20  ;;  %v9622_v20 = vld [vmem:[#allocation27_spill] sm:$0xff] }
 0x1e8   :  { %v3640_v60 = vpop.f32.mrf.mxu1  ;;  %v3891_v41 = vpop.f32.mrf.mxu0 }
 0x1e9   :  { %9617 = vst [vmem:[#allocation23_spill] sm:$0xff] %v8364_v49  ;;  %v8367_v2 = vadd.f32 %v3889_v44, %v3639_v42  ;;  %v3641_v46 = vadd.f32 %v3640_v60, %v9620_v30  ;;  %v5611_v60 = vcombine.low %v316_v18, %v316_v18 }
 0x1ea   :  { %v3644_v12 = vpop.f32.mrf.mxu1  ;;  %v3895_v8 = vpop.f32.mrf.mxu0  ;;  %4165 = vmatmul.mubr.bf16.gmra.mxu1 %v6520_v6  ;;  %4416 = vmatmul.mubr.bf16.gmra.mxu0 %v6523_v54  ;;  %v9623_v6 = vld [vmem:[#allocation28_spill] sm:$0xff] }
 0x1eb   :  { %9619 = vst [vmem:[#allocation24_spill] sm:$0xff] %v8367_v2  ;;  %v8370_v10 = vadd.f32 %v3891_v41, %v3641_v46  ;;  %v3645_v7 = vadd.f32 %v3644_v12, %v9621_v38  ;;  %4174 = vmatprep.mubr.bf16.mxu1 %v5610_v56  ;;  %4425 = vmatprep.mubr.bf16.mxu0 %v5612_v39  ;;  %v6538_v38 = vld [vmem:[%s9525_s0 + $0x2c] ss:$56 sps:$4 sm:$0xff]   ;;  %v9625_v56 = vld [vmem:[#allocation29_spill] sm:$0xff] }
 0x1ec   :  { %v3646_v16 = vpop.f32.mrf.mxu1  ;;  %v3897_v47 = vpop.f32.mrf.mxu0  ;;  %v5609_v2 = vcombine.low %v315_v3, %v315_v3  ;;  %v6541_v12 = vld [vmem:[%s9525_s0 + $0x34] ss:$56 sps:$4 sm:$0xff]   ;;  %v9627_v46 = vld [vmem:[#allocation30_spill] sm:$0xff] }
 0x1ed   :  { %v8373_v62 = vadd.f32 %v3895_v8, %v3645_v7  ;;  %v3647_v49 = vadd.f32 %v3646_v16, %v9622_v20 }
 0x1ee   :  { %v3648_v44 = vpop.f32.mrf.mxu1  ;;  %v3899_v42 = vpop.f32.mrf.mxu0 }
 0x1ef   :  { %v8376_v30 = vadd.f32 %v3897_v47, %v3647_v49  ;;  %v3649_v54 = vadd.f32 %v3648_v44, %v9623_v6  ;;  %v9629_v6 = vld [vmem:[#allocation31_spill] sm:$0xff] }
 0x1f0   :  { %v3650_v7 = vpop.f32.mrf.mxu1  ;;  %v3901_v8 = vpop.f32.mrf.mxu0 }
 0x1f1   :  { %v8385_v39 = vadd.f32 %v3899_v42, %v3649_v54  ;;  %v3651_v3 = vadd.f32 %v3650_v7, %v9625_v56  ;;  %v6545_v56 = vld [vmem:[%s9525_s0 + $0xa4] ss:$56 sps:$4 sm:$0xff]  }
 0x1f2   :  { %v3654_v18 = vpop.f32.mrf.mxu1  ;;  %v3905_v49 = vpop.f32.mrf.mxu0  ;;  %4175 = vmatmul.mubr.bf16.gmra.mxu1 %v5609_v2  ;;  %4426 = vmatmul.mubr.bf16.gmra.mxu0 %v5611_v60  ;;  %v6536_v2 = vld [vmem:[%s9525_s0 + $0x28] ss:$56 sps:$4 sm:$0xff]  }
 0x1f3   :  { %9624 = vst [vmem:[#allocation25_spill] sm:$0xff] %v8385_v39  ;;  %v8388_v41 = vadd.f32 %v3901_v8, %v3651_v3  ;;  %v3655_v16 = vadd.f32 %v3654_v18, %v9627_v46  ;;  %4466 = vmatprep.mubr.bf16.mxu1 %v6538_v38  ;;  %5833 = vmatprep.mubr.msk.bf16.mxu0 %vm3112_vm0, %v6541_v12  ;;  %v6539_v60 = vld [vmem:[%s9525_s0 + $0x30] ss:$56 sps:$4 sm:$0xff]   ;;  %v6544_v8 = vld [vmem:[%s9525_s0 + $0x9c] ss:$56 sps:$4 sm:$0xff]  }
 0x1f4   :  { %v3656_v47 = vpop.f32.mrf.mxu1  ;;  %v3907_v20 = vpop.f32.mrf.mxu0  ;;  %v9631_v38 = vld [vmem:[#allocation32_spill] sm:$0xff]  ;;  %v9633_v46 = vld [vmem:[#allocation33_spill] sm:$0xff] }
 0x1f5   :  { %9626 = vst [vmem:[#allocation26_spill] sm:$0xff] %v8388_v41  ;;  %v8392_v44 = vadd.f32 %v3905_v49, %v3655_v16  ;;  %v3657_v42 = vadd.f32 %v3656_v47, %v9629_v6  ;;  %v9637_v41 = vld [vmem:[#allocation35_spill] sm:$0xff] }
 0x1f6   :  { %v3658_v54 = vpop.f32.mrf.mxu1  ;;  %v3909_v39 = vpop.f32.mrf.mxu0 }
 0x1f7   :  { %9628 = vst [vmem:[#allocation27_spill] sm:$0xff] %v8392_v44  ;;  %v8401_v7 = vadd.f32 %v3907_v20, %v3657_v42  ;;  %v3659_v12 = vadd.f32 %v3658_v54, %v9631_v38  ;;  %v9635_v42 = vld [vmem:[#allocation34_spill] sm:$0xff] }
 0x1f8   :  { %v3660_v3 = vpop.f32.mrf.mxu1  ;;  %v3911_v18 = vpop.f32.mrf.mxu0 }
 0x1f9   :  { %9630 = vst [vmem:[#allocation28_spill] sm:$0xff] %v8401_v7  ;;  %v8410_v49 = vadd.f32 %v3909_v39, %v3659_v12  ;;  %v3661_v16 = vadd.f32 %v3660_v3, %v9633_v46 }
 0x1fa   :  { %v3664_v47 = vpop.f32.mrf.mxu1  ;;  %v3915_v6 = vpop.f32.mrf.mxu0  ;;  %4467 = vmatmul.mubr.bf16.vlgmr.msra.gmra.mxu1 %v6536_v2  ;;  %4718 = vmatmul.mubr.bf16.vlgmr.msra.gmra.mxu0 %v6539_v60  ;;  %v6542_v2 = vld [vmem:[%s9525_s0 + $0x98] ss:$56 sps:$4 sm:$0xff]  }
 0x1fb   :  { %9632 = vst [vmem:[#allocation29_spill] sm:$0xff] %v8410_v49  ;;  %v8413_v20 = vadd.f32 %v3911_v18, %v3661_v16  ;;  %v3665_v54 = vadd.f32 %v3664_v47, %v9635_v42  ;;  %4476 = vmatprep.mubr.bf16.mxu1 %v6544_v8  ;;  %5834 = vmatprep.mubr.msk.bf16.mxu0 %vm3112_vm0, %v6545_v56  ;;  %v6547_v60 = vld [vmem:[%s9525_s0 + $0xa0] ss:$56 sps:$4 sm:$0xff]   ;;  %v9639_v8 = vld [vmem:[#allocation36_spill] sm:$0xff]  ;;  %v6550_v18 = vld [vmem:[%s9525_s0 + $0x10c] ss:$56 sps:$4 sm:$0xff]  }
 0x1fc   :  { %v3666_v38 = vpop.f32.mrf.mxu1  ;;  %v3917_v7 = vpop.f32.mrf.mxu0 }
 0x1fd   :  { %9634 = vst [vmem:[#allocation30_spill] sm:$0xff] %v8413_v20  ;;  %v8417_v44 = vadd.f32 %v3915_v6, %v3665_v54  ;;  %v3667_v39 = vadd.f32 %v3666_v38, %v9637_v41  ;;  %v6551_v41 = vld [vmem:[%s9525_s0 + $0x114] ss:$56 sps:$4 sm:$0xff]   ;;  %v9641_v6 = vld [vmem:[#allocation37_spill] sm:$0xff] }
 0x1fe   :  { %v3668_v12 = vpop.f32.mrf.mxu1  ;;  %v3919_v49 = vpop.f32.mrf.mxu0  ;;  %v9643_v20 = vld [vmem:[#allocation39_spill] sm:$0xff] }
 0x1ff   :  { %9636 = vst [vmem:[#allocation31_spill] sm:$0xff] %v8417_v44  ;;  %v8426_v3 = vadd.f32 %v3917_v7, %v3667_v39  ;;  %v3669_v56 = vadd.f32 %v3668_v12, %v9639_v8  ;;  %v9642_v39 = vld [vmem:[#allocation38_spill] sm:$0xff] }
 0x200   :  { %v3670_v46 = vpop.f32.mrf.mxu1  ;;  %v3921_v16 = vpop.f32.mrf.mxu0 }
 0x201   :  { %9638 = vst [vmem:[#allocation32_spill] sm:$0xff] %v8426_v3  ;;  %v8435_v47 = vadd.f32 %v3919_v49, %v3669_v56  ;;  %v3671_v42 = vadd.f32 %v3670_v46, %v9641_v6 }
 0x202   :  { %v3674_v54 = vpop.f32.mrf.mxu1  ;;  %v3925_v38 = vpop.f32.mrf.mxu0  ;;  %4477 = vmatmul.mubr.bf16.gmra.mxu1 %v6542_v2  ;;  %4728 = vmatmul.mubr.bf16.gmra.mxu0 %v6547_v60  ;;  %v6548_v2 = vld [vmem:[%s9525_s0 + $0x108] ss:$56 sps:$4 sm:$0xff]  }
 0x203   :  { %9640 = vst [vmem:[#allocation33_spill] sm:$0xff] %v8435_v47  ;;  %v8438_v7 = vadd.f32 %v3921_v16, %v3671_v42  ;;  %v3675_v12 = vadd.f32 %v3674_v54, %v9642_v39  ;;  %4486 = vmatprep.mubr.bf16.mxu1 %v6550_v18  ;;  %5835 = vmatprep.mubr.msk.bf16.mxu0 %vm3112_vm0, %v6551_v41  ;;  %v6553_v60 = vld [vmem:[%s9525_s0 + $0x110] ss:$56 sps:$4 sm:$0xff]   ;;  %v6556_v18 = vld [vmem:[%s9525_s0 + $0x17c] ss:$56 sps:$4 sm:$0xff]  }
 0x204   :  { %v3676_v8 = vpop.f32.mrf.mxu1  ;;  %v3927_v3 = vpop.f32.mrf.mxu0  ;;  %v9644_v42 = vld [vmem:[#allocation40_spill] sm:$0xff] }
 0x205   :  { %v8442_v44 = vadd.f32 %v3925_v38, %v3675_v12  ;;  %v3677_v49 = vadd.f32 %v3676_v8, %v9643_v20  ;;  %v6557_v20 = vld [vmem:[%s9525_s0 + $0x184] ss:$56 sps:$4 sm:$0xff]  }
 0x206   :  { %v3678_v56 = vpop.f32.mrf.mxu1  ;;  %v3929_v47 = vpop.f32.mrf.mxu0  ;;  %v9645_v12 = vld [vmem:[#allocation41_spill] sm:$0xff] }
 0x207   :  { %v8451_v46 = vadd.f32 %v3927_v3, %v3677_v49 }
 0x208   :  { %v3679_v41 = vpop.f32.mrf.mxu1  ;;  %v3930_v16 = vpop.f32.mrf.mxu0 }
 0x209   :  { %v6554_v41 = vld [vmem:[%s9525_s0 + $0x178] ss:$56 sps:$4 sm:$0xff]   ;;  %v6563_v16 = vld [vmem:[%s9525_s0 + $0x1f4] ss:$56 sps:$4 sm:$0xff]  }
 0x20a   :  { %v3966_v47 = vpop.f32.mrf.mxu1  ;;  %v4217_v6 = vpop.f32.mrf.mxu0  ;;  %4487 = vmatmul.mubr.bf16.gmra.mxu1 %v6548_v2  ;;  %4738 = vmatmul.mubr.bf16.gmra.mxu0 %v6553_v60  ;;  %v6559_v2 = vld [vmem:[%s9525_s0 + $0x180] ss:$56 sps:$4 sm:$0xff]  }
 0x20b   :  { %v3967_v54 = vadd.f32 %v3966_v47, %v9644_v42  ;;  %4496 = vmatprep.mubr.bf16.mxu1 %v6556_v18  ;;  %5836 = vmatprep.mubr.msk.bf16.mxu0 %vm3112_vm0, %v6557_v20  ;;  %v6562_v20 = vld [vmem:[%s9525_s0 + $0x1ec] ss:$56 sps:$4 sm:$0xff]  }
 0x20c   :  { %v3968_v3 = vpop.f32.mrf.mxu1  ;;  %v4219_v38 = vpop.f32.mrf.mxu0 }
 0x20d   :  { %v8461_v39 = vadd.f32 %v4217_v6, %v3967_v54  ;;  %v3969_v8 = vadd.f32 %v3968_v3, %v9645_v12 }
 0x20e   :  { %v3970_v49 = vpop.f32.mrf.mxu1  ;;  %v4221_v56 = vpop.f32.mrf.mxu0 }
 0x20f   :  { %v8470_v60 = vadd.f32 %v4219_v38, %v3969_v8  ;;  %v3971_v18 = vadd.f32 %v3970_v49, %v7875_v24 }
 0x210   :  { %v3972_v47 = vpop.f32.mrf.mxu1  ;;  %v4223_v6 = vpop.f32.mrf.mxu0 }
 0x211   :  { %9646 = vst [vmem:[#allocation34_spill] sm:$0xff] %v8470_v60  ;;  %v8479_v42 = vadd.f32 %v4221_v56, %v3971_v18  ;;  %v3973_v54 = vadd.f32 %v3972_v47, %v7884_v22  ;;  %v6560_v22 = vld [vmem:[%s9525_s0 + $0x1e8] ss:$56 sps:$4 sm:$0xff]  }
 0x212   :  { %v3976_v3 = vpop.f32.mrf.mxu1  ;;  %v4227_v12 = vpop.f32.mrf.mxu0  ;;  %4497 = vmatmul.mubr.bf16.gmra.mxu1 %v6554_v41  ;;  %4748 = vmatmul.mubr.bf16.gmra.mxu0 %v6559_v2  ;;  %v6565_v41 = vld [vmem:[%s9525_s0 + $0x1f0] ss:$56 sps:$4 sm:$0xff]  }
 0x213   :  { %9647 = vst [vmem:[#allocation35_spill] sm:$0xff] %v8479_v42  ;;  %v8482_v38 = vadd.f32 %v4223_v6, %v3973_v54  ;;  %v3977_v24 = vadd.f32 %v3976_v3, %v7893_v58  ;;  %4506 = vmatprep.mubr.bf16.mxu1 %v6562_v20  ;;  %5837 = vmatprep.mubr.msk.bf16.mxu0 %vm3112_vm0, %v6563_v16  ;;  %v6568_v20 = vld [vmem:[%s9525_s0 + $0x25c] ss:$56 sps:$4 sm:$0xff]  }
 0x214   :  { %v3978_v8 = vpop.f32.mrf.mxu1  ;;  %v4229_v49 = vpop.f32.mrf.mxu0 }
 0x215   :  { %v8486_v60 = vadd.f32 %v4227_v12, %v3977_v24  ;;  %v3979_v56 = vadd.f32 %v3978_v8, %v7908_v1  ;;  %v6569_v1 = vld [vmem:[%s9525_s0 + $0x264] ss:$56 sps:$4 sm:$0xff]  }
 0x216   :  { %v3980_v18 = vpop.f32.mrf.mxu1  ;;  %v4231_v42 = vpop.f32.mrf.mxu0 }
 0x217   :  { %v8495_v58 = vadd.f32 %v4229_v49, %v3979_v56  ;;  %v3981_v2 = vadd.f32 %v3980_v18, %v7923_v36 }
 0x218   :  { %v3982_v16 = vpop.f32.mrf.mxu1  ;;  %v4233_v47 = vpop.f32.mrf.mxu0 }
 0x219   :  { %v8504_v6 = vadd.f32 %v4231_v42, %v3981_v2  ;;  %v3983_v54 = vadd.f32 %v3982_v16, %v7932_v34  ;;  %v6566_v34 = vld [vmem:[%s9525_s0 + $0x258] ss:$56 sps:$4 sm:$0xff]  }
 0x21a   :  { %v3986_v3 = vpop.f32.mrf.mxu1  ;;  %v4237_v12 = vpop.f32.mrf.mxu0  ;;  %4507 = vmatmul.mubr.bf16.gmra.mxu1 %v6560_v22  ;;  %4758 = vmatmul.mubr.bf16.gmra.mxu0 %v6565_v41  ;;  %v6571_v22 = vld [vmem:[%s9525_s0 + $0x260] ss:$56 sps:$4 sm:$0xff]  }
 0x21b   :  { %v8507_v24 = vadd.f32 %v4233_v47, %v3983_v54  ;;  %v3987_v36 = vadd.f32 %v3986_v3, %v7941_v14  ;;  %4516 = vmatprep.mubr.bf16.mxu1 %v6568_v20  ;;  %5838 = vmatprep.mubr.msk.bf16.mxu0 %vm3112_vm0, %v6569_v1  ;;  %v6574_v20 = vld [vmem:[%s9525_s0 + $0x2cc] ss:$56 sps:$4 sm:$0xff]  }
 0x21c   :  { %v3988_v8 = vpop.f32.mrf.mxu1  ;;  %v4239_v49 = vpop.f32.mrf.mxu0 }
 0x21d   :  { %v8511_v56 = vadd.f32 %v4237_v12, %v3987_v36  ;;  %v3989_v42 = vadd.f32 %v3988_v8, %v7956_v26  ;;  %v6575_v26 = vld [vmem:[%s9525_s0 + $0x2d4] ss:$56 sps:$4 sm:$0xff]  }
 0x21e   :  { %v3990_v18 = vpop.f32.mrf.mxu1  ;;  %v4241_v2 = vpop.f32.mrf.mxu0 }
 0x21f   :  { %v8520_v14 = vadd.f32 %v4239_v49, %v3989_v42  ;;  %v3991_v41 = vadd.f32 %v3990_v18, %v7971_v50 }
 0x220   :  { %v3992_v1 = vpop.f32.mrf.mxu1  ;;  %v4243_v16 = vpop.f32.mrf.mxu0 }
 0x221   :  { %v8529_v47 = vadd.f32 %v4241_v2, %v3991_v41  ;;  %v3993_v54 = vadd.f32 %v3992_v1, %v7980_v4  ;;  %v6572_v4 = vld [vmem:[%s9525_s0 + $0x2c8] ss:$56 sps:$4 sm:$0xff]  }
 0x222   :  { %v3996_v3 = vpop.f32.mrf.mxu1  ;;  %v4247_v12 = vpop.f32.mrf.mxu0  ;;  %4517 = vmatmul.mubr.bf16.gmra.mxu1 %v6566_v34  ;;  %4768 = vmatmul.mubr.bf16.gmra.mxu0 %v6571_v22  ;;  %v6577_v34 = vld [vmem:[%s9525_s0 + $0x2d0] ss:$56 sps:$4 sm:$0xff]  }
 0x223   :  { %v8532_v36 = vadd.f32 %v4243_v16, %v3993_v54  ;;  %v3997_v50 = vadd.f32 %v3996_v3, %v7989_v52  ;;  %4526 = vmatprep.mubr.bf16.mxu1 %v6574_v20  ;;  %5839 = vmatprep.mubr.msk.bf16.mxu0 %vm3112_vm0, %v6575_v26  ;;  %v6580_v20 = vld [vmem:[%s9525_s0 + $0x33c] ss:$56 sps:$4 sm:$0xff]  }
 0x224   :  { %v3998_v8 = vpop.f32.mrf.mxu1  ;;  %v4249_v49 = vpop.f32.mrf.mxu0 }
 0x225   :  { %v8536_v42 = vadd.f32 %v4247_v12, %v3997_v50  ;;  %v3999_v18 = vadd.f32 %v3998_v8, %v8001_v32  ;;  %v6581_v32 = vld [vmem:[%s9525_s0 + $0x344] ss:$56 sps:$4 sm:$0xff]  }
 0x226   :  { %v4000_v2 = vpop.f32.mrf.mxu1  ;;  %v4251_v41 = vpop.f32.mrf.mxu0 }
 0x227   :  { %v8545_v52 = vadd.f32 %v4249_v49, %v3999_v18  ;;  %v4001_v22 = vadd.f32 %v4000_v2, %v8013_v40 }
 0x228   :  { %v4002_v26 = vpop.f32.mrf.mxu1  ;;  %v4253_v1 = vpop.f32.mrf.mxu0 }
 0x229   :  { %v8554_v16 = vadd.f32 %v4251_v41, %v4001_v22  ;;  %v4003_v54 = vadd.f32 %v4002_v26, %v8019_v35  ;;  %v6578_v35 = vld [vmem:[%s9525_s0 + $0x338] ss:$56 sps:$4 sm:$0xff]  }
 0x22a   :  { %v4006_v3 = vpop.f32.mrf.mxu1  ;;  %v4257_v12 = vpop.f32.mrf.mxu0  ;;  %4527 = vmatmul.mubr.bf16.gmra.mxu1 %v6572_v4  ;;  %4778 = vmatmul.mubr.bf16.gmra.mxu0 %v6577_v34  ;;  %v6583_v4 = vld [vmem:[%s9525_s0 + $0x340] ss:$56 sps:$4 sm:$0xff]  }
 0x22b   :  { %v8557_v50 = vadd.f32 %v4253_v1, %v4003_v54  ;;  %v4007_v40 = vadd.f32 %v4006_v3, %v8025_v45  ;;  %4536 = vmatprep.mubr.bf16.mxu1 %v6580_v20  ;;  %5840 = vmatprep.mubr.msk.bf16.mxu0 %vm3112_vm0, %v6581_v32  ;;  %v6586_v20 = vld [vmem:[%s9525_s0 + $0x3ac] ss:$56 sps:$4 sm:$0xff]  }
 0x22c   :  { %v4008_v8 = vpop.f32.mrf.mxu1  ;;  %v4259_v49 = vpop.f32.mrf.mxu0 }
 0x22d   :  { %v8561_v18 = vadd.f32 %v4257_v12, %v4007_v40  ;;  %v4009_v2 = vadd.f32 %v4008_v8, %v8037_v31  ;;  %v6587_v31 = vld [vmem:[%s9525_s0 + $0x3b4] ss:$56 sps:$4 sm:$0xff]  }
 0x22e   :  { %v4010_v41 = vpop.f32.mrf.mxu1  ;;  %v4261_v22 = vpop.f32.mrf.mxu0 }
 0x22f   :  { %v8570_v45 = vadd.f32 %v4259_v49, %v4009_v2  ;;  %v4011_v34 = vadd.f32 %v4010_v41, %v8049_v43 }
 0x230   :  { %v4012_v32 = vpop.f32.mrf.mxu1  ;;  %v4263_v26 = vpop.f32.mrf.mxu0 }
 0x231   :  { %v8579_v1 = vadd.f32 %v4261_v22, %v4011_v34  ;;  %v4013_v54 = vadd.f32 %v4012_v32, %v8055_v19  ;;  %v6584_v19 = vld [vmem:[%s9525_s0 + $0x3a8] ss:$56 sps:$4 sm:$0xff]  }
 0x232   :  { %v4016_v3 = vpop.f32.mrf.mxu1  ;;  %v4267_v12 = vpop.f32.mrf.mxu0  ;;  %4537 = vmatmul.mubr.bf16.gmra.mxu1 %v6578_v35  ;;  %4788 = vmatmul.mubr.bf16.gmra.mxu0 %v6583_v4  ;;  %v6589_v35 = vld [vmem:[%s9525_s0 + $0x3b0] ss:$56 sps:$4 sm:$0xff]  }
 0x233   :  { %v8582_v40 = vadd.f32 %v4263_v26, %v4013_v54  ;;  %v4017_v43 = vadd.f32 %v4016_v3, %v8061_v48  ;;  %4546 = vmatprep.mubr.bf16.mxu1 %v6586_v20  ;;  %5841 = vmatprep.mubr.msk.bf16.mxu0 %vm3112_vm0, %v6587_v31  ;;  %v6592_v20 = vld [vmem:[%s9525_s0 + $0x41c] ss:$56 sps:$4 sm:$0xff]  }
 0x234   :  { %v4018_v8 = vpop.f32.mrf.mxu1  ;;  %v4269_v49 = vpop.f32.mrf.mxu0 }
 0x235   :  { %v8586_v2 = vadd.f32 %v4267_v12, %v4017_v43  ;;  %v4019_v41 = vadd.f32 %v4018_v8, %v8070_v59  ;;  %v6593_v59 = vld [vmem:[%s9525_s0 + $0x424] ss:$56 sps:$4 sm:$0xff]  }
 0x236   :  { %v4020_v22 = vpop.f32.mrf.mxu1  ;;  %v4271_v34 = vpop.f32.mrf.mxu0 }
 0x237   :  { %v8595_v48 = vadd.f32 %v4269_v49, %v4019_v41  ;;  %v4021_v4 = vadd.f32 %v4020_v22, %v8079_v33 }
 0x238   :  { %v4022_v31 = vpop.f32.mrf.mxu1  ;;  %v4273_v32 = vpop.f32.mrf.mxu0 }
 0x239   :  { %v8604_v26 = vadd.f32 %v4271_v34, %v4021_v4  ;;  %v4023_v54 = vadd.f32 %v4022_v31, %v8082_v13  ;;  %v6590_v13 = vld [vmem:[%s9525_s0 + $0x418] ss:$56 sps:$4 sm:$0xff]  }
 0x23a   :  { %v4026_v3 = vpop.f32.mrf.mxu1  ;;  %v4277_v12 = vpop.f32.mrf.mxu0  ;;  %4547 = vmatmul.mubr.bf16.gmra.mxu1 %v6584_v19  ;;  %4798 = vmatmul.mubr.bf16.gmra.mxu0 %v6589_v35  ;;  %v6595_v19 = vld [vmem:[%s9525_s0 + $0x420] ss:$56 sps:$4 sm:$0xff]  }
 0x23b   :  { %v8607_v43 = vadd.f32 %v4273_v32, %v4023_v54  ;;  %v4027_v33 = vadd.f32 %v4026_v3, %v8085_v57  ;;  %4556 = vmatprep.mubr.bf16.mxu1 %v6592_v20  ;;  %5842 = vmatprep.mubr.msk.bf16.mxu0 %vm3112_vm0, %v6593_v59  ;;  %v6598_v20 = vld [vmem:[%s9525_s0 + $0x48c] ss:$56 sps:$4 sm:$0xff]  }
 0x23c   :  { %v4028_v8 = vpop.f32.mrf.mxu1  ;;  %v4279_v49 = vpop.f32.mrf.mxu0 }
 0x23d   :  { %v8611_v41 = vadd.f32 %v4277_v12, %v4027_v33  ;;  %v4029_v22 = vadd.f32 %v4028_v8, %v8094_v21  ;;  %v6599_v21 = vld [vmem:[%s9525_s0 + $0x494] ss:$56 sps:$4 sm:$0xff]  }
 0x23e   :  { %v4030_v34 = vpop.f32.mrf.mxu1  ;;  %v4281_v4 = vpop.f32.mrf.mxu0 }
 0x23f   :  { %v8620_v57 = vadd.f32 %v4279_v49, %v4029_v22  ;;  %v4031_v35 = vadd.f32 %v4030_v34, %v8103_v51 }
 0x240   :  { %v4032_v59 = vpop.f32.mrf.mxu1  ;;  %v4283_v31 = vpop.f32.mrf.mxu0 }
 0x241   :  { %v8629_v32 = vadd.f32 %v4281_v4, %v4031_v35  ;;  %v4033_v54 = vadd.f32 %v4032_v59, %v8106_v27  ;;  %v6596_v27 = vld [vmem:[%s9525_s0 + $0x488] ss:$56 sps:$4 sm:$0xff]  }
 0x242   :  { %v4036_v3 = vpop.f32.mrf.mxu1  ;;  %v4287_v12 = vpop.f32.mrf.mxu0  ;;  %4557 = vmatmul.mubr.bf16.gmra.mxu1 %v6590_v13  ;;  %4808 = vmatmul.mubr.bf16.gmra.mxu0 %v6595_v19  ;;  %v6601_v13 = vld [vmem:[%s9525_s0 + $0x490] ss:$56 sps:$4 sm:$0xff]  }
 0x243   :  { %v8632_v33 = vadd.f32 %v4283_v31, %v4033_v54  ;;  %v4037_v51 = vadd.f32 %v4036_v3, %v8109_v11  ;;  %4566 = vmatprep.mubr.bf16.mxu1 %v6598_v20  ;;  %5843 = vmatprep.mubr.msk.bf16.mxu0 %vm3112_vm0, %v6599_v21  ;;  %v6604_v20 = vld [vmem:[%s9525_s0 + $0x4fc] ss:$56 sps:$4 sm:$0xff]  }
 0x244   :  { %v4038_v8 = vpop.f32.mrf.mxu1  ;;  %v4289_v49 = vpop.f32.mrf.mxu0 }
 0x245   :  { %v8636_v22 = vadd.f32 %v4287_v12, %v4037_v51  ;;  %v4039_v34 = vadd.f32 %v4038_v8, %v8118_v5  ;;  %v6605_v5 = vld [vmem:[%s9525_s0 + $0x504] ss:$56 sps:$4 sm:$0xff]  }
 0x246   :  { %v4040_v4 = vpop.f32.mrf.mxu1  ;;  %v4291_v35 = vpop.f32.mrf.mxu0 }
 0x247   :  { %v8645_v11 = vadd.f32 %v4289_v49, %v4039_v34  ;;  %v4041_v19 = vadd.f32 %v4040_v4, %v8127_v23 }
 0x248   :  { %v4042_v21 = vpop.f32.mrf.mxu1  ;;  %v4293_v59 = vpop.f32.mrf.mxu0 }
 0x249   :  { %v8654_v31 = vadd.f32 %v4291_v35, %v4041_v19  ;;  %v4043_v54 = vadd.f32 %v4042_v21, %v8130_v15  ;;  %v6602_v15 = vld [vmem:[%s9525_s0 + $0x4f8] ss:$56 sps:$4 sm:$0xff]  }
 0x24a   :  { %v4046_v3 = vpop.f32.mrf.mxu1  ;;  %v4297_v12 = vpop.f32.mrf.mxu0  ;;  %4567 = vmatmul.mubr.bf16.gmra.mxu1 %v6596_v27  ;;  %4818 = vmatmul.mubr.bf16.gmra.mxu0 %v6601_v13  ;;  %v6607_v27 = vld [vmem:[%s9525_s0 + $0x500] ss:$56 sps:$4 sm:$0xff]  }
 0x24b   :  { %v8657_v51 = vadd.f32 %v4293_v59, %v4043_v54  ;;  %v4047_v23 = vadd.f32 %v4046_v3, %v8133_v9  ;;  %4576 = vmatprep.mubr.bf16.mxu1 %v6604_v20  ;;  %5844 = vmatprep.mubr.msk.bf16.mxu0 %vm3112_vm0, %v6605_v5  ;;  %v6610_v20 = vld [vmem:[%s9525_s0 + $0x56c] ss:$56 sps:$4 sm:$0xff]  }
 0x24c   :  { %v4048_v8 = vpop.f32.mrf.mxu1  ;;  %v4299_v49 = vpop.f32.mrf.mxu0 }
 0x24d   :  { %v8661_v34 = vadd.f32 %v4297_v12, %v4047_v23  ;;  %v4049_v4 = vadd.f32 %v4048_v8, %v8142_v29  ;;  %v6611_v29 = vld [vmem:[%s9525_s0 + $0x574] ss:$56 sps:$4 sm:$0xff]  }
 0x24e   :  { %v4050_v35 = vpop.f32.mrf.mxu1  ;;  %v4301_v19 = vpop.f32.mrf.mxu0 }
 0x24f   :  { %v8670_v9 = vadd.f32 %v4299_v49, %v4049_v4  ;;  %v4051_v13 = vadd.f32 %v4050_v35, %v8151_v28 }
 0x250   :  { %v4052_v5 = vpop.f32.mrf.mxu1  ;;  %v4303_v21 = vpop.f32.mrf.mxu0 }
 0x251   :  { %v8679_v59 = vadd.f32 %v4301_v19, %v4051_v13  ;;  %v4053_v54 = vadd.f32 %v4052_v5, %v8154_v61  ;;  %v6608_v61 = vld [vmem:[%s9525_s0 + $0x568] ss:$56 sps:$4 sm:$0xff]  }
 0x252   :  { %v4056_v3 = vpop.f32.mrf.mxu1  ;;  %v4307_v12 = vpop.f32.mrf.mxu0  ;;  %4577 = vmatmul.mubr.bf16.gmra.mxu1 %v6602_v15  ;;  %4828 = vmatmul.mubr.bf16.gmra.mxu0 %v6607_v27  ;;  %v6613_v15 = vld [vmem:[%s9525_s0 + $0x570] ss:$56 sps:$4 sm:$0xff]  }
 0x253   :  { %v8682_v23 = vadd.f32 %v4303_v21, %v4053_v54  ;;  %v4057_v28 = vadd.f32 %v4056_v3, %v8157_v55  ;;  %4586 = vmatprep.mubr.bf16.mxu1 %v6610_v20  ;;  %5845 = vmatprep.mubr.msk.bf16.mxu0 %vm3112_vm0, %v6611_v29  ;;  %v6616_v20 = vld [vmem:[%s9525_s0 + $0x5dc] ss:$56 sps:$4 sm:$0xff]  }
 0x254   :  { %v4058_v8 = vpop.f32.mrf.mxu1  ;;  %v4309_v49 = vpop.f32.mrf.mxu0 }
 0x255   :  { %v8686_v4 = vadd.f32 %v4307_v12, %v4057_v28  ;;  %v4059_v35 = vadd.f32 %v4058_v8, %v8166_v17  ;;  %v6617_v17 = vld [vmem:[%s9525_s0 + $0x5e4] ss:$56 sps:$4 sm:$0xff]  }
 0x256   :  { %v4060_v19 = vpop.f32.mrf.mxu1  ;;  %v4311_v13 = vpop.f32.mrf.mxu0 }
 0x257   :  { %v8695_v55 = vadd.f32 %v4309_v49, %v4059_v35  ;;  %v4061_v27 = vadd.f32 %v4060_v19, %v8175_v37 }
 0x258   :  { %v4062_v29 = vpop.f32.mrf.mxu1  ;;  %v4313_v5 = vpop.f32.mrf.mxu0 }
 0x259   :  { %v8704_v21 = vadd.f32 %v4311_v13, %v4061_v27  ;;  %v4063_v54 = vadd.f32 %v4062_v29, %v8178_v63  ;;  %v6614_v63 = vld [vmem:[%s9525_s0 + $0x5d8] ss:$56 sps:$4 sm:$0xff]  }
 0x25a   :  { %v4066_v3 = vpop.f32.mrf.mxu1  ;;  %v4317_v12 = vpop.f32.mrf.mxu0  ;;  %4587 = vmatmul.mubr.bf16.gmra.mxu1 %v6608_v61  ;;  %4838 = vmatmul.mubr.bf16.gmra.mxu0 %v6613_v15  ;;  %v6619_v61 = vld [vmem:[%s9525_s0 + $0x5e0] ss:$56 sps:$4 sm:$0xff]  }
 0x25b   :  { %v8707_v28 = vadd.f32 %v4313_v5, %v4063_v54  ;;  %v4067_v37 = vadd.f32 %v4066_v3, %v8181_v53  ;;  %4596 = vmatprep.mubr.bf16.mxu1 %v6616_v20  ;;  %5846 = vmatprep.mubr.msk.bf16.mxu0 %vm3112_vm0, %v6617_v17  ;;  %v6622_v20 = vld [vmem:[%s9525_s0 + $0x64c] ss:$56 sps:$4 sm:$0xff]  }
 0x25c   :  { %v4068_v8 = vpop.f32.mrf.mxu1  ;;  %v4319_v49 = vpop.f32.mrf.mxu0  ;;  %v9652_v54 = vld [vmem:[#allocation42_spill] sm:$0xff] }
 0x25d   :  { %9648 = vst [vmem:[#allocation36_spill] sm:$0xff] %v8707_v28  ;;  %v8711_v35 = vadd.f32 %v4317_v12, %v4067_v37  ;;  %v4069_v19 = vadd.f32 %v4068_v8, %v8190_v0  ;;  %v6623_v0 = vld [vmem:[%s9525_s0 + $0x654] ss:$56 sps:$4 sm:$0xff]  }
 0x25e   :  { %v4070_v13 = vpop.f32.mrf.mxu1  ;;  %v4321_v27 = vpop.f32.mrf.mxu0 }
 0x25f   :  { %9649 = vst [vmem:[#allocation37_spill] sm:$0xff] %v8711_v35  ;;  %v8720_v53 = vadd.f32 %v4319_v49, %v4069_v19  ;;  %v4071_v15 = vadd.f32 %v4070_v13, %v8199_v25  ;;  %v9654_v25 = vld [vmem:[#allocation43_spill] sm:$0xff]  ;;  %v9656_v35 = vld [vmem:[#allocation44_spill] sm:$0xff] }
 0x260   :  { %v4072_v17 = vpop.f32.mrf.mxu1  ;;  %v4323_v29 = vpop.f32.mrf.mxu0 }
 0x261   :  { %9650 = vst [vmem:[#allocation38_spill] sm:$0xff] %v8720_v53  ;;  %v8729_v5 = vadd.f32 %v4321_v27, %v4071_v15  ;;  %v4073_v3 = vadd.f32 %v4072_v17, %v9652_v54 }
 0x262   :  { %v4076_v12 = vpop.f32.mrf.mxu1  ;;  %v4327_v37 = vpop.f32.mrf.mxu0  ;;  %4597 = vmatmul.mubr.bf16.gmra.mxu1 %v6614_v63  ;;  %4848 = vmatmul.mubr.bf16.gmra.mxu0 %v6619_v61  ;;  %v6620_v63 = vld [vmem:[%s9525_s0 + $0x648] ss:$56 sps:$4 sm:$0xff]  }
 0x263   :  { %9651 = vst [vmem:[#allocation39_spill] sm:$0xff] %v8729_v5  ;;  %v8732_v8 = vadd.f32 %v4323_v29, %v4073_v3  ;;  %v4077_v49 = vadd.f32 %v4076_v12, %v9654_v25  ;;  %4606 = vmatprep.mubr.bf16.mxu1 %v6622_v20  ;;  %5847 = vmatprep.mubr.msk.bf16.mxu0 %vm3112_vm0, %v6623_v0  ;;  %v6625_v61 = vld [vmem:[%s9525_s0 + $0x650] ss:$56 sps:$4 sm:$0xff]   ;;  %v9658_v20 = vld [vmem:[#allocation45_spill] sm:$0xff] }
 0x264   :  { %v4078_v19 = vpop.f32.mrf.mxu1  ;;  %v4329_v13 = vpop.f32.mrf.mxu0  ;;  %v6628_v29 = vld [vmem:[%s9525_s0 + $0x6bc] ss:$56 sps:$4 sm:$0xff]  }
 0x265   :  { %9653 = vst [vmem:[#allocation40_spill] sm:$0xff] %v8732_v8  ;;  %v8736_v53 = vadd.f32 %v4327_v37, %v4077_v49  ;;  %v4079_v27 = vadd.f32 %v4078_v19, %v9656_v35  ;;  %v6629_v35 = vld [vmem:[%s9525_s0 + $0x6c4] ss:$56 sps:$4 sm:$0xff]   ;;  %v9664_v8 = vld [vmem:[#allocation3_spill] sm:$0xff] }
 0x266   :  { %v4080_v15 = vpop.f32.mrf.mxu1  ;;  %v4331_v5 = vpop.f32.mrf.mxu0  ;;  %v9660_v37 = vld [vmem:[#allocation46_spill] sm:$0xff] }
 0x267   :  { %9655 = vst [vmem:[#allocation41_spill] sm:$0xff] %v8736_v53  ;;  %v8745_v17 = vadd.f32 %v4329_v13, %v4079_v27  ;;  %v4081_v0 = vadd.f32 %v4080_v15, %v9658_v20  ;;  %v9662_v27 = vld [vmem:[#allocation2_spill] sm:$0xff] }
 0x268   :  { %v4082_v54 = vpop.f32.mrf.mxu1  ;;  %v4333_v3 = vpop.f32.mrf.mxu0 }
 0x269   :  { %9657 = vst [vmem:[#allocation42_spill] sm:$0xff] %v8745_v17  ;;  %v8754_v12 = vadd.f32 %v4331_v5, %v4081_v0  ;;  %v4083_v25 = vadd.f32 %v4082_v54, %v9660_v37 }
 0x26a   :  { %v4086_v49 = vpop.f32.mrf.mxu1  ;;  %v4337_v19 = vpop.f32.mrf.mxu0  ;;  %4607 = vmatmul.mubr.bf16.gmra.mxu1 %v6620_v63  ;;  %4858 = vmatmul.mubr.bf16.gmra.mxu0 %v6625_v61  ;;  %v6626_v63 = vld [vmem:[%s9525_s0 + $0x6b8] ss:$56 sps:$4 sm:$0xff]  }
 0x26b   :  { %9659 = vst [vmem:[#allocation43_spill] sm:$0xff] %v8754_v12  ;;  %v8757_v13 = vadd.f32 %v4333_v3, %v4083_v25  ;;  %v4087_v15 = vadd.f32 %v4086_v49, %v9662_v27  ;;  %4616 = vmatprep.mubr.bf16.mxu1 %v6628_v29  ;;  %5848 = vmatprep.mubr.msk.bf16.mxu0 %vm3112_vm0, %v6629_v35  ;;  %v6631_v61 = vld [vmem:[%s9525_s0 + $0x6c0] ss:$56 sps:$4 sm:$0xff]   ;;  %v9666_v29 = vld [vmem:[#allocation4_spill] sm:$0xff]  ;;  %v6634_v3 = vld [vmem:[%s9525_s0 + $0x72c] ss:$56 sps:$4 sm:$0xff]  }
 0x26c   :  { %v4088_v20 = vpop.f32.mrf.mxu1  ;;  %v4339_v17 = vpop.f32.mrf.mxu0 }
 0x26d   :  { %9661 = vst [vmem:[#allocation44_spill] sm:$0xff] %v8757_v13  ;;  %v8761_v53 = vadd.f32 %v4337_v19, %v4087_v15  ;;  %v4089_v5 = vadd.f32 %v4088_v20, %v9664_v8  ;;  %v6635_v8 = vld [vmem:[%s9525_s0 + $0x734] ss:$56 sps:$4 sm:$0xff]   ;;  %v9668_v19 = vld [vmem:[#allocation5_spill] sm:$0xff] }
 0x26e   :  { %v4090_v0 = vpop.f32.mrf.mxu1  ;;  %v4341_v12 = vpop.f32.mrf.mxu0  ;;  %v9672_v13 = vld [vmem:[#allocation7_spill] sm:$0xff] }
 0x26f   :  { %9663 = vst [vmem:[#allocation45_spill] sm:$0xff] %v8761_v53  ;;  %v8770_v54 = vadd.f32 %v4339_v17, %v4089_v5  ;;  %v4091_v35 = vadd.f32 %v4090_v0, %v9666_v29  ;;  %v9670_v5 = vld [vmem:[#allocation6_spill] sm:$0xff] }
 0x270   :  { %v4092_v37 = vpop.f32.mrf.mxu1  ;;  %v4343_v25 = vpop.f32.mrf.mxu0 }
 0x271   :  { %9665 = vst [vmem:[#allocation46_spill] sm:$0xff] %v8770_v54  ;;  %v8779_v49 = vadd.f32 %v4341_v12, %v4091_v35  ;;  %v4093_v27 = vadd.f32 %v4092_v37, %v9668_v19 }
 0x272   :  { %v4096_v15 = vpop.f32.mrf.mxu1  ;;  %v4347_v20 = vpop.f32.mrf.mxu0  ;;  %4617 = vmatmul.mubr.bf16.gmra.mxu1 %v6626_v63  ;;  %4868 = vmatmul.mubr.bf16.gmra.mxu0 %v6631_v61  ;;  %v6632_v63 = vld [vmem:[%s9525_s0 + $0x728] ss:$56 sps:$4 sm:$0xff]  }
 0x273   :  { %9667 = vst [vmem:[#allocation2_spill] sm:$0xff] %v8779_v49  ;;  %v8782_v17 = vadd.f32 %v4343_v25, %v4093_v27  ;;  %v4097_v0 = vadd.f32 %v4096_v15, %v9670_v5  ;;  %4626 = vmatprep.mubr.bf16.mxu1 %v6634_v3  ;;  %5849 = vmatprep.mubr.msk.bf16.mxu0 %vm3112_vm0, %v6635_v8  ;;  %v6637_v61 = vld [vmem:[%s9525_s0 + $0x730] ss:$56 sps:$4 sm:$0xff]   ;;  %v6640_v25 = vld [vmem:[%s9525_s0 + $0x79c] ss:$56 sps:$4 sm:$0xff]  }
 0x274   :  { %v4098_v29 = vpop.f32.mrf.mxu1  ;;  %v4349_v54 = vpop.f32.mrf.mxu0  ;;  %v9674_v3 = vld [vmem:[#allocation8_spill] sm:$0xff] }
 0x275   :  { %9669 = vst [vmem:[#allocation3_spill] sm:$0xff] %v8782_v17  ;;  %v8786_v53 = vadd.f32 %v4347_v20, %v4097_v0  ;;  %v4099_v12 = vadd.f32 %v4098_v29, %v9672_v13  ;;  %v6641_v13 = vld [vmem:[%s9525_s0 + $0x7a4] ss:$56 sps:$4 sm:$0xff]   ;;  %v9680_v17 = vld [vmem:[#allocation11_spill] sm:$0xff] }
 0x276   :  { %v4100_v35 = vpop.f32.mrf.mxu1  ;;  %v4351_v49 = vpop.f32.mrf.mxu0  ;;  %v9676_v20 = vld [vmem:[#allocation9_spill] sm:$0xff] }
 0x277   :  { %9671 = vst [vmem:[#allocation4_spill] sm:$0xff] %v8786_v53  ;;  %v8795_v37 = vadd.f32 %v4349_v54, %v4099_v12  ;;  %v4101_v8 = vadd.f32 %v4100_v35, %v9674_v3  ;;  %v9678_v12 = vld [vmem:[#allocation10_spill] sm:$0xff] }
 0x278   :  { %v4102_v19 = vpop.f32.mrf.mxu1  ;;  %v4353_v27 = vpop.f32.mrf.mxu0 }
 0x279   :  { %9673 = vst [vmem:[#allocation5_spill] sm:$0xff] %v8795_v37  ;;  %v8804_v15 = vadd.f32 %v4351_v49, %v4101_v8  ;;  %v4103_v5 = vadd.f32 %v4102_v19, %v9676_v20 }
 0x27a   :  { %v4106_v0 = vpop.f32.mrf.mxu1  ;;  %v4357_v29 = vpop.f32.mrf.mxu0  ;;  %4627 = vmatmul.mubr.bf16.gmra.mxu1 %v6632_v63  ;;  %4878 = vmatmul.mubr.bf16.gmra.mxu0 %v6637_v61  ;;  %v6638_v63 = vld [vmem:[%s9525_s0 + $0x798] ss:$56 sps:$4 sm:$0xff]  }
 0x27b   :  { %9675 = vst [vmem:[#allocation6_spill] sm:$0xff] %v8804_v15  ;;  %v8807_v54 = vadd.f32 %v4353_v27, %v4103_v5  ;;  %v4107_v35 = vadd.f32 %v4106_v0, %v9678_v12  ;;  %4636 = vmatprep.mubr.bf16.mxu1 %v6640_v25  ;;  %5850 = vmatprep.mubr.msk.bf16.mxu0 %vm3112_vm0, %v6641_v13  ;;  %v6643_v61 = vld [vmem:[%s9525_s0 + $0x7a0] ss:$56 sps:$4 sm:$0xff]   ;;  %v9682_v25 = vld [vmem:[#allocation12_spill] sm:$0xff]  ;;  %v6646_v27 = vld [vmem:[%s9525_s0 + $0x80c] ss:$56 sps:$4 sm:$0xff]  }
 0x27c   :  { %v4108_v3 = vpop.f32.mrf.mxu1  ;;  %v4359_v37 = vpop.f32.mrf.mxu0 }
 0x27d   :  { %9677 = vst [vmem:[#allocation7_spill] sm:$0xff] %v8807_v54  ;;  %v8811_v53 = vadd.f32 %v4357_v29, %v4107_v35  ;;  %v4109_v49 = vadd.f32 %v4108_v3, %v9680_v17  ;;  %v6647_v17 = vld [vmem:[%s9525_s0 + $0x814] ss:$56 sps:$4 sm:$0xff]   ;;  %v9684_v29 = vld [vmem:[#allocation13_spill] sm:$0xff] }
 0x27e   :  { %v4110_v8 = vpop.f32.mrf.mxu1  ;;  %v4361_v15 = vpop.f32.mrf.mxu0  ;;  %v9688_v54 = vld [vmem:[#allocation15_spill] sm:$0xff] }
 0x27f   :  { %9679 = vst [vmem:[#allocation8_spill] sm:$0xff] %v8811_v53  ;;  %v8820_v19 = vadd.f32 %v4359_v37, %v4109_v49  ;;  %v4111_v13 = vadd.f32 %v4110_v8, %v9682_v25  ;;  %v9686_v49 = vld [vmem:[#allocation14_spill] sm:$0xff] }
 0x280   :  { %v4112_v20 = vpop.f32.mrf.mxu1  ;;  %v4363_v5 = vpop.f32.mrf.mxu0 }
 0x281   :  { %9681 = vst [vmem:[#allocation9_spill] sm:$0xff] %v8820_v19  ;;  %v8829_v0 = vadd.f32 %v4361_v15, %v4111_v13  ;;  %v4113_v12 = vadd.f32 %v4112_v20, %v9684_v29 }
 0x282   :  { %v4116_v35 = vpop.f32.mrf.mxu1  ;;  %v4367_v3 = vpop.f32.mrf.mxu0  ;;  %4637 = vmatmul.mubr.bf16.gmra.mxu1 %v6638_v63  ;;  %4888 = vmatmul.mubr.bf16.gmra.mxu0 %v6643_v61  ;;  %v6644_v63 = vld [vmem:[%s9525_s0 + $0x808] ss:$56 sps:$4 sm:$0xff]  }
 0x283   :  { %9683 = vst [vmem:[#allocation10_spill] sm:$0xff] %v8829_v0  ;;  %v8832_v37 = vadd.f32 %v4363_v5, %v4113_v12  ;;  %v4117_v8 = vadd.f32 %v4116_v35, %v9686_v49  ;;  %4646 = vmatprep.mubr.bf16.mxu1 %v6646_v27  ;;  %5851 = vmatprep.mubr.msk.bf16.mxu0 %vm3112_vm0, %v6647_v17  ;;  %v6649_v61 = vld [vmem:[%s9525_s0 + $0x810] ss:$56 sps:$4 sm:$0xff]   ;;  %v6652_v5 = vld [vmem:[%s9525_s0 + $0x87c] ss:$56 sps:$4 sm:$0xff]  }
 0x284   :  { %v4118_v25 = vpop.f32.mrf.mxu1  ;;  %v4369_v19 = vpop.f32.mrf.mxu0  ;;  %v9690_v27 = vld [vmem:[#allocation16_spill] sm:$0xff] }
 0x285   :  { %9685 = vst [vmem:[#allocation11_spill] sm:$0xff] %v8832_v37  ;;  %v8836_v53 = vadd.f32 %v4367_v3, %v4117_v8  ;;  %v4119_v15 = vadd.f32 %v4118_v25, %v9688_v54  ;;  %v6653_v54 = vld [vmem:[%s9525_s0 + $0x884] ss:$56 sps:$4 sm:$0xff]   ;;  %v9696_v37 = vld [vmem:[#allocation19_spill] sm:$0xff] }
 0x286   :  { %v4120_v13 = vpop.f32.mrf.mxu1  ;;  %v4371_v0 = vpop.f32.mrf.mxu0  ;;  %v9692_v3 = vld [vmem:[#allocation17_spill] sm:$0xff] }
 0x287   :  { %9687 = vst [vmem:[#allocation12_spill] sm:$0xff] %v8836_v53  ;;  %v8845_v20 = vadd.f32 %v4369_v19, %v4119_v15  ;;  %v4121_v17 = vadd.f32 %v4120_v13, %v9690_v27  ;;  %v9694_v15 = vld [vmem:[#allocation18_spill] sm:$0xff] }
 0x288   :  { %v4122_v29 = vpop.f32.mrf.mxu1  ;;  %v4373_v12 = vpop.f32.mrf.mxu0 }
 0x289   :  { %9689 = vst [vmem:[#allocation13_spill] sm:$0xff] %v8845_v20  ;;  %v8854_v35 = vadd.f32 %v4371_v0, %v4121_v17  ;;  %v4123_v49 = vadd.f32 %v4122_v29, %v9692_v3 }
 0x28a   :  { %v4126_v8 = vpop.f32.mrf.mxu1  ;;  %v4377_v25 = vpop.f32.mrf.mxu0  ;;  %4647 = vmatmul.mubr.bf16.gmra.mxu1 %v6644_v63  ;;  %4898 = vmatmul.mubr.bf16.gmra.mxu0 %v6649_v61  ;;  %v6650_v63 = vld [vmem:[%s9525_s0 + $0x878] ss:$56 sps:$4 sm:$0xff]  }
 0x28b   :  { %9691 = vst [vmem:[#allocation14_spill] sm:$0xff] %v8854_v35  ;;  %v8857_v19 = vadd.f32 %v4373_v12, %v4123_v49  ;;  %v4127_v13 = vadd.f32 %v4126_v8, %v9694_v15  ;;  %4656 = vmatprep.mubr.bf16.mxu1 %v6652_v5  ;;  %5852 = vmatprep.mubr.msk.bf16.mxu0 %vm3112_vm0, %v6653_v54  ;;  %v6655_v61 = vld [vmem:[%s9525_s0 + $0x880] ss:$56 sps:$4 sm:$0xff]   ;;  %v9698_v5 = vld [vmem:[#allocation20_spill] sm:$0xff]  ;;  %v6658_v12 = vld [vmem:[%s9525_s0 + $0x8ec] ss:$56 sps:$4 sm:$0xff]  }
 0x28c   :  { %v4128_v27 = vpop.f32.mrf.mxu1  ;;  %v4379_v20 = vpop.f32.mrf.mxu0 }
 0x28d   :  { %9693 = vst [vmem:[#allocation15_spill] sm:$0xff] %v8857_v19  ;;  %v8861_v53 = vadd.f32 %v4377_v25, %v4127_v13  ;;  %v4129_v0 = vadd.f32 %v4128_v27, %v9696_v37  ;;  %v6659_v37 = vld [vmem:[%s9525_s0 + $0x8f4] ss:$56 sps:$4 sm:$0xff]   ;;  %v9700_v25 = vld [vmem:[#allocation21_spill] sm:$0xff] }
 0x28e   :  { %v4130_v17 = vpop.f32.mrf.mxu1  ;;  %v4381_v35 = vpop.f32.mrf.mxu0 }
 0x28f   :  { %9695 = vst [vmem:[#allocation16_spill] sm:$0xff] %v8861_v53  ;;  %v8870_v29 = vadd.f32 %v4379_v20, %v4129_v0  ;;  %v4131_v54 = vadd.f32 %v4130_v17, %v9698_v5  ;;  %v9702_v0 = vld [vmem:[#allocation22_spill] sm:$0xff] }
 0x290   :  { %v4132_v3 = vpop.f32.mrf.mxu1  ;;  %v4383_v49 = vpop.f32.mrf.mxu0 }
 0x291   :  { %9697 = vst [vmem:[#allocation17_spill] sm:$0xff] %v8870_v29  ;;  %v8879_v8 = vadd.f32 %v4381_v35, %v4131_v54  ;;  %v4133_v15 = vadd.f32 %v4132_v3, %v9700_v25  ;;  %v317_v35 = vld [vmem:[%s9525_s0 + $0x958] sm:$0x11]  ;;  %v318_v54 = vld [vmem:[%s9525_s0 + $0x960] sm:$0x11] }
 0x292   :  { %v4136_v13 = vpop.f32.mrf.mxu1  ;;  %v4387_v27 = vpop.f32.mrf.mxu0  ;;  %4657 = vmatmul.mubr.bf16.gmra.mxu1 %v6650_v63  ;;  %4908 = vmatmul.mubr.bf16.gmra.mxu0 %v6655_v61  ;;  %v9704_v63 = vld [vmem:[#allocation23_spill] sm:$0xff] }
 0x293   :  { %9699 = vst [vmem:[#allocation18_spill] sm:$0xff] %v8879_v8  ;;  %v8882_v20 = vadd.f32 %v4383_v49, %v4133_v15  ;;  %v4137_v17 = vadd.f32 %v4136_v13, %v9702_v0  ;;  %4666 = vmatprep.mubr.bf16.mxu1 %v6658_v12  ;;  %5853 = vmatprep.mubr.msk.bf16.mxu0 %vm3112_vm0, %v6659_v37  ;;  %v6656_v12 = vld [vmem:[%s9525_s0 + $0x8e8] ss:$56 sps:$4 sm:$0xff]   ;;  %v9705_v13 = vld [vmem:[#allocation24_spill] sm:$0xff] }
 0x294   :  { %v4138_v5 = vpop.f32.mrf.mxu1  ;;  %v4389_v29 = vpop.f32.mrf.mxu0  ;;  %v6661_v37 = vld [vmem:[%s9525_s0 + $0x8f0] ss:$56 sps:$4 sm:$0xff]   ;;  %v5616_v8 = vcombine.high %v318_v54, %v318_v54 }
 0x295   :  { %9701 = vst [vmem:[#allocation19_spill] sm:$0xff] %v8882_v20  ;;  %v8892_v3 = vadd.f32 %v4387_v27, %v4137_v17  ;;  %v4139_v61 = vadd.f32 %v4138_v5, %v9704_v63  ;;  %v5614_v20 = vcombine.high %v317_v35, %v317_v35 }
 0x296   :  { %v4140_v49 = vpop.f32.mrf.mxu1  ;;  %v4391_v25 = vpop.f32.mrf.mxu0 }
 0x297   :  { %9703 = vst [vmem:[#allocation20_spill] sm:$0xff] %v8892_v3  ;;  %v8901_v15 = vadd.f32 %v4389_v29, %v4139_v61  ;;  %v4141_v0 = vadd.f32 %v4140_v49, %v9705_v13 }
 0x298   :  { %v4142_v27 = vpop.f32.mrf.mxu1  ;;  %v4393_v17 = vpop.f32.mrf.mxu0 }
 0x299   :  { %v8904_v3 = vadd.f32 %v4391_v25, %v4141_v0  ;;  %v4143_v5 = vadd.f32 %v4142_v27, %v8370_v10  ;;  %v5613_v10 = vcombine.low %v317_v35, %v317_v35  ;;  %v5615_v27 = vcombine.low %v318_v54, %v318_v54 }
 0x29a   :  { %v4146_v63 = vpop.f32.mrf.mxu1  ;;  %v4397_v53 = vpop.f32.mrf.mxu0  ;;  %4667 = vmatmul.mubr.bf16.gmra.mxu1 %v6656_v12  ;;  %4918 = vmatmul.mubr.bf16.gmra.mxu0 %v6661_v37  ;;  %v9708_v12 = vld [vmem:[#allocation25_spill] sm:$0xff] }
 0x29b   :  { %9706 = vst [vmem:[#allocation21_spill] sm:$0xff] %v8904_v3  ;;  %v8907_v19 = vadd.f32 %v4393_v17, %v4143_v5  ;;  %v4147_v28 = vadd.f32 %v4146_v63, %v8373_v62  ;;  %4676 = vmatprep.mubr.bf16.mxu1 %v5614_v20  ;;  %5854 = vmatprep.mubr.msk.bf16.mxu0 %vm3112_vm0, %v5616_v8  ;;  %v9710_v20 = vld [vmem:[#allocation26_spill] sm:$0xff] }
 0x29c   :  { %v4148_v29 = vpop.f32.mrf.mxu1  ;;  %v4399_v61 = vpop.f32.mrf.mxu0 }
 0x29d   :  { %9707 = vst [vmem:[#allocation22_spill] sm:$0xff] %v8907_v19  ;;  %v8911_v49 = vadd.f32 %v4397_v53, %v4147_v28  ;;  %v4149_v25 = vadd.f32 %v4148_v29, %v8376_v30  ;;  %v9712_v30 = vld [vmem:[#allocation27_spill] sm:$0xff] }
 0x29e   :  { %v4150_v13 = vpop.f32.mrf.mxu1  ;;  %v4401_v0 = vpop.f32.mrf.mxu0 }
 0x29f   :  { %v8914_v3 = vadd.f32 %v4399_v61, %v4149_v25  ;;  %v4151_v37 = vadd.f32 %v4150_v13, %v9708_v12  ;;  %v9714_v61 = vld [vmem:[#allocation28_spill] sm:$0xff] }
 0x2a0   :  { %v4152_v17 = vpop.f32.mrf.mxu1  ;;  %v4403_v5 = vpop.f32.mrf.mxu0 }
 0x2a1   :  { %v8917_v62 = vadd.f32 %v4401_v0, %v4151_v37  ;;  %v4153_v8 = vadd.f32 %v4152_v17, %v9710_v20  ;;  %v9716_v37 = vld [vmem:[#allocation29_spill] sm:$0xff] }
 0x2a2   :  { %v4156_v63 = vpop.f32.mrf.mxu1  ;;  %v4407_v19 = vpop.f32.mrf.mxu0  ;;  %4677 = vmatmul.mubr.bf16.gmra.mxu1 %v5613_v10  ;;  %4928 = vmatmul.mubr.bf16.gmra.mxu0 %v5615_v27  ;;  %v9718_v27 = vld [vmem:[#allocation30_spill] sm:$0xff] }
 0x2a3   :  { %9709 = vst [vmem:[#allocation23_spill] sm:$0xff] %v8917_v62  ;;  %v8920_v28 = vadd.f32 %v4403_v5, %v4153_v8  ;;  %v4157_v53 = vadd.f32 %v4156_v63, %v9712_v30 }
 0x2a4   :  { %v4158_v35 = vpop.f32.mrf.mxu1  ;;  %v4409_v54 = vpop.f32.mrf.mxu0 }
 0x2a5   :  { %9711 = vst [vmem:[#allocation24_spill] sm:$0xff] %v8920_v28  ;;  %v8923_v29 = vadd.f32 %v4407_v19, %v4157_v53  ;;  %v4159_v25 = vadd.f32 %v4158_v35, %v9714_v61  ;;  %v9720_v19 = vld [vmem:[#allocation31_spill] sm:$0xff] }
 0x2a6   :  { %v4160_v13 = vpop.f32.mrf.mxu1  ;;  %v4411_v12 = vpop.f32.mrf.mxu0 }
 0x2a7   :  { %9713 = vst [vmem:[#allocation25_spill] sm:$0xff] %v8923_v29  ;;  %v8926_v0 = vadd.f32 %v4409_v54, %v4159_v25  ;;  %v4161_v17 = vadd.f32 %v4160_v13, %v9716_v37  ;;  %v9722_v54 = vld [vmem:[#allocation32_spill] sm:$0xff] }
 0x2a8   :  { %v4162_v20 = vpop.f32.mrf.mxu1  ;;  %v4413_v62 = vpop.f32.mrf.mxu0 }
 0x2a9   :  { %9715 = vst [vmem:[#allocation26_spill] sm:$0xff] %v8926_v0  ;;  %v8929_v10 = vadd.f32 %v4411_v12, %v4161_v17  ;;  %v4163_v5 = vadd.f32 %v4162_v20, %v9718_v27  ;;  %v9724_v12 = vld [vmem:[#allocation33_spill] sm:$0xff] }
 0x2aa   :  { %v4166_v8 = vpop.f32.mrf.mxu1  ;;  %v4417_v63 = vpop.f32.mrf.mxu0 }
 0x2ab   :  { %9717 = vst [vmem:[#allocation27_spill] sm:$0xff] %v8929_v10  ;;  %v8932_v30 = vadd.f32 %v4413_v62, %v4163_v5  ;;  %v4167_v53 = vadd.f32 %v4166_v8, %v9720_v19  ;;  %v4938_v10 = vlaneseq }
 0x2ac   :  { %v4168_v29 = vpop.f32.mrf.mxu1  ;;  %v4419_v35 = vpop.f32.mrf.mxu0 }
 0x2ad   :  { %9719 = vst [vmem:[#allocation28_spill] sm:$0xff] %v8932_v30  ;;  %v8935_v61 = vadd.f32 %v4417_v63, %v4167_v53  ;;  %v4169_v25 = vadd.f32 %v4168_v29, %v9722_v54  ;;  %v4939_v29 = vshrl.u32 %v4938_v10, 7 }
 0x2ae   :  { %v4170_v0 = vpop.f32.mrf.mxu1  ;;  %v4421_v13 = vpop.f32.mrf.mxu0 }
 0x2af   :  { %9721 = vst [vmem:[#allocation29_spill] sm:$0xff] %v8935_v61  ;;  %v8938_v37 = vadd.f32 %v4419_v35, %v4169_v25  ;;  %v4171_v17 = vadd.f32 %v4170_v0, %v9724_v12 }
 0x2b0   :  { %v4172_v20 = vpop.f32.mrf.mxu1  ;;  %v4423_v27 = vpop.f32.mrf.mxu0 }
 0x2b1   :  { %9723 = vst [vmem:[#allocation30_spill] sm:$0xff] %v8938_v37  ;;  %v8941_v28 = vadd.f32 %v4421_v13, %v4171_v17  ;;  %v4173_v62 = vadd.f32 %v4172_v20, %v8438_v7  ;;  %v4940_v13 = vsub.s32 0, %v4939_v29  ;;  %v4936_v20 = vld [vmem:[%s9526_s2] sm:$0x3] }
 0x2b2   :  { %v4176_v5 = vpop.f32.mrf.mxu1  ;;  %v4427_v8 = vpop.f32.mrf.mxu0 }
 0x2b3   :  { %9725 = vst [vmem:[#allocation31_spill] sm:$0xff] %v8941_v28  ;;  %v8944_v19 = vadd.f32 %v4423_v27, %v4173_v62  ;;  %v4177_v63 = vadd.f32 %v4176_v5, %v8442_v44  ;;  %v4944_v27 = vsub.s32 1, %v4939_v29  ;;  %v5034_v62 = vld [vmem:[%s9527_s3] sm:$0x3]  ;;  %v8959_v5 = vrot.slane %v4936_v20, %v4940_v13 }
 0x2b4   :  { %v4178_v53 = vpop.f32.mrf.mxu1  ;;  %v4429_v54 = vpop.f32.mrf.mxu0 }
 0x2b5   :  { %9726 = vst [vmem:[#allocation32_spill] sm:$0xff] %v8944_v19  ;;  %v8947_v35 = vadd.f32 %v4427_v8, %v4177_v63  ;;  %v4179_v0 = vadd.f32 %v4178_v53, %v8451_v46  ;;  %v9730_v19 = vld [vmem:[#allocation35_spill] sm:$0xff] }
 0x2b6   :  { %v4180_v25 = vpop.f32.mrf.mxu1  ;;  %v4431_v12 = vpop.f32.mrf.mxu0 }
 0x2b7   :  { %9727 = vst [vmem:[#allocation33_spill] sm:$0xff] %v8947_v35  ;;  %v8950_v37 = vadd.f32 %v4429_v54, %v4179_v0  ;;  %v8961_v54 = vrot.slane %v5034_v62, %v4940_v13  ;;  %v9729_v0 = vld [vmem:[#allocation34_spill] sm:$0xff]  ;;  %v8964_v12 = vrot.slane %v4936_v20, %v4944_v27  ;;  %v8967_v35 = vrot.slane %v5034_v62, %v4944_v27 }
 0x2b8   :  { %v4181_v17 = vpop.f32.mrf.mxu1  ;;  %v4432_v7 = vpop.f32.mrf.mxu0 }
 0x2b9   :  { %9728 = vst [vmem:[#allocation47_spill] sm:$0xff] %v8950_v37 }
 0x2ba   :  { %v4468_v44 = vpop.f32.mrf.mxu1  ;;  %v4719_v10 = vpop.f32.mrf.mxu0 }
 0x2bb   :  { %v4469_v46 = vadd.f32 %v4468_v44, %v8461_v39 }
 0x2bc   :  { %v4470_v8 = vpop.f32.mrf.mxu1  ;;  %v4721_v63 = vpop.f32.mrf.mxu0 }
 0x2bd   :  { %v4720_v53 = vadd.f32 %v4719_v10, %v4469_v46  ;;  %v4471_v25 = vadd.f32 %v4470_v8, %v9729_v0 }
 0x2be   :  { %v4472_v29 = vpop.f32.mrf.mxu1  ;;  %v4723_v17 = vpop.f32.mrf.mxu0 }
 0x2bf   :  { %v4948_v7 = vmul.f32 %v8959_v5, %v4720_v53  ;;  %v4722_v37 = vadd.f32 %v4721_v63, %v4471_v25  ;;  %v4473_v39 = vadd.f32 %v4472_v29, %v9730_v19 }
 0x2c0   :  { %v4474_v44 = vpop.f32.mrf.mxu1  ;;  %v4725_v28 = vpop.f32.mrf.mxu0 }
 0x2c1   :  { %v5046_v61 = vadd.f32 %v8961_v54, %v4948_v7  ;;  %v4949_v13 = vmul.f32 %v8964_v12, %v4722_v37  ;;  %v4724_v10 = vadd.f32 %v4723_v17, %v4473_v39  ;;  %v4475_v46 = vadd.f32 %v4474_v44, %v8482_v38 }
 0x2c2   :  { %v4478_v20 = vpop.f32.mrf.mxu1  ;;  %v4729_v8 = vpop.f32.mrf.mxu0 }
 0x2c3   :  { %v5132_v0 = vmax.f32 %v5046_v61, 0.0  ;;  %v5047_v30 = vadd.f32 %v8967_v35, %v4949_v13  ;;  %v4950_v63 = vmul.f32 %v8959_v5, %v4724_v10  ;;  %v4726_v27 = vadd.f32 %v4725_v28, %v4475_v46 }
 0x2c4   :  { %v4479_v62 = vadd.f32 %v4478_v20, %v8486_v60  ;;  %v4480_v19 = vpop.f32.mrf.mxu1  ;;  %v4731_v53 = vpop.f32.mrf.mxu0 }
 0x2c5   :  { %5218 = vst [vmem:[%s9528_s4] sm:$0xff] %v5132_v0  ;;  %v5133_v37 = vmax.f32 %v5047_v30, 0.0  ;;  %v5048_v25 = vadd.f32 %v8961_v54, %v4950_v63  ;;  %v4951_v38 = vmul.f32 %v8964_v12, %v4726_v27  ;;  %v4481_v61 = vadd.f32 %v4480_v19, %v8495_v58 }
 0x2c6   :  { %v4730_v29 = vadd.f32 %v4729_v8, %v4479_v62  ;;  %v4482_v17 = vpop.f32.mrf.mxu1  ;;  %v4733_v7 = vpop.f32.mrf.mxu0 }
 0x2c7   :  { %5219 = vst.msk [vmem:[%s9528_s4 + $0x8] sm:$0xff] %vm3112_vm0, %v5133_v37  ;;  %v5134_v60 = vmax.f32 %v5048_v25, 0.0  ;;  %v5049_v28 = vadd.f32 %v8967_v35, %v4951_v38  ;;  %v4732_v39 = vadd.f32 %v4731_v53, %v4481_v61  ;;  %v4483_v30 = vadd.f32 %v4482_v17, %v8504_v6 }
 0x2c8   :  { %v4952_v44 = vmul.f32 %v8959_v5, %v4730_v29  ;;  %v4484_v13 = vpop.f32.mrf.mxu1  ;;  %v4735_v10 = vpop.f32.mrf.mxu0 }
 0x2c9   :  { %5220 = vst [vmem:[%s9528_s4 + $0x10] sm:$0xff] %v5134_v60  ;;  %v5135_v58 = vmax.f32 %v5049_v28, 0.0  ;;  %v4953_v46 = vmul.f32 %v8964_v12, %v4732_v39  ;;  %v4734_v20 = vadd.f32 %v4733_v7, %v4483_v30  ;;  %v4485_v8 = vadd.f32 %v4484_v13, %v8507_v24 }
 0x2ca   :  { %v5050_v0 = vadd.f32 %v8961_v54, %v4952_v44  ;;  %v4488_v63 = vpop.f32.mrf.mxu1  ;;  %v4739_v27 = vpop.f32.mrf.mxu0 }
 0x2cb   :  { %5221 = vst.msk [vmem:[%s9528_s4 + $0x18] sm:$0xff] %vm3112_vm0, %v5135_v58  ;;  %v5051_v6 = vadd.f32 %v8967_v35, %v4953_v46  ;;  %v4954_v62 = vmul.f32 %v8959_v5, %v4734_v20  ;;  %v4736_v19 = vadd.f32 %v4735_v10, %v4485_v8  ;;  %v4489_v53 = vadd.f32 %v4488_v63, %v8511_v56 }
 0x2cc   :  { %v5136_v37 = vmax.f32 %v5050_v0, 0.0  ;;  %v4490_v25 = vpop.f32.mrf.mxu1  ;;  %v4741_v38 = vpop.f32.mrf.mxu0 }
 0x2cd   :  { %v5137_v24 = vmax.f32 %v5051_v6, 0.0  ;;  %v5052_v61 = vadd.f32 %v8961_v54, %v4954_v62  ;;  %v4955_v29 = vmul.f32 %v8964_v12, %v4736_v19  ;;  %v4740_v17 = vadd.f32 %v4739_v27, %v4489_v53 }
 0x2ce   :  { %5222 = vst [vmem:[%s9528_s4 + $0x20] sm:$0xff] %v5136_v37  ;;  %v4491_v7 = vadd.f32 %v4490_v25, %v8520_v14  ;;  %v4492_v60 = vpop.f32.mrf.mxu1  ;;  %v4743_v28 = vpop.f32.mrf.mxu0 }
 0x2cf   :  { %5223 = vst.msk [vmem:[%s9528_s4 + $0x28] sm:$0xff] %vm3112_vm0, %v5137_v24  ;;  %v5138_v56 = vmax.f32 %v5052_v61, 0.0  ;;  %v5053_v39 = vadd.f32 %v8967_v35, %v4955_v29  ;;  %v4956_v30 = vmul.f32 %v8959_v5, %v4740_v17  ;;  %v4493_v44 = vadd.f32 %v4492_v60, %v8529_v47 }
 0x2d0   :  { %v4742_v13 = vadd.f32 %v4741_v38, %v4491_v7  ;;  %v4494_v10 = vpop.f32.mrf.mxu1  ;;  %v4745_v58 = vpop.f32.mrf.mxu0 }
 0x2d1   :  { %5224 = vst [vmem:[%s9528_s4 + $0x30] sm:$0xff] %v5138_v56  ;;  %v5139_v14 = vmax.f32 %v5053_v39, 0.0  ;;  %v5054_v46 = vadd.f32 %v8961_v54, %v4956_v30  ;;  %v4744_v20 = vadd.f32 %v4743_v28, %v4493_v44  ;;  %v4495_v8 = vadd.f32 %v4494_v10, %v8532_v36 }
 0x2d2   :  { %v4957_v0 = vmul.f32 %v8964_v12, %v4742_v13  ;;  %v4498_v63 = vpop.f32.mrf.mxu1  ;;  %v4749_v27 = vpop.f32.mrf.mxu0 }
 0x2d3   :  { %5225 = vst.msk [vmem:[%s9528_s4 + $0x38] sm:$0xff] %vm3112_vm0, %v5139_v14  ;;  %v5140_v47 = vmax.f32 %v5054_v46, 0.0  ;;  %v4958_v6 = vmul.f32 %v8959_v5, %v4744_v20  ;;  %v4746_v62 = vadd.f32 %v4745_v58, %v4495_v8  ;;  %v4499_v19 = vadd.f32 %v4498_v63, %v8536_v42 }
 0x2d4   :  { %v5055_v53 = vadd.f32 %v8967_v35, %v4957_v0  ;;  %v4500_v37 = vpop.f32.mrf.mxu1  ;;  %v4751_v25 = vpop.f32.mrf.mxu0 }
 0x2d5   :  { %5226 = vst [vmem:[%s9528_s4 + $0x40] sm:$0xff] %v5140_v47  ;;  %v5056_v36 = vadd.f32 %v8961_v54, %v4958_v6  ;;  %v4959_v38 = vmul.f32 %v8964_v12, %v4746_v62  ;;  %v4750_v24 = vadd.f32 %v4749_v27, %v4499_v19  ;;  %v4501_v61 = vadd.f32 %v4500_v37, %v8545_v52 }
 0x2d6   :  { %v5141_v29 = vmax.f32 %v5055_v53, 0.0  ;;  %v4502_v17 = vpop.f32.mrf.mxu1  ;;  %v4753_v7 = vpop.f32.mrf.mxu0 }
 0x2d7   :  { %v5142_v60 = vmax.f32 %v5056_v36, 0.0  ;;  %v5057_v42 = vadd.f32 %v8967_v35, %v4959_v38  ;;  %v4960_v28 = vmul.f32 %v8959_v5, %v4750_v24  ;;  %v4752_v56 = vadd.f32 %v4751_v25, %v4501_v61 }
 0x2d8   :  { %5227 = vst.msk [vmem:[%s9528_s4 + $0x48] sm:$0xff] %vm3112_vm0, %v5141_v29  ;;  %v4503_v39 = vadd.f32 %v4502_v17, %v8554_v16  ;;  %v4504_v30 = vpop.f32.mrf.mxu1  ;;  %v4755_v44 = vpop.f32.mrf.mxu0 }
 0x2d9   :  { %5228 = vst [vmem:[%s9528_s4 + $0x50] sm:$0xff] %v5142_v60  ;;  %v5143_v52 = vmax.f32 %v5057_v42, 0.0  ;;  %v5058_v13 = vadd.f32 %v8961_v54, %v4960_v28  ;;  %v4961_v10 = vmul.f32 %v8964_v12, %v4752_v56  ;;  %v4505_v58 = vadd.f32 %v4504_v30, %v8557_v50 }
 0x2da   :  { %v4754_v14 = vadd.f32 %v4753_v7, %v4503_v39  ;;  %v4508_v46 = vpop.f32.mrf.mxu1  ;;  %v4759_v20 = vpop.f32.mrf.mxu0 }
 0x2db   :  { %5229 = vst.msk [vmem:[%s9528_s4 + $0x58] sm:$0xff] %vm3112_vm0, %v5143_v52  ;;  %v5144_v16 = vmax.f32 %v5058_v13, 0.0  ;;  %v5059_v8 = vadd.f32 %v8967_v35, %v4961_v10  ;;  %v4756_v0 = vadd.f32 %v4755_v44, %v4505_v58  ;;  %v4509_v63 = vadd.f32 %v4508_v46, %v8561_v18 }
 0x2dc   :  { %v4962_v27 = vmul.f32 %v8959_v5, %v4754_v14  ;;  %v4510_v47 = vpop.f32.mrf.mxu1  ;;  %v4761_v6 = vpop.f32.mrf.mxu0 }
 0x2dd   :  { %5230 = vst [vmem:[%s9528_s4 + $0x60] sm:$0xff] %v5144_v16  ;;  %v5145_v50 = vmax.f32 %v5059_v8, 0.0  ;;  %v4963_v62 = vmul.f32 %v8964_v12, %v4756_v0  ;;  %v4760_v19 = vadd.f32 %v4759_v20, %v4509_v63  ;;  %v4511_v53 = vadd.f32 %v4510_v47, %v8570_v45 }
 0x2de   :  { %v5060_v37 = vadd.f32 %v8961_v54, %v4962_v27  ;;  %v4512_v25 = vpop.f32.mrf.mxu1  ;;  %v4763_v36 = vpop.f32.mrf.mxu0 }
 0x2df   :  { %5231 = vst.msk [vmem:[%s9528_s4 + $0x68] sm:$0xff] %vm3112_vm0, %v5145_v50  ;;  %v5061_v18 = vadd.f32 %v8967_v35, %v4963_v62  ;;  %v4964_v38 = vmul.f32 %v8959_v5, %v4760_v19  ;;  %v4762_v24 = vadd.f32 %v4761_v6, %v4511_v53  ;;  %v4513_v61 = vadd.f32 %v4512_v25, %v8579_v1 }
 0x2e0   :  { %v5146_v29 = vmax.f32 %v5060_v37, 0.0  ;;  %v4514_v17 = vpop.f32.mrf.mxu1  ;;  %v4765_v7 = vpop.f32.mrf.mxu0 }
 0x2e1   :  { %v5147_v45 = vmax.f32 %v5061_v18, 0.0  ;;  %v5062_v60 = vadd.f32 %v8961_v54, %v4964_v38  ;;  %v4965_v42 = vmul.f32 %v8964_v12, %v4762_v24  ;;  %v4764_v28 = vadd.f32 %v4763_v36, %v4513_v61 }
 0x2e2   :  { %5232 = vst [vmem:[%s9528_s4 + $0x70] sm:$0xff] %v5146_v29  ;;  %v4515_v56 = vadd.f32 %v4514_v17, %v8582_v40  ;;  %v4518_v39 = vpop.f32.mrf.mxu1  ;;  %v4769_v30 = vpop.f32.mrf.mxu0 }
 0x2e3   :  { %5233 = vst.msk [vmem:[%s9528_s4 + $0x78] sm:$0xff] %vm3112_vm0, %v5147_v45  ;;  %v5148_v1 = vmax.f32 %v5062_v60, 0.0  ;;  %v5063_v44 = vadd.f32 %v8967_v35, %v4965_v42  ;;  %v4966_v52 = vmul.f32 %v8959_v5, %v4764_v28  ;;  %v4519_v13 = vadd.f32 %v4518_v39, %v8586_v2 }
 0x2e4   :  { %v4766_v10 = vadd.f32 %v4765_v7, %v4515_v56  ;;  %v4520_v58 = vpop.f32.mrf.mxu1  ;;  %v4771_v14 = vpop.f32.mrf.mxu0 }
 0x2e5   :  { %5234 = vst [vmem:[%s9528_s4 + $0x80] sm:$0xff] %v5148_v1  ;;  %v5149_v40 = vmax.f32 %v5063_v44, 0.0  ;;  %v5064_v46 = vadd.f32 %v8961_v54, %v4966_v52  ;;  %v4770_v20 = vadd.f32 %v4769_v30, %v4519_v13  ;;  %v4521_v16 = vadd.f32 %v4520_v58, %v8595_v48 }
 0x2e6   :  { %v4967_v8 = vmul.f32 %v8964_v12, %v4766_v10  ;;  %v4522_v0 = vpop.f32.mrf.mxu1  ;;  %v4773_v63 = vpop.f32.mrf.mxu0 }
 0x2e7   :  { %5235 = vst.msk [vmem:[%s9528_s4 + $0x88] sm:$0xff] %vm3112_vm0, %v5149_v40  ;;  %v5150_v2 = vmax.f32 %v5064_v46, 0.0  ;;  %v4968_v27 = vmul.f32 %v8959_v5, %v4770_v20  ;;  %v4772_v47 = vadd.f32 %v4771_v14, %v4521_v16  ;;  %v4523_v6 = vadd.f32 %v4522_v0, %v8604_v26 }
 0x2e8   :  { %v5065_v50 = vadd.f32 %v8967_v35, %v4967_v8  ;;  %v4524_v62 = vpop.f32.mrf.mxu1  ;;  %v4775_v19 = vpop.f32.mrf.mxu0 }
 0x2e9   :  { %5236 = vst [vmem:[%s9528_s4 + $0x90] sm:$0xff] %v5150_v2  ;;  %v5066_v48 = vadd.f32 %v8961_v54, %v4968_v27  ;;  %v4969_v53 = vmul.f32 %v8964_v12, %v4772_v47  ;;  %v4774_v37 = vadd.f32 %v4773_v63, %v4523_v6  ;;  %v4525_v25 = vadd.f32 %v4524_v62, %v8607_v43 }
 0x2ea   :  { %v5151_v36 = vmax.f32 %v5065_v50, 0.0  ;;  %v4528_v18 = vpop.f32.mrf.mxu1  ;;  %v4779_v38 = vpop.f32.mrf.mxu0 }
 0x2eb   :  { %v5152_v24 = vmax.f32 %v5066_v48, 0.0  ;;  %v5067_v26 = vadd.f32 %v8967_v35, %v4969_v53  ;;  %v4970_v61 = vmul.f32 %v8959_v5, %v4774_v37  ;;  %v4776_v29 = vadd.f32 %v4775_v19, %v4525_v25 }
 0x2ec   :  { %5237 = vst.msk [vmem:[%s9528_s4 + $0x98] sm:$0xff] %vm3112_vm0, %v5151_v36  ;;  %v4529_v17 = vadd.f32 %v4528_v18, %v8611_v41  ;;  %v4530_v7 = vpop.f32.mrf.mxu1  ;;  %v4781_v45 = vpop.f32.mrf.mxu0 }
 0x2ed   :  { %5238 = vst [vmem:[%s9528_s4 + $0xa0] sm:$0xff] %v5152_v24  ;;  %v5153_v43 = vmax.f32 %v5067_v26, 0.0  ;;  %v5068_v60 = vadd.f32 %v8961_v54, %v4970_v61  ;;  %v4971_v42 = vmul.f32 %v8964_v12, %v4776_v29  ;;  %v4531_v28 = vadd.f32 %v4530_v7, %v8620_v57 }
 0x2ee   :  { %v4780_v56 = vadd.f32 %v4779_v38, %v4529_v17  ;;  %v4532_v39 = vpop.f32.mrf.mxu1  ;;  %v4783_v30 = vpop.f32.mrf.mxu0 }
 0x2ef   :  { %5239 = vst.msk [vmem:[%s9528_s4 + $0xa8] sm:$0xff] %vm3112_vm0, %v5153_v43  ;;  %v5154_v41 = vmax.f32 %v5068_v60, 0.0  ;;  %v5069_v1 = vadd.f32 %v8967_v35, %v4971_v42  ;;  %v4782_v44 = vadd.f32 %v4781_v45, %v4531_v28  ;;  %v4533_v52 = vadd.f32 %v4532_v39, %v8629_v32 }
 0x2f0   :  { %v4972_v13 = vmul.f32 %v8959_v5, %v4780_v56  ;;  %v4534_v10 = vpop.f32.mrf.mxu1  ;;  %v4785_v58 = vpop.f32.mrf.mxu0 }
 0x2f1   :  { %5240 = vst [vmem:[%s9528_s4 + $0xb0] sm:$0xff] %v5154_v41  ;;  %v5155_v57 = vmax.f32 %v5069_v1, 0.0  ;;  %v4973_v14 = vmul.f32 %v8964_v12, %v4782_v44  ;;  %v4784_v40 = vadd.f32 %v4783_v30, %v4533_v52  ;;  %v4535_v46 = vadd.f32 %v4534_v10, %v8632_v33 }
 0x2f2   :  { %v5070_v20 = vadd.f32 %v8961_v54, %v4972_v13  ;;  %v4538_v16 = vpop.f32.mrf.mxu1  ;;  %v4789_v8 = vpop.f32.mrf.mxu0 }
 0x2f3   :  { %5241 = vst.msk [vmem:[%s9528_s4 + $0xb8] sm:$0xff] %vm3112_vm0, %v5155_v57  ;;  %v5071_v32 = vadd.f32 %v8967_v35, %v4973_v14  ;;  %v4974_v0 = vmul.f32 %v8959_v5, %v4784_v40  ;;  %v4786_v63 = vadd.f32 %v4785_v58, %v4535_v46  ;;  %v4539_v2 = vadd.f32 %v4538_v16, %v8636_v22 }
 0x2f4   :  { %v5156_v27 = vmax.f32 %v5070_v20, 0.0  ;;  %v4540_v47 = vpop.f32.mrf.mxu1  ;;  %v4791_v6 = vpop.f32.mrf.mxu0 }
 0x2f5   :  { %v5157_v33 = vmax.f32 %v5071_v32, 0.0  ;;  %v5072_v50 = vadd.f32 %v8961_v54, %v4974_v0  ;;  %v4975_v62 = vmul.f32 %v8964_v12, %v4786_v63  ;;  %v4790_v19 = vadd.f32 %v4789_v8, %v4539_v2 }
 0x2f6   :  { %5242 = vst [vmem:[%s9528_s4 + $0xc0] sm:$0xff] %v5156_v27  ;;  %v4541_v48 = vadd.f32 %v4540_v47, %v8645_v11  ;;  %v4542_v53 = vpop.f32.mrf.mxu1  ;;  %v4793_v37 = vpop.f32.mrf.mxu0 }
 0x2f7   :  { %5243 = vst.msk [vmem:[%s9528_s4 + $0xc8] sm:$0xff] %vm3112_vm0, %v5157_v33  ;;  %v5158_v22 = vmax.f32 %v5072_v50, 0.0  ;;  %v5073_v25 = vadd.f32 %v8967_v35, %v4975_v62  ;;  %v4976_v36 = vmul.f32 %v8959_v5, %v4790_v19  ;;  %v4543_v18 = vadd.f32 %v4542_v53, %v8654_v31 }
 0x2f8   :  { %v4792_v38 = vadd.f32 %v4791_v6, %v4541_v48  ;;  %v4544_v24 = vpop.f32.mrf.mxu1  ;;  %v4795_v26 = vpop.f32.mrf.mxu0 }
 0x2f9   :  { %5244 = vst [vmem:[%s9528_s4 + $0xd0] sm:$0xff] %v5158_v22  ;;  %v5159_v11 = vmax.f32 %v5073_v25, 0.0  ;;  %v5074_v61 = vadd.f32 %v8961_v54, %v4976_v36  ;;  %v4794_v29 = vadd.f32 %v4793_v37, %v4543_v18  ;;  %v4545_v17 = vadd.f32 %v4544_v24, %v8657_v51 }
 0x2fa   :  { %v4977_v7 = vmul.f32 %v8964_v12, %v4792_v38  ;;  %v4548_v45 = vpop.f32.mrf.mxu1  ;;  %v4799_v43 = vpop.f32.mrf.mxu0 }
 0x2fb   :  { %5245 = vst.msk [vmem:[%s9528_s4 + $0xd8] sm:$0xff] %vm3112_vm0, %v5159_v11  ;;  %v5160_v31 = vmax.f32 %v5074_v61, 0.0  ;;  %v4978_v60 = vmul.f32 %v8959_v5, %v4794_v29  ;;  %v4796_v42 = vadd.f32 %v4795_v26, %v4545_v17  ;;  %v4549_v28 = vadd.f32 %v4548_v45, %v8661_v34 }
 0x2fc   :  { %v5075_v56 = vadd.f32 %v8967_v35, %v4977_v7  ;;  %v4550_v39 = vpop.f32.mrf.mxu1  ;;  %v4801_v30 = vpop.f32.mrf.mxu0  ;;  %v9731_v7 = vld [vmem:[#allocation36_spill] sm:$0xff] }
 0x2fd   :  { %5246 = vst [vmem:[%s9528_s4 + $0xe0] sm:$0xff] %v5160_v31  ;;  %v5076_v51 = vadd.f32 %v8961_v54, %v4978_v60  ;;  %v4979_v41 = vmul.f32 %v8964_v12, %v4796_v42  ;;  %v4800_v1 = vadd.f32 %v4799_v43, %v4549_v28  ;;  %v4551_v44 = vadd.f32 %v4550_v39, %v8670_v9  ;;  %v9732_v28 = vld [vmem:[#allocation37_spill] sm:$0xff] }
 0x2fe   :  { %v5161_v52 = vmax.f32 %v5075_v56, 0.0  ;;  %v4552_v13 = vpop.f32.mrf.mxu1  ;;  %v4803_v10 = vpop.f32.mrf.mxu0 }
 0x2ff   :  { %v5162_v58 = vmax.f32 %v5076_v51, 0.0  ;;  %v5077_v34 = vadd.f32 %v8967_v35, %v4979_v41  ;;  %v4980_v57 = vmul.f32 %v8959_v5, %v4800_v1  ;;  %v4802_v14 = vadd.f32 %v4801_v30, %v4551_v44 }
 0x300   :  { %5247 = vst.msk [vmem:[%s9528_s4 + $0xe8] sm:$0xff] %vm3112_vm0, %v5161_v52  ;;  %v4553_v40 = vadd.f32 %v4552_v13, %v8679_v59  ;;  %v4554_v46 = vpop.f32.mrf.mxu1  ;;  %v4805_v20 = vpop.f32.mrf.mxu0  ;;  %v9733_v52 = vld [vmem:[#allocation38_spill] sm:$0xff] }
 0x301   :  { %5248 = vst [vmem:[%s9528_s4 + $0xf0] sm:$0xff] %v5162_v58  ;;  %v5163_v9 = vmax.f32 %v5077_v34, 0.0  ;;  %v5078_v16 = vadd.f32 %v8961_v54, %v4980_v57  ;;  %v4981_v8 = vmul.f32 %v8964_v12, %v4802_v14  ;;  %v4555_v32 = vadd.f32 %v4554_v46, %v8682_v23  ;;  %v9734_v46 = vld [vmem:[#allocation39_spill] sm:$0xff] }
 0x302   :  { %v4804_v0 = vadd.f32 %v4803_v10, %v4553_v40  ;;  %v4558_v63 = vpop.f32.mrf.mxu1  ;;  %v4809_v2 = vpop.f32.mrf.mxu0 }
 0x303   :  { %5249 = vst.msk [vmem:[%s9528_s4 + $0xf8] sm:$0xff] %vm3112_vm0, %v5163_v9  ;;  %v5164_v59 = vmax.f32 %v5078_v16, 0.0  ;;  %v5079_v27 = vadd.f32 %v8967_v35, %v4981_v8  ;;  %v4806_v47 = vadd.f32 %v4805_v20, %v4555_v32  ;;  %v4559_v6 = vadd.f32 %v4558_v63, %v8686_v4 }
 0x304   :  { %v4982_v33 = vmul.f32 %v8959_v5, %v4804_v0  ;;  %v4560_v50 = vpop.f32.mrf.mxu1  ;;  %v4811_v62 = vpop.f32.mrf.mxu0 }
 0x305   :  { %5250 = vst [vmem:[%s9528_s4 + $0x100] sm:$0xff] %v5164_v59  ;;  %v5165_v23 = vmax.f32 %v5079_v27, 0.0  ;;  %v4983_v19 = vmul.f32 %v8964_v12, %v4806_v47  ;;  %v4810_v48 = vadd.f32 %v4809_v2, %v4559_v6  ;;  %v4561_v53 = vadd.f32 %v4560_v50, %v8695_v55  ;;  %v9735_v2 = vld [vmem:[#allocation40_spill] sm:$0xff] }
 0x306   :  { %v5080_v37 = vadd.f32 %v8961_v54, %v4982_v33  ;;  %v4562_v22 = vpop.f32.mrf.mxu1  ;;  %v4813_v25 = vpop.f32.mrf.mxu0 }
 0x307   :  { %5251 = vst.msk [vmem:[%s9528_s4 + $0x108] sm:$0xff] %vm3112_vm0, %v5165_v23  ;;  %v5081_v4 = vadd.f32 %v8967_v35, %v4983_v19  ;;  %v4984_v36 = vmul.f32 %v8959_v5, %v4810_v48  ;;  %v4812_v18 = vadd.f32 %v4811_v62, %v4561_v53  ;;  %v4563_v38 = vadd.f32 %v4562_v22, %v8704_v21  ;;  %v9736_v19 = vld [vmem:[#allocation41_spill] sm:$0xff] }
 0x308   :  { %v5166_v24 = vmax.f32 %v5080_v37, 0.0  ;;  %v4564_v26 = vpop.f32.mrf.mxu1  ;;  %v4815_v11 = vpop.f32.mrf.mxu0 }
 0x309   :  { %v5167_v55 = vmax.f32 %v5081_v4, 0.0  ;;  %v5082_v61 = vadd.f32 %v8961_v54, %v4984_v36  ;;  %v4985_v29 = vmul.f32 %v8964_v12, %v4812_v18  ;;  %v4814_v17 = vadd.f32 %v4813_v25, %v4563_v38  ;;  %v9737_v36 = vld [vmem:[#allocation42_spill] sm:$0xff] }
 0x30a   :  { %5252 = vst [vmem:[%s9528_s4 + $0x110] sm:$0xff] %v5166_v24  ;;  %v4565_v45 = vadd.f32 %v4564_v26, %v9731_v7  ;;  %v4568_v43 = vpop.f32.mrf.mxu1  ;;  %v4819_v31 = vpop.f32.mrf.mxu0 }
 0x30b   :  { %5253 = vst.msk [vmem:[%s9528_s4 + $0x118] sm:$0xff] %vm3112_vm0, %v5167_v55  ;;  %v5168_v21 = vmax.f32 %v5082_v61, 0.0  ;;  %v5083_v60 = vadd.f32 %v8967_v35, %v4985_v29  ;;  %v4986_v42 = vmul.f32 %v8959_v5, %v4814_v17  ;;  %v4569_v56 = vadd.f32 %v4568_v43, %v9732_v28  ;;  %v9738_v29 = vld [vmem:[#allocation43_spill] sm:$0xff] }
 0x30c   :  { %v4816_v39 = vadd.f32 %v4815_v11, %v4565_v45  ;;  %v4570_v30 = vpop.f32.mrf.mxu1  ;;  %v4821_v51 = vpop.f32.mrf.mxu0 }
 0x30d   :  { %5254 = vst [vmem:[%s9528_s4 + $0x120] sm:$0xff] %v5168_v21  ;;  %v5169_v41 = vmax.f32 %v5083_v60, 0.0  ;;  %v5084_v1 = vadd.f32 %v8961_v54, %v4986_v42  ;;  %v4820_v44 = vadd.f32 %v4819_v31, %v4569_v56  ;;  %v4571_v13 = vadd.f32 %v4570_v30, %v9733_v52  ;;  %v9739_v42 = vld [vmem:[#allocation44_spill] sm:$0xff] }
 0x30e   :  { %v4987_v10 = vmul.f32 %v8964_v12, %v4816_v39  ;;  %v4572_v58 = vpop.f32.mrf.mxu1  ;;  %v4823_v34 = vpop.f32.mrf.mxu0 }
 0x30f   :  { %5255 = vst.msk [vmem:[%s9528_s4 + $0x128] sm:$0xff] %vm3112_vm0, %v5169_v41  ;;  %v5170_v57 = vmax.f32 %v5084_v1, 0.0  ;;  %v4988_v14 = vmul.f32 %v8959_v5, %v4820_v44  ;;  %v4822_v40 = vadd.f32 %v4821_v51, %v4571_v13  ;;  %v4573_v20 = vadd.f32 %v4572_v58, %v9734_v46  ;;  %v9740_v44 = vld [vmem:[#allocation45_spill] sm:$0xff]  ;;  %v9741_v46 = vld [vmem:[#allocation46_spill] sm:$0xff] }
 0x310   :  { %v5085_v9 = vadd.f32 %v8967_v35, %v4987_v10  ;;  %v4574_v16 = vpop.f32.mrf.mxu1  ;;  %v4825_v8 = vpop.f32.mrf.mxu0 }
 0x311   :  { %5256 = vst [vmem:[%s9528_s4 + $0x130] sm:$0xff] %v5170_v57  ;;  %v5086_v32 = vadd.f32 %v8961_v54, %v4988_v14  ;;  %v4989_v0 = vmul.f32 %v8964_v12, %v4822_v40  ;;  %v4824_v63 = vadd.f32 %v4823_v34, %v4573_v20  ;;  %v4575_v59 = vadd.f32 %v4574_v16, %v9735_v2 }
 0x312   :  { %v5171_v27 = vmax.f32 %v5085_v9, 0.0  ;;  %v4578_v47 = vpop.f32.mrf.mxu1  ;;  %v4829_v6 = vpop.f32.mrf.mxu0 }
 0x313   :  { %v5172_v33 = vmax.f32 %v5086_v32, 0.0  ;;  %v5087_v50 = vadd.f32 %v8967_v35, %v4989_v0  ;;  %v4990_v62 = vmul.f32 %v8959_v5, %v4824_v63  ;;  %v4826_v23 = vadd.f32 %v4825_v8, %v4575_v59  ;;  %v9742_v63 = vld [vmem:[#allocation2_spill] sm:$0xff] }
 0x314   :  { %5257 = vst.msk [vmem:[%s9528_s4 + $0x138] sm:$0xff] %vm3112_vm0, %v5171_v27  ;;  %v4579_v48 = vadd.f32 %v4578_v47, %v9736_v19  ;;  %v4580_v53 = vpop.f32.mrf.mxu1  ;;  %v4831_v37 = vpop.f32.mrf.mxu0 }
 0x315   :  { %5258 = vst [vmem:[%s9528_s4 + $0x140] sm:$0xff] %v5172_v33  ;;  %v5173_v22 = vmax.f32 %v5087_v50, 0.0  ;;  %v5088_v25 = vadd.f32 %v8961_v54, %v4990_v62  ;;  %v4991_v4 = vmul.f32 %v8964_v12, %v4826_v23  ;;  %v4581_v18 = vadd.f32 %v4580_v53, %v9737_v36  ;;  %v9743_v62 = vld [vmem:[#allocation3_spill] sm:$0xff] }
 0x316   :  { %v4830_v38 = vadd.f32 %v4829_v6, %v4579_v48  ;;  %v4582_v24 = vpop.f32.mrf.mxu1  ;;  %v4833_v26 = vpop.f32.mrf.mxu0 }
 0x317   :  { %5259 = vst.msk [vmem:[%s9528_s4 + $0x148] sm:$0xff] %vm3112_vm0, %v5173_v22  ;;  %v5174_v11 = vmax.f32 %v5088_v25, 0.0  ;;  %v5089_v55 = vadd.f32 %v8967_v35, %v4991_v4  ;;  %v4832_v61 = vadd.f32 %v4831_v37, %v4581_v18  ;;  %v4583_v17 = vadd.f32 %v4582_v24, %v9738_v29  ;;  %v9744_v4 = vld [vmem:[#allocation4_spill] sm:$0xff] }
 0x318   :  { %v4992_v7 = vmul.f32 %v8959_v5, %v4830_v38  ;;  %v4584_v45 = vpop.f32.mrf.mxu1  ;;  %v4835_v43 = vpop.f32.mrf.mxu0 }
 0x319   :  { %5260 = vst [vmem:[%s9528_s4 + $0x150] sm:$0xff] %v5174_v11  ;;  %v5175_v31 = vmax.f32 %v5089_v55, 0.0  ;;  %v4993_v21 = vmul.f32 %v8964_v12, %v4832_v61  ;;  %v4834_v60 = vadd.f32 %v4833_v26, %v4583_v17  ;;  %v4585_v28 = vadd.f32 %v4584_v45, %v9739_v42  ;;  %v9745_v61 = vld [vmem:[#allocation5_spill] sm:$0xff]  ;;  %v9746_v42 = vld [vmem:[#allocation6_spill] sm:$0xff] }
 0x31a   :  { %v5090_v56 = vadd.f32 %v8961_v54, %v4992_v7  ;;  %v4588_v39 = vpop.f32.mrf.mxu1  ;;  %v4839_v30 = vpop.f32.mrf.mxu0 }
 0x31b   :  { %5261 = vst.msk [vmem:[%s9528_s4 + $0x158] sm:$0xff] %vm3112_vm0, %v5175_v31  ;;  %v5091_v51 = vadd.f32 %v8967_v35, %v4993_v21  ;;  %v4994_v41 = vmul.f32 %v8959_v5, %v4834_v60  ;;  %v4836_v1 = vadd.f32 %v4835_v43, %v4585_v28  ;;  %v4589_v52 = vadd.f32 %v4588_v39, %v9740_v44 }
 0x31c   :  { %v5176_v13 = vmax.f32 %v5090_v56, 0.0  ;;  %v4590_v10 = vpop.f32.mrf.mxu1  ;;  %v4841_v58 = vpop.f32.mrf.mxu0 }
 0x31d   :  { %v5177_v34 = vmax.f32 %v5091_v51, 0.0  ;;  %v5092_v57 = vadd.f32 %v8961_v54, %v4994_v41  ;;  %v4995_v14 = vmul.f32 %v8964_v12, %v4836_v1  ;;  %v4840_v40 = vadd.f32 %v4839_v30, %v4589_v52  ;;  %v9747_v1 = vld [vmem:[#allocation7_spill] sm:$0xff] }
 0x31e   :  { %5262 = vst [vmem:[%s9528_s4 + $0x160] sm:$0xff] %v5176_v13  ;;  %v4591_v20 = vadd.f32 %v4590_v10, %v9741_v46  ;;  %v4592_v9 = vpop.f32.mrf.mxu1  ;;  %v4843_v16 = vpop.f32.mrf.mxu0 }
 0x31f   :  { %5263 = vst.msk [vmem:[%s9528_s4 + $0x168] sm:$0xff] %vm3112_vm0, %v5177_v34  ;;  %v5178_v8 = vmax.f32 %v5092_v57, 0.0  ;;  %v5093_v32 = vadd.f32 %v8967_v35, %v4995_v14  ;;  %v4996_v0 = vmul.f32 %v8959_v5, %v4840_v40  ;;  %v4593_v2 = vadd.f32 %v4592_v9, %v9742_v63  ;;  %v9748_v14 = vld [vmem:[#allocation8_spill] sm:$0xff] }
 0x320   :  { %v4842_v59 = vadd.f32 %v4841_v58, %v4591_v20  ;;  %v4594_v27 = vpop.f32.mrf.mxu1  ;;  %v4845_v47 = vpop.f32.mrf.mxu0 }
 0x321   :  { %5264 = vst [vmem:[%s9528_s4 + $0x170] sm:$0xff] %v5178_v8  ;;  %v5179_v6 = vmax.f32 %v5093_v32, 0.0  ;;  %v5094_v33 = vadd.f32 %v8961_v54, %v4996_v0  ;;  %v4844_v50 = vadd.f32 %v4843_v16, %v4593_v2  ;;  %v4595_v23 = vadd.f32 %v4594_v27, %v9743_v62  ;;  %v9749_v0 = vld [vmem:[#allocation9_spill] sm:$0xff] }
 0x322   :  { %v4997_v19 = vmul.f32 %v8964_v12, %v4842_v59  ;;  %v4598_v48 = vpop.f32.mrf.mxu1  ;;  %v4849_v53 = vpop.f32.mrf.mxu0 }
 0x323   :  { %5265 = vst.msk [vmem:[%s9528_s4 + $0x178] sm:$0xff] %vm3112_vm0, %v5179_v6  ;;  %v5180_v37 = vmax.f32 %v5094_v33, 0.0  ;;  %v4998_v22 = vmul.f32 %v8959_v5, %v4844_v50  ;;  %v4846_v25 = vadd.f32 %v4845_v47, %v4595_v23  ;;  %v4599_v36 = vadd.f32 %v4598_v48, %v9744_v4  ;;  %v9750_v50 = vld [vmem:[#allocation10_spill] sm:$0xff]  ;;  %v9751_v4 = vld [vmem:[#allocation11_spill] sm:$0xff] }
 0x324   :  { %v5095_v18 = vadd.f32 %v8967_v35, %v4997_v19  ;;  %v4600_v38 = vpop.f32.mrf.mxu1  ;;  %v4851_v24 = vpop.f32.mrf.mxu0 }
 0x325   :  { %5266 = vst [vmem:[%s9528_s4 + $0x180] sm:$0xff] %v5180_v37  ;;  %v5096_v26 = vadd.f32 %v8961_v54, %v4998_v22  ;;  %v4999_v11 = vmul.f32 %v8964_v12, %v4846_v25  ;;  %v4850_v55 = vadd.f32 %v4849_v53, %v4599_v36  ;;  %v4601_v29 = vadd.f32 %v4600_v38, %v9745_v61 }
 0x326   :  { %v5181_v17 = vmax.f32 %v5095_v18, 0.0  ;;  %v4602_v7 = vpop.f32.mrf.mxu1  ;;  %v4853_v45 = vpop.f32.mrf.mxu0 }
 0x327   :  { %v5182_v43 = vmax.f32 %v5096_v26, 0.0  ;;  %v5097_v31 = vadd.f32 %v8967_v35, %v4999_v11  ;;  %v5000_v21 = vmul.f32 %v8959_v5, %v4850_v55  ;;  %v4852_v60 = vadd.f32 %v4851_v24, %v4601_v29  ;;  %v9752_v55 = vld [vmem:[#allocation12_spill] sm:$0xff] }
 0x328   :  { %5267 = vst.msk [vmem:[%s9528_s4 + $0x188] sm:$0xff] %vm3112_vm0, %v5181_v17  ;;  %v4603_v28 = vadd.f32 %v4602_v7, %v9746_v42  ;;  %v4604_v56 = vpop.f32.mrf.mxu1  ;;  %v4855_v39 = vpop.f32.mrf.mxu0 }
 0x329   :  { %5268 = vst [vmem:[%s9528_s4 + $0x190] sm:$0xff] %v5182_v43  ;;  %v5183_v30 = vmax.f32 %v5097_v31, 0.0  ;;  %v5098_v51 = vadd.f32 %v8961_v54, %v5000_v21  ;;  %v5001_v41 = vmul.f32 %v8964_v12, %v4852_v60  ;;  %v4605_v44 = vadd.f32 %v4604_v56, %v9747_v1  ;;  %v9753_v21 = vld [vmem:[#allocation13_spill] sm:$0xff] }
 0x32a   :  { %v4854_v52 = vadd.f32 %v4853_v45, %v4603_v28  ;;  %v4608_v13 = vpop.f32.mrf.mxu1  ;;  %v4859_v10 = vpop.f32.mrf.mxu0 }
 0x32b   :  { %5269 = vst.msk [vmem:[%s9528_s4 + $0x198] sm:$0xff] %vm3112_vm0, %v5183_v30  ;;  %v5184_v58 = vmax.f32 %v5098_v51, 0.0  ;;  %v5099_v34 = vadd.f32 %v8967_v35, %v5001_v41  ;;  %v4856_v57 = vadd.f32 %v4855_v39, %v4605_v44  ;;  %v4609_v40 = vadd.f32 %v4608_v13, %v9748_v14  ;;  %v9754_v41 = vld [vmem:[#allocation14_spill] sm:$0xff] }
 0x32c   :  { %v5002_v46 = vmul.f32 %v8959_v5, %v4854_v52  ;;  %v4610_v20 = vpop.f32.mrf.mxu1  ;;  %v4861_v9 = vpop.f32.mrf.mxu0 }
 0x32d   :  { %5270 = vst [vmem:[%s9528_s4 + $0x1a0] sm:$0xff] %v5184_v58  ;;  %v5185_v16 = vmax.f32 %v5099_v34, 0.0  ;;  %v5003_v8 = vmul.f32 %v8964_v12, %v4856_v57  ;;  %v4860_v32 = vadd.f32 %v4859_v10, %v4609_v40  ;;  %v4611_v63 = vadd.f32 %v4610_v20, %v9749_v0  ;;  %v9755_v57 = vld [vmem:[#allocation15_spill] sm:$0xff]  ;;  %v9756_v0 = vld [vmem:[#allocation16_spill] sm:$0xff] }
 0x32e   :  { %v5100_v2 = vadd.f32 %v8961_v54, %v5002_v46  ;;  %v4612_v59 = vpop.f32.mrf.mxu1  ;;  %v4863_v27 = vpop.f32.mrf.mxu0 }
 0x32f   :  { %5271 = vst.msk [vmem:[%s9528_s4 + $0x1a8] sm:$0xff] %vm3112_vm0, %v5185_v16  ;;  %v5101_v47 = vadd.f32 %v8967_v35, %v5003_v8  ;;  %v5004_v6 = vmul.f32 %v8959_v5, %v4860_v32  ;;  %v4862_v33 = vadd.f32 %v4861_v9, %v4611_v63  ;;  %v4613_v62 = vadd.f32 %v4612_v59, %v9750_v50 }
 0x330   :  { %v5186_v23 = vmax.f32 %v5100_v2, 0.0  ;;  %v4614_v19 = vpop.f32.mrf.mxu1  ;;  %v4865_v48 = vpop.f32.mrf.mxu0 }
 0x331   :  { %v5187_v53 = vmax.f32 %v5101_v47, 0.0  ;;  %v5102_v37 = vadd.f32 %v8961_v54, %v5004_v6  ;;  %v5005_v22 = vmul.f32 %v8964_v12, %v4862_v33  ;;  %v4864_v25 = vadd.f32 %v4863_v27, %v4613_v62  ;;  %v9757_v33 = vld [vmem:[#allocation17_spill] sm:$0xff] }
 0x332   :  { %5272 = vst [vmem:[%s9528_s4 + $0x1b0] sm:$0xff] %v5186_v23  ;;  %v4615_v36 = vadd.f32 %v4614_v19, %v9751_v4  ;;  %v4618_v18 = vpop.f32.mrf.mxu1  ;;  %v4869_v38 = vpop.f32.mrf.mxu0 }
 0x333   :  { %5273 = vst.msk [vmem:[%s9528_s4 + $0x1b8] sm:$0xff] %vm3112_vm0, %v5187_v53  ;;  %v5188_v24 = vmax.f32 %v5102_v37, 0.0  ;;  %v5103_v26 = vadd.f32 %v8967_v35, %v5005_v22  ;;  %v5006_v11 = vmul.f32 %v8959_v5, %v4864_v25  ;;  %v4619_v61 = vadd.f32 %v4618_v18, %v9752_v55  ;;  %v9758_v22 = vld [vmem:[#allocation18_spill] sm:$0xff] }
 0x334   :  { %v4866_v29 = vadd.f32 %v4865_v48, %v4615_v36  ;;  %v4620_v17 = vpop.f32.mrf.mxu1  ;;  %v4871_v7 = vpop.f32.mrf.mxu0 }
 0x335   :  { %5274 = vst [vmem:[%s9528_s4 + $0x1c0] sm:$0xff] %v5188_v24  ;;  %v5189_v45 = vmax.f32 %v5103_v26, 0.0  ;;  %v5104_v43 = vadd.f32 %v8961_v54, %v5006_v11  ;;  %v4870_v31 = vadd.f32 %v4869_v38, %v4619_v61  ;;  %v4621_v60 = vadd.f32 %v4620_v17, %v9753_v21  ;;  %v9759_v11 = vld [vmem:[#allocation19_spill] sm:$0xff] }
 0x336   :  { %v5007_v42 = vmul.f32 %v8964_v12, %v4866_v29  ;;  %v4622_v28 = vpop.f32.mrf.mxu1  ;;  %v4873_v56 = vpop.f32.mrf.mxu0 }
 0x337   :  { %5275 = vst.msk [vmem:[%s9528_s4 + $0x1c8] sm:$0xff] %vm3112_vm0, %v5189_v45  ;;  %v5190_v39 = vmax.f32 %v5104_v43, 0.0  ;;  %v5008_v30 = vmul.f32 %v8959_v5, %v4870_v31  ;;  %v4872_v51 = vadd.f32 %v4871_v7, %v4621_v60  ;;  %v4623_v1 = vadd.f32 %v4622_v28, %v9754_v41  ;;  %v9760_v31 = vld [vmem:[#allocation20_spill] sm:$0xff] }
 0x338   :  { %v5105_v44 = vadd.f32 %v8967_v35, %v5007_v42  ;;  %v4624_v52 = vpop.f32.mrf.mxu1  ;;  %v4875_v13 = vpop.f32.mrf.mxu0 }
 0x339   :  { %5276 = vst [vmem:[%s9528_s4 + $0x1d0] sm:$0xff] %v5190_v39  ;;  %v5106_v10 = vadd.f32 %v8961_v54, %v5008_v30  ;;  %v5009_v58 = vmul.f32 %v8964_v12, %v4872_v51  ;;  %v4874_v34 = vadd.f32 %v4873_v56, %v4623_v1  ;;  %v4625_v14 = vadd.f32 %v4624_v52, %v9755_v57 }
 0x33a   :  { %v5191_v40 = vmax.f32 %v5105_v44, 0.0  ;;  %v4628_v46 = vpop.f32.mrf.mxu1  ;;  %v4879_v20 = vpop.f32.mrf.mxu0 }
 0x33b   :  { %v5192_v9 = vmax.f32 %v5106_v10, 0.0  ;;  %v5107_v16 = vadd.f32 %v8967_v35, %v5009_v58  ;;  %v5010_v8 = vmul.f32 %v8959_v5, %v4874_v34  ;;  %v4876_v32 = vadd.f32 %v4875_v13, %v4625_v14  ;;  %v9761_v58 = vld [vmem:[#allocation21_spill] sm:$0xff] }
 0x33c   :  { %5277 = vst.msk [vmem:[%s9528_s4 + $0x1d8] sm:$0xff] %vm3112_vm0, %v5191_v40  ;;  %v4629_v63 = vadd.f32 %v4628_v46, %v9756_v0  ;;  %v4630_v2 = vpop.f32.mrf.mxu1  ;;  %v4881_v59 = vpop.f32.mrf.mxu0 }
 0x33d   :  { %5278 = vst [vmem:[%s9528_s4 + $0x1e0] sm:$0xff] %v5192_v9  ;;  %v5193_v27 = vmax.f32 %v5107_v16, 0.0  ;;  %v5108_v47 = vadd.f32 %v8961_v54, %v5010_v8  ;;  %v5011_v6 = vmul.f32 %v8964_v12, %v4876_v32  ;;  %v4631_v50 = vadd.f32 %v4630_v2, %v9757_v33  ;;  %v9762_v9 = vld [vmem:[#allocation22_spill] sm:$0xff] }
 0x33e   :  { %v4880_v62 = vadd.f32 %v4879_v20, %v4629_v63  ;;  %v4632_v23 = vpop.f32.mrf.mxu1  ;;  %v4883_v19 = vpop.f32.mrf.mxu0 }
 0x33f   :  { %5279 = vst.msk [vmem:[%s9528_s4 + $0x1e8] sm:$0xff] %vm3112_vm0, %v5193_v27  ;;  %v5194_v48 = vmax.f32 %v5108_v47, 0.0  ;;  %v5109_v53 = vadd.f32 %v8967_v35, %v5011_v6  ;;  %v4882_v37 = vadd.f32 %v4881_v59, %v4631_v50  ;;  %v4633_v25 = vadd.f32 %v4632_v23, %v9758_v22 }
 0x340   :  { %v5012_v4 = vmul.f32 %v8959_v5, %v4880_v62  ;;  %v4634_v36 = vpop.f32.mrf.mxu1  ;;  %v4885_v18 = vpop.f32.mrf.mxu0 }
 0x341   :  { %5280 = vst [vmem:[%s9528_s4 + $0x1f0] sm:$0xff] %v5194_v48  ;;  %v5195_v38 = vmax.f32 %v5109_v53, 0.0  ;;  %v5013_v24 = vmul.f32 %v8964_v12, %v4882_v37  ;;  %v4884_v26 = vadd.f32 %v4883_v19, %v4633_v25  ;;  %v4635_v55 = vadd.f32 %v4634_v36, %v9759_v11  ;;  %v9763_v36 = vld [vmem:[#allocation23_spill] sm:$0xff] }
 0x342   :  { %v5110_v61 = vadd.f32 %v8961_v54, %v5012_v4  ;;  %v4638_v29 = vpop.f32.mrf.mxu1  ;;  %v4889_v17 = vpop.f32.mrf.mxu0 }
 0x343   :  { %5281 = vst.msk [vmem:[%s9528_s4 + $0x1f8] sm:$0xff] %vm3112_vm0, %v5195_v38  ;;  %v5111_v7 = vadd.f32 %v8967_v35, %v5013_v24  ;;  %v5014_v45 = vmul.f32 %v8959_v5, %v4884_v26  ;;  %v4886_v43 = vadd.f32 %v4885_v18, %v4635_v55  ;;  %v4639_v21 = vadd.f32 %v4638_v29, %v9760_v31  ;;  %v9764_v55 = vld [vmem:[#allocation24_spill] sm:$0xff] }
 0x344   :  { %v5196_v60 = vmax.f32 %v5110_v61, 0.0  ;;  %v4640_v42 = vpop.f32.mrf.mxu1  ;;  %v4891_v28 = vpop.f32.mrf.mxu0 }
 0x345   :  { %v5197_v56 = vmax.f32 %v5111_v7, 0.0  ;;  %v5112_v39 = vadd.f32 %v8961_v54, %v5014_v45  ;;  %v5015_v30 = vmul.f32 %v8964_v12, %v4886_v43  ;;  %v4890_v51 = vadd.f32 %v4889_v17, %v4639_v21  ;;  %v9765_v21 = vld [vmem:[#allocation25_spill] sm:$0xff] }
 0x346   :  { %5282 = vst [vmem:[%s9528_s4 + $0x200] sm:$0xff] %v5196_v60  ;;  %v4641_v41 = vadd.f32 %v4640_v42, %v8901_v15  ;;  %v4642_v1 = vpop.f32.mrf.mxu1  ;;  %v4893_v44 = vpop.f32.mrf.mxu0 }
 0x347   :  { %5283 = vst.msk [vmem:[%s9528_s4 + $0x208] sm:$0xff] %vm3112_vm0, %v5197_v56  ;;  %v5198_v52 = vmax.f32 %v5112_v39, 0.0  ;;  %v5113_v13 = vadd.f32 %v8967_v35, %v5015_v30  ;;  %v5016_v10 = vmul.f32 %v8959_v5, %v4890_v51  ;;  %v4643_v34 = vadd.f32 %v4642_v1, %v9761_v58 }
 0x348   :  { %v4892_v57 = vadd.f32 %v4891_v28, %v4641_v41  ;;  %v4644_v14 = vpop.f32.mrf.mxu1  ;;  %v4895_v40 = vpop.f32.mrf.mxu0  ;;  %v9766_v41 = vld [vmem:[#allocation26_spill] sm:$0xff] }
 0x349   :  { %5284 = vst [vmem:[%s9528_s4 + $0x210] sm:$0xff] %v5198_v52  ;;  %v5199_v15 = vmax.f32 %v5113_v13, 0.0  ;;  %v5114_v46 = vadd.f32 %v8961_v54, %v5016_v10  ;;  %v4894_v20 = vadd.f32 %v4893_v44, %v4643_v34  ;;  %v4645_v16 = vadd.f32 %v4644_v14, %v9762_v9 }
 0x34a   :  { %v5017_v8 = vmul.f32 %v8964_v12, %v4892_v57  ;;  %v4648_v32 = vpop.f32.mrf.mxu1  ;;  %v4899_v0 = vpop.f32.mrf.mxu0  ;;  %v9767_v57 = vld [vmem:[#allocation27_spill] sm:$0xff] }
 0x34b   :  { %5285 = vst.msk [vmem:[%s9528_s4 + $0x218] sm:$0xff] %vm3112_vm0, %v5199_v15  ;;  %v5200_v63 = vmax.f32 %v5114_v46, 0.0  ;;  %v5018_v2 = vmul.f32 %v8959_v5, %v4894_v20  ;;  %v4896_v59 = vadd.f32 %v4895_v40, %v4645_v16  ;;  %v4649_v27 = vadd.f32 %v4648_v32, %v8911_v49  ;;  %v9768_v32 = vld [vmem:[#allocation28_spill] sm:$0xff] }
 0x34c   :  { %v5115_v47 = vadd.f32 %v8967_v35, %v5017_v8  ;;  %v4650_v6 = vpop.f32.mrf.mxu1  ;;  %v4901_v33 = vpop.f32.mrf.mxu0 }
 0x34d   :  { %5286 = vst [vmem:[%s9528_s4 + $0x220] sm:$0xff] %v5200_v63  ;;  %v5116_v50 = vadd.f32 %v8961_v54, %v5018_v2  ;;  %v5019_v62 = vmul.f32 %v8964_v12, %v4896_v59  ;;  %v4900_v23 = vadd.f32 %v4899_v0, %v4649_v27  ;;  %v4651_v19 = vadd.f32 %v4650_v6, %v8914_v3  ;;  %v9769_v6 = vld [vmem:[#allocation29_spill] sm:$0xff] }
 0x34e   :  { %v5201_v48 = vmax.f32 %v5115_v47, 0.0  ;;  %v4652_v53 = vpop.f32.mrf.mxu1  ;;  %v4903_v37 = vpop.f32.mrf.mxu0 }
 0x34f   :  { %v5202_v22 = vmax.f32 %v5116_v50, 0.0  ;;  %v5117_v49 = vadd.f32 %v8967_v35, %v5019_v62  ;;  %v5020_v25 = vmul.f32 %v8959_v5, %v4900_v23  ;;  %v4902_v4 = vadd.f32 %v4901_v33, %v4651_v19 }
 0x350   :  { %5287 = vst.msk [vmem:[%s9528_s4 + $0x228] sm:$0xff] %vm3112_vm0, %v5201_v48  ;;  %v4653_v18 = vadd.f32 %v4652_v53, %v9763_v36  ;;  %v4654_v38 = vpop.f32.mrf.mxu1  ;;  %v4905_v24 = vpop.f32.mrf.mxu0 }
 0x351   :  { %5288 = vst [vmem:[%s9528_s4 + $0x230] sm:$0xff] %v5202_v22  ;;  %v5203_v3 = vmax.f32 %v5117_v49, 0.0  ;;  %v5118_v26 = vadd.f32 %v8961_v54, %v5020_v25  ;;  %v5021_v11 = vmul.f32 %v8964_v12, %v4902_v4  ;;  %v4655_v61 = vadd.f32 %v4654_v38, %v9764_v55 }
 0x352   :  { %v4904_v29 = vadd.f32 %v4903_v37, %v4653_v18  ;;  %v4658_v17 = vpop.f32.mrf.mxu1  ;;  %v4909_v7 = vpop.f32.mrf.mxu0  ;;  %v9770_v37 = vld [vmem:[#allocation30_spill] sm:$0xff] }
 0x353   :  { %5289 = vst.msk [vmem:[%s9528_s4 + $0x238] sm:$0xff] %vm3112_vm0, %v5203_v3  ;;  %v5204_v45 = vmax.f32 %v5118_v26, 0.0  ;;  %v5119_v43 = vadd.f32 %v8967_v35, %v5021_v11  ;;  %v4906_v31 = vadd.f32 %v4905_v24, %v4655_v61  ;;  %v4659_v60 = vadd.f32 %v4658_v17, %v9765_v21  ;;  %v9771_v24 = vld [vmem:[#allocation31_spill] sm:$0xff] }
 0x354   :  { %v5022_v42 = vmul.f32 %v8959_v5, %v4904_v29  ;;  %v4660_v28 = vpop.f32.mrf.mxu1  ;;  %v4911_v56 = vpop.f32.mrf.mxu0 }
 0x355   :  { %5290 = vst [vmem:[%s9528_s4 + $0x240] sm:$0xff] %v5204_v45  ;;  %v5205_v39 = vmax.f32 %v5119_v43, 0.0  ;;  %v5023_v30 = vmul.f32 %v8964_v12, %v4906_v31  ;;  %v4910_v51 = vadd.f32 %v4909_v7, %v4659_v60  ;;  %v4661_v1 = vadd.f32 %v4660_v28, %v9766_v41  ;;  %v9772_v7 = vld [vmem:[#allocation32_spill] sm:$0xff] }
 0x356   :  { %v5120_v44 = vadd.f32 %v8961_v54, %v5022_v42  ;;  %v4662_v52 = vpop.f32.mrf.mxu1  ;;  %v4913_v13 = vpop.f32.mrf.mxu0 }
 0x357   :  { %5291 = vst.msk [vmem:[%s9528_s4 + $0x248] sm:$0xff] %vm3112_vm0, %v5205_v39  ;;  %v5121_v10 = vadd.f32 %v8967_v35, %v5023_v30  ;;  %v5024_v58 = vmul.f32 %v8959_v5, %v4910_v51  ;;  %v4912_v34 = vadd.f32 %v4911_v56, %v4661_v1  ;;  %v4663_v14 = vadd.f32 %v4662_v52, %v9767_v57  ;;  %v9773_v39 = vld [vmem:[#allocation33_spill] sm:$0xff] }
 0x358   :  { %v5206_v40 = vmax.f32 %v5120_v44, 0.0  ;;  %v4664_v15 = vpop.f32.mrf.mxu1  ;;  %v4915_v46 = vpop.f32.mrf.mxu0 }
 0x359   :  { %v5207_v20 = vmax.f32 %v5121_v10, 0.0  ;;  %v5122_v9 = vadd.f32 %v8961_v54, %v5024_v58  ;;  %v5025_v16 = vmul.f32 %v8964_v12, %v4912_v34  ;;  %v4914_v8 = vadd.f32 %v4913_v13, %v4663_v14  ;;  %v9774_v13 = vld [vmem:[#allocation47_spill] sm:$0xff] }
 0x35a   :  { %5292 = vst [vmem:[%s9528_s4 + $0x250] sm:$0xff] %v5206_v40  ;;  %v4665_v0 = vadd.f32 %v4664_v15, %v9768_v32  ;;  %v4668_v63 = vpop.f32.mrf.mxu1  ;;  %v4919_v2 = vpop.f32.mrf.mxu0 }
 0x35b   :  { %5293 = vst.msk [vmem:[%s9528_s4 + $0x258] sm:$0xff] %vm3112_vm0, %v5207_v20  ;;  %v5208_v59 = vmax.f32 %v5122_v9, 0.0  ;;  %v5123_v27 = vadd.f32 %v8967_v35, %v5025_v16  ;;  %v5026_v47 = vmul.f32 %v8959_v5, %v4914_v8  ;;  %v4669_v33 = vadd.f32 %v4668_v63, %v9769_v6 }
 0x35c   :  { %v4916_v50 = vadd.f32 %v4915_v46, %v4665_v0  ;;  %v4670_v62 = vpop.f32.mrf.mxu1  ;;  %v4921_v23 = vpop.f32.mrf.mxu0 }
 0x35d   :  { %5294 = vst [vmem:[%s9528_s4 + $0x260] sm:$0xff] %v5208_v59  ;;  %v5209_v19 = vmax.f32 %v5123_v27, 0.0  ;;  %v5124_v48 = vadd.f32 %v8961_v54, %v5026_v47  ;;  %v4920_v53 = vadd.f32 %v4919_v2, %v4669_v33  ;;  %v4671_v22 = vadd.f32 %v4670_v62, %v9770_v37 }
 0x35e   :  { %v5027_v49 = vmul.f32 %v8964_v12, %v4916_v50  ;;  %v4672_v25 = vpop.f32.mrf.mxu1  ;;  %v4923_v4 = vpop.f32.mrf.mxu0 }
 0x35f   :  { %5295 = vst.msk [vmem:[%s9528_s4 + $0x268] sm:$0xff] %vm3112_vm0, %v5209_v19  ;;  %v5210_v36 = vmax.f32 %v5124_v48, 0.0  ;;  %v5028_v18 = vmul.f32 %v8959_v5, %v4920_v53  ;;  %v4922_v38 = vadd.f32 %v4921_v23, %v4671_v22  ;;  %v4673_v3 = vadd.f32 %v4672_v25, %v9771_v24 }
 0x360   :  { %v5125_v26 = vadd.f32 %v8967_v35, %v5027_v49  ;;  %v4674_v11 = vpop.f32.mrf.mxu1  ;;  %v4925_v55 = vpop.f32.mrf.mxu0 }
 0x361   :  { %5296 = vst [vmem:[%s9528_s4 + $0x270] sm:$0xff] %v5210_v36  ;;  %v5126_v61 = vadd.f32 %v8961_v54, %v5028_v18  ;;  %v5029_v29 = vmul.f32 %v8964_v12, %v4922_v38  ;;  %v4924_v17 = vadd.f32 %v4923_v4, %v4673_v3  ;;  %v4675_v45 = vadd.f32 %v4674_v11, %v9772_v7 }
 0x362   :  { %v5211_v43 = vmax.f32 %v5125_v26, 0.0  ;;  %v4678_v31 = vpop.f32.mrf.mxu1  ;;  %v4929_v21 = vpop.f32.mrf.mxu0 }
 0x363   :  { %v5212_v60 = vmax.f32 %v5126_v61, 0.0  ;;  %v5127_v42 = vadd.f32 %v8967_v35, %v5029_v29  ;;  %v5030_v28 = vmul.f32 %v8959_v5, %v4924_v17  ;;  %v4926_v56 = vadd.f32 %v4925_v55, %v4675_v45 }
 0x364   :  { %5297 = vst.msk [vmem:[%s9528_s4 + $0x278] sm:$0xff] %vm3112_vm0, %v5211_v43  ;;  %v4679_v30 = vadd.f32 %v4678_v31, %v9773_v39  ;;  %v4680_v51 = vpop.f32.mrf.mxu1  ;;  %v4931_v41 = vpop.f32.mrf.mxu0 }
 0x365   :  { %5298 = vst [vmem:[%s9528_s4 + $0x280] sm:$0xff] %v5212_v60  ;;  %v5213_v1 = vmax.f32 %v5127_v42, 0.0  ;;  %v5128_v44 = vadd.f32 %v8961_v54, %v5030_v28  ;;  %v5031_v52 = vmul.f32 %v8964_v12, %v4926_v56  ;;  %v4681_v10 = vadd.f32 %v4680_v51, %v9774_v13 }
 0x366   :  { %v4930_v58 = vadd.f32 %v4929_v21, %v4679_v30  ;;  %v4682_v34 = vpop.f32.mrf.mxu1  ;;  %v4933_v57 = vpop.f32.mrf.mxu0 }
 0x367   :  { %5299 = vst.msk [vmem:[%s9528_s4 + $0x288] sm:$0xff] %vm3112_vm0, %v5213_v1  ;;  %v5214_v14 = vmax.f32 %v5128_v44, 0.0  ;;  %v5129_v40 = vadd.f32 %v8967_v35, %v5031_v52  ;;  %v4932_v15 = vadd.f32 %v4931_v41, %v4681_v10 }
 0x368   :  { %v5032_v46 = vmul.f32 %v8959_v5, %v4930_v58  ;;  %v4683_v20 = vpop.f32.mrf.mxu1  ;;  %v4934_v9 = vpop.f32.mrf.mxu0 }
 0x369   :  { %5300 = vst [vmem:[%s9528_s4 + $0x290] sm:$0xff] %v5214_v14  ;;  %v5215_v16 = vmax.f32 %v5129_v40, 0.0  ;;  %v5033_v8 = vmul.f32 %v8964_v12, %v4932_v15 }
 0x36a   :  { %v5130_v32 = vadd.f32 %v8961_v54, %v5032_v46 }
 0x36b   :  { %5301 = vst.msk [vmem:[%s9528_s4 + $0x298] sm:$0xff] %vm3112_vm0, %v5215_v16  ;;  %v5131_v0 = vadd.f32 %v8967_v35, %v5033_v8 }
 0x36c   :  { %v5216_v63 = vmax.f32 %v5130_v32, 0.0 }
 0x36d   :  { %v5217_v5 = vmax.f32 %v5131_v0, 0.0 }
 0x36e   :  { %5302 = vst [vmem:[%s9528_s4 + $0x2a0] sm:$0x3] %v5216_v63 }
 0x36f   :  { %5304 = vst.msk [vmem:[%s9528_s4 + $0x2a8] sm:$0x3] %vm5303_vm1, %v5217_v5 }

</bundles_post_ra>
